<compile_context>
chip_gen: v7x
topology: tpu7x:2x2x1
jax: 0.10.0
libtpu: 0.0.40
codegen_flags: <defaults>
</compile_context>

<pallas_src>
import functools

import jax
import jax.numpy as jnp
from jax.experimental import pallas as pl
from jax.experimental.pallas import tpu as pltpu

H1 = 512
H2 = 256
OUT = 1
LANES = 128


def _critic_kernel(x_ref, w1_ref, b1_ref, w2_ref, b2_ref, w3r_ref, b3_ref, o_ref):
    # x_ref: (TB, Dp) bf16; w1: (Dp, 512) bf16; w2: (512, 256) bf16
    # b1: (1, 512) f32; b2: (1, 256) f32; w3r: (1, 256) f32; b3: (1, 1) f32
    # o_ref: (1, TB) f32  (lane-dense scores; reshaped to (B, 1) in the wrapper)
    x = x_ref[...]

    # Layer 1: bf16 MXU matmul, f32 accumulation.
    h1 = jnp.dot(x, w1_ref[...], preferred_element_type=jnp.float32) + b1_ref[...]
    h1 = jnp.where(h1 > 0, h1, 0.2 * h1)                     # LeakyReLU(0.2), f32

    # Layer 2: bf16 MXU matmul, f32 accumulation.
    h2 = jnp.dot(h1.astype(jnp.bfloat16), w2_ref[...],
                 preferred_element_type=jnp.float32) + b2_ref[...]
    h2 = jnp.where(h2 > 0, h2, 0.2 * h2)                     # LeakyReLU(0.2), f32

    # Layer 3 (256 -> 1): VPU broadcast-mul + lane reduction instead of an N=1 matmul.
    scores = jnp.sum(h2 * w3r_ref[...], axis=-1)             # (TB,)
    o_ref[...] = (scores[None, :] + b3_ref[...]).astype(o_ref.dtype)


@functools.partial(jax.jit, static_argnames=("batch_tile",))
def critic_forward(x, params, *, batch_tile=256):
    """x: (B, D) float32 -> (B, 1) float32 critic scores."""
    w1, b1, w2, b2, w3, b3 = params
    B, D = x.shape

    # Pad the feature (K) axis to a multiple of 128 lanes with zeros.
    Dp = ((D + LANES - 1) // LANES) * LANES
    if Dp != D:
        x = jnp.pad(x, ((0, 0), (0, Dp - D)))
        w1 = jnp.pad(w1, ((0, Dp - D), (0, 0)))

    # Pad the batch to a multiple of batch_tile (ragged last tile -> zero padding).
    num_tiles = -(-B // batch_tile)
    Bp = num_tiles * batch_tile
    if Bp != B:
        x = jnp.pad(x, ((0, Bp - B), (0, 0)))

    # bf16 operands for the two big MXU matmuls (halves x DMA bytes); f32 elsewhere.
    x_bf = x.astype(jnp.bfloat16)
    w1_bf = w1.astype(jnp.bfloat16)
    w2_bf = w2.astype(jnp.bfloat16)
    w3_row = w3.T                      # (1, H2) f32 row for the VPU reduction
    b3_s = b3.reshape(1, 1)            # (1, 1) f32

    full = lambda shape: pl.BlockSpec(shape, lambda i: (0, 0))

    # NOTE: for very large input_dim on v7x (64 MiB VMEM), consider single-buffering
    # the weights (pipeline_mode=pl.Buffered(1)) and/or vmem_limit_bytes. Not needed
    # at these sizes.
    out = pl.pallas_call(
        _critic_kernel,
        out_shape=jax.ShapeDtypeStruct((num_tiles, batch_tile), jnp.float32),
        grid_spec=pl.GridSpec(
            grid=(num_tiles,),
            in_specs=[
                pl.BlockSpec((batch_tile, Dp), lambda i: (i, 0)),  # x tile (batch-major)
                full((Dp, H1)), full((1, H1)),                     # layer 1 (bf16 W, f32 b)
                full((H1, H2)), full((1, H2)),                     # layer 2 (bf16 W, f32 b)
                full((1, H2)),  full((1, 1)),                      # layer 3 row + bias
            ],
            out_specs=pl.BlockSpec((1, batch_tile), lambda i: (i, 0)),  # lane-dense scores
        ),
        compiler_params=pltpu.CompilerParams(
            dimension_semantics=("parallel",),
        ),
    )(x_bf, w1_bf, b1, w2_bf, b2, w3_row, b3_s)

    # (num_tiles, batch_tile) lane-dense -> (B, 1)
    return out.reshape(Bp, 1)[:B]


def init_params(key, input_dim):
    """Deterministic init mirroring PyTorch nn.Linear default (U[-1/sqrt(fan_in), 1/sqrt(fan_in)]),
    stored as [in, out] for the kernel's x @ W convention."""
    ks = jax.random.split(key, 6)

    def linear(kw, kb, fan_in, fan_out):
        bound = 1.0 / jnp.sqrt(jnp.float32(fan_in))
        w = jax.random.uniform(kw, (fan_in, fan_out), jnp.float32, -bound, bound)
        b = jax.random.uniform(kb, (1, fan_out), jnp.float32, -bound, bound)
        return w, b

    w1, b1 = linear(ks[0], ks[1], input_dim, H1)
    w2, b2 = linear(ks[2], ks[3], H1, H2)
    w3, b3 = linear(ks[4], ks[5], H2, OUT)
    return (w1, b1, w2, b2, w3, b3)


def critic_reference(x, params):
    """Pure-JAX f32 reference for correctness checking."""
    w1, b1, w2, b2, w3, b3 = params
    h = x @ w1 + b1
    h = jnp.where(h > 0, h, 0.2 * h)
    h = h @ w2 + b2
    h = jnp.where(h > 0, h, 0.2 * h)
    return h @ w3 + b3


if __name__ == "__main__":
    key = jax.random.PRNGKey(0)
    k_param, k_x = jax.random.split(key)

    batch = 8
    input_dim = 32

    params = init_params(k_param, input_dim)
    x = jax.random.normal(k_x, (batch, input_dim), dtype=jnp.float32)

    out = critic_forward(x, params)          # batch padded to batch_tile internally
    out = jax.block_until_ready(out)

    ref = critic_reference(x, params)
    assert out.shape == (batch, 1), out.shape
    # Looser tolerance than the pure-f32 version: matmul operands are bf16
    # (accumulation stays f32 via preferred_element_type).
    assert jnp.allclose(out, ref, atol=3e-2, rtol=3e-2), "mismatch vs reference"

    print("KERNEL_OK")
</pallas_src>

<mosaic_0001>
module attributes {stable_mosaic.version = 11 : i64} {
  func.func @_critic_kernel(%arg0: i32, %arg1: memref<256x128xbf16, #tpu.memory_space<vmem>>, %arg2: memref<128x512xbf16, #tpu.memory_space<vmem>>, %arg3: memref<1x512xf32, #tpu.memory_space<vmem>>, %arg4: memref<512x256xbf16, #tpu.memory_space<vmem>>, %arg5: memref<1x256xf32, #tpu.memory_space<vmem>>, %arg6: memref<1x256xf32, #tpu.memory_space<vmem>>, %arg7: memref<1x1xf32, #tpu.memory_space<vmem>>, %arg8: memref<1x256xf32, #tpu.memory_space<vmem>>) attributes {dimension_semantics = [#tpu.dimension_semantics<parallel>], iteration_bounds = array<i64: 1>, scalar_prefetch = 0 : i64, scratch_operands = 0 : i64, tpu.core_type = #tpu.core_type<tc>, window_params = [{transform_indices = @transform_0, window_bounds = array<i64: 256, 128>}, {pipeline_mode = #tpu.pipeline_mode<synchronous>, transform_indices = @transform_1, window_bounds = array<i64: 128, 512>}, {pipeline_mode = #tpu.pipeline_mode<synchronous>, transform_indices = @transform_2, window_bounds = array<i64: 1, 512>}, {pipeline_mode = #tpu.pipeline_mode<synchronous>, transform_indices = @transform_3, window_bounds = array<i64: 512, 256>}, {pipeline_mode = #tpu.pipeline_mode<synchronous>, transform_indices = @transform_4, window_bounds = array<i64: 1, 256>}, {pipeline_mode = #tpu.pipeline_mode<synchronous>, transform_indices = @transform_5, window_bounds = array<i64: 1, 256>}, {pipeline_mode = #tpu.pipeline_mode<synchronous>, transform_indices = @transform_6, window_bounds = array<i64: 1, 1>}, {transform_indices = @transform_7, window_bounds = array<i64: 1, 256>}]} {
    %c0 = arith.constant 0 : index
    %c0_0 = arith.constant 0 : index
    %0 = vector.load %arg1[%c0, %c0_0] : memref<256x128xbf16, #tpu.memory_space<vmem>>, vector<256x128xbf16>
    %c0_1 = arith.constant 0 : index
    %c0_2 = arith.constant 0 : index
    %1 = vector.load %arg2[%c0_1, %c0_2] : memref<128x512xbf16, #tpu.memory_space<vmem>>, vector<128x512xbf16>
    %cst = arith.constant dense<0.000000e+00> : vector<256x512xf32>
    %2 = tpu.matmul %0, %1, %cst {dimension_numbers = #tpu.dot_dimension_numbers<[1], [0], [0], [1], [0, 0, 1, 1], [], []>} : vector<256x128xbf16>, vector<128x512xbf16>, vector<256x512xf32> -> vector<256x512xf32>
    %c0_3 = arith.constant 0 : index
    %c0_4 = arith.constant 0 : index
    %3 = vector.load %arg3[%c0_3, %c0_4] : memref<1x512xf32, #tpu.memory_space<vmem>>, vector<1x512xf32>
    %4 = vector.broadcast %3 : vector<1x512xf32> to vector<256x512xf32>
    %5 = arith.addf %2, %4 : vector<256x512xf32>
    %cst_5 = arith.constant 0.000000e+00 : f32
    %6 = vector.broadcast %cst_5 : f32 to vector<256x512xf32>
    %7 = arith.cmpf ogt, %5, %6 : vector<256x512xf32>
    %cst_6 = arith.constant 2.000000e-01 : f32
    %8 = vector.broadcast %cst_6 : f32 to vector<256x512xf32>
    %9 = arith.mulf %8, %5 : vector<256x512xf32>
    %10 = arith.select %7, %5, %9 : vector<256x512xi1>, vector<256x512xf32>
    %11 = arith.truncf %10 : vector<256x512xf32> to vector<256x512xbf16>
    %c0_7 = arith.constant 0 : index
    %c0_8 = arith.constant 0 : index
    %12 = vector.load %arg4[%c0_7, %c0_8] : memref<512x256xbf16, #tpu.memory_space<vmem>>, vector<512x256xbf16>
    %cst_9 = arith.constant dense<0.000000e+00> : vector<256x256xf32>
    %13 = tpu.matmul %11, %12, %cst_9 {dimension_numbers = #tpu.dot_dimension_numbers<[1], [0], [0], [1], [0, 0, 1, 1], [], []>} : vector<256x512xbf16>, vector<512x256xbf16>, vector<256x256xf32> -> vector<256x256xf32>
    %c0_10 = arith.constant 0 : index
    %c0_11 = arith.constant 0 : index
    %14 = vector.load %arg5[%c0_10, %c0_11] : memref<1x256xf32, #tpu.memory_space<vmem>>, vector<1x256xf32>
    %15 = vector.broadcast %14 : vector<1x256xf32> to vector<256x256xf32>
    %16 = arith.addf %13, %15 : vector<256x256xf32>
    %cst_12 = arith.constant 0.000000e+00 : f32
    %17 = vector.broadcast %cst_12 : f32 to vector<256x256xf32>
    %18 = arith.cmpf ogt, %16, %17 : vector<256x256xf32>
    %cst_13 = arith.constant 2.000000e-01 : f32
    %19 = vector.broadcast %cst_13 : f32 to vector<256x256xf32>
    %20 = arith.mulf %19, %16 : vector<256x256xf32>
    %21 = arith.select %18, %16, %20 : vector<256x256xi1>, vector<256x256xf32>
    %c0_14 = arith.constant 0 : index
    %c0_15 = arith.constant 0 : index
    %22 = vector.load %arg6[%c0_14, %c0_15] : memref<1x256xf32, #tpu.memory_space<vmem>>, vector<1x256xf32>
    %23 = vector.broadcast %22 : vector<1x256xf32> to vector<256x256xf32>
    %24 = arith.mulf %21, %23 : vector<256x256xf32>
    %cst_16 = arith.constant dense<0.000000e+00> : vector<256xf32>
    %25 = vector.multi_reduction <add>, %24, %cst_16 [1] : vector<256x256xf32> to vector<256xf32>
    %26 = vector.shape_cast %25 : vector<256xf32> to vector<1x256xf32>
    %c0_17 = arith.constant 0 : index
    %c0_18 = arith.constant 0 : index
    %27 = vector.load %arg7[%c0_17, %c0_18] : memref<1x1xf32, #tpu.memory_space<vmem>>, vector<1x1xf32>
    %28 = vector.broadcast %27 : vector<1x1xf32> to vector<1x256xf32>
    %29 = arith.addf %26, %28 : vector<1x256xf32>
    %c0_19 = arith.constant 0 : index
    %c0_20 = arith.constant 0 : index
    %30 = vector.load %arg8[%c0_19, %c0_20] : memref<1x256xf32, #tpu.memory_space<vmem>>, vector<1x256xf32>
    tpu.vector_store %arg8[%c0_19, %c0_20], %29 {strides = array<i32>} : memref<1x256xf32, #tpu.memory_space<vmem>>, vector<1x256xf32>,
    return
  }
  func.func @transform_0(%arg0: i32) -> (i32, i32) {
    %c0_i32 = arith.constant 0 : i32
    %c0_i32_0 = arith.constant 0 : i32
    return %arg0, %c0_i32 : i32, i32
  }
  func.func @transform_1(%arg0: i32) -> (i32, i32) {
    %c0_i32 = arith.constant 0 : i32
    %c0_i32_0 = arith.constant 0 : i32
    %c0_i32_1 = arith.constant 0 : i32
    return %c0_i32, %c0_i32_0 : i32, i32
  }
  func.func @transform_2(%arg0: i32) -> (i32, i32) {
    %c0_i32 = arith.constant 0 : i32
    %c0_i32_0 = arith.constant 0 : i32
    %c0_i32_1 = arith.constant 0 : i32
    return %c0_i32, %c0_i32_0 : i32, i32
  }
  func.func @transform_3(%arg0: i32) -> (i32, i32) {
    %c0_i32 = arith.constant 0 : i32
    %c0_i32_0 = arith.constant 0 : i32
    %c0_i32_1 = arith.constant 0 : i32
    return %c0_i32, %c0_i32_0 : i32, i32
  }
  func.func @transform_4(%arg0: i32) -> (i32, i32) {
    %c0_i32 = arith.constant 0 : i32
    %c0_i32_0 = arith.constant 0 : i32
    %c0_i32_1 = arith.constant 0 : i32
    return %c0_i32, %c0_i32_0 : i32, i32
  }
  func.func @transform_5(%arg0: i32) -> (i32, i32) {
    %c0_i32 = arith.constant 0 : i32
    %c0_i32_0 = arith.constant 0 : i32
    %c0_i32_1 = arith.constant 0 : i32
    return %c0_i32, %c0_i32_0 : i32, i32
  }
  func.func @transform_6(%arg0: i32) -> (i32, i32) {
    %c0_i32 = arith.constant 0 : i32
    %c0_i32_0 = arith.constant 0 : i32
    %c0_i32_1 = arith.constant 0 : i32
    return %c0_i32, %c0_i32_0 : i32, i32
  }
  func.func @transform_7(%arg0: i32) -> (i32, i32) {
    %c0_i32 = arith.constant 0 : i32
    %c0_i32_0 = arith.constant 0 : i32
    return %arg0, %c0_i32 : i32, i32
  }
}

</mosaic_0001>

<bundles_post_ra>
// kernel: critic_forward.1
= control target key start
LH: loop header
LB: loop body
LE: loop exit
PB: predicated region body
PF: predicated region fallthrough
CT: control target
= control target key end

     0   :  { %v5732_v1 = vmov 0   ;;  %s7909_s1 = inlined_call_operand.vmem [shape: bf16[128,512], index: 1, kind: input, shape index: {}]   ;;  %s7910_s0 = inlined_call_operand.vmem [shape: bf16[256,128], index: 0, kind: input, shape index: {}]   ;;  %s7911_s3 = inlined_call_operand.vmem [shape: bf16[512,256], index: 3, kind: input, shape index: {}]   ;;  %s7912_s2 = inlined_call_operand.vmem [shape: f32[1,512], index: 2, kind: input, shape index: {}]   ;;  %s7913_s6 = inlined_call_operand.<no memory space> [shape: f32[1,1], index: 6, kind: input, shape index: {}]   ;;  %s7914_s4 = inlined_call_operand.vmem [shape: f32[1,256], index: 4, kind: input, shape index: {}]   ;;  %s7915_s5 = inlined_call_operand.vmem [shape: f32[1,256], index: 5, kind: input, shape index: {}]   ;;  %s7916_s7 = inlined_call_operand.vmem [shape: f32[1,256], index: 7, kind: output, shape index: {}]  }
   0x1   :  { %v5572_v0 = vld [vmem:[%s7909_s1 + $0x4] ss:$16 sps:$4 sm:$0xff]   ;;  %403 = vmatprep.mubr.bf16.mxu0 %v5732_v1  ;;  %596 = vmatprep.mubr.bf16.mxu1 %v5732_v1  ;;  %v5574_v2 = vld [vmem:[%s7909_s1 + $0xc] ss:$16 sps:$4 sm:$0xff]   ;;  %v5576_v3 = vld [vmem:[%s7909_s1] ss:$16 sps:$4 sm:$0xff]  }
   0x2   :  { %5570 = vset.pattern.permute.xlu1 %v5732_v1  ;;  %5571 = vset.pattern.permute.xlu0 %v5732_v1  ;;  %v5577_v4 = vld [vmem:[%s7909_s1 + $0x8] ss:$16 sps:$4 sm:$0xff]   ;;  %v5578_v5 = vld [vmem:[%s7909_s1 + $0x24] ss:$16 sps:$4 sm:$0xff]   ;;  %v5580_v6 = vld [vmem:[%s7909_s1 + $0x2c] ss:$16 sps:$4 sm:$0xff]  }
   0x3   :  { %371 = vmatprep.subr.bf16.mxu0 %v5572_v0  ;;  %564 = vmatprep.subr.bf16.mxu1 %v5574_v2  ;;  %v5582_v7 = vld [vmem:[%s7909_s1 + $0x20] ss:$16 sps:$4 sm:$0xff]   ;;  %v5583_v8 = vld [vmem:[%s7909_s1 + $0x28] ss:$16 sps:$4 sm:$0xff]   ;;  %v5584_v9 = vld [vmem:[%s7909_s1 + $0x44] ss:$16 sps:$4 sm:$0xff]  }
   0x4   :  { %372 = vmatpush1.bf16.msra.mxu0 %v5576_v3  ;;  %565 = vmatpush1.bf16.msra.mxu1 %v5577_v4  ;;  %v5586_v10 = vld [vmem:[%s7909_s1 + $0x4c] ss:$16 sps:$4 sm:$0xff]   ;;  %v5588_v11 = vld [vmem:[%s7909_s1 + $0x40] ss:$16 sps:$4 sm:$0xff]   ;;  %v5589_v12 = vld [vmem:[%s7909_s1 + $0x48] ss:$16 sps:$4 sm:$0xff]  }
   0x5   :  { %373 = vmatprep.subr.bf16.mxu0 %v5578_v5  ;;  %566 = vmatprep.subr.bf16.mxu1 %v5580_v6  ;;  %v5590_v13 = vld [vmem:[%s7909_s1 + $0x64] ss:$16 sps:$4 sm:$0xff]   ;;  %v5592_v14 = vld [vmem:[%s7909_s1 + $0x6c] ss:$16 sps:$4 sm:$0xff]   ;;  %v5594_v15 = vld [vmem:[%s7909_s1 + $0x60] ss:$16 sps:$4 sm:$0xff]  }
   0x6   :  { %v5595_v16 = vld [vmem:[%s7909_s1 + $0x68] ss:$16 sps:$4 sm:$0xff]   ;;  %v5596_v17 = vld [vmem:[%s7909_s1 + $0x84] ss:$16 sps:$4 sm:$0xff]   ;;  %v5598_v18 = vld [vmem:[%s7909_s1 + $0x8c] ss:$16 sps:$4 sm:$0xff]  }
   0x7   :  { %v5600_v19 = vld [vmem:[%s7909_s1 + $0x80] ss:$16 sps:$4 sm:$0xff]   ;;  %v5601_v20 = vld [vmem:[%s7909_s1 + $0x88] ss:$16 sps:$4 sm:$0xff]   ;;  %v5602_v21 = vld [vmem:[%s7909_s1 + $0xa4] ss:$16 sps:$4 sm:$0xff]  }
   0x8   :  { %374 = vmatpush1.bf16.msra.mxu0 %v5582_v7  ;;  %567 = vmatpush1.bf16.msra.mxu1 %v5583_v8  ;;  %v5604_v22 = vld [vmem:[%s7909_s1 + $0xac] ss:$16 sps:$4 sm:$0xff]   ;;  %v5606_v23 = vld [vmem:[%s7909_s1 + $0xa0] ss:$16 sps:$4 sm:$0xff]   ;;  %v5607_v24 = vld [vmem:[%s7909_s1 + $0xa8] ss:$16 sps:$4 sm:$0xff]  }
   0x9   :  { %375 = vmatprep.subr.bf16.mxu0 %v5584_v9  ;;  %568 = vmatprep.subr.bf16.mxu1 %v5586_v10  ;;  %v5608_v25 = vld [vmem:[%s7909_s1 + $0xc4] ss:$16 sps:$4 sm:$0xff]   ;;  %v5610_v26 = vld [vmem:[%s7909_s1 + $0xcc] ss:$16 sps:$4 sm:$0xff]   ;;  %v5612_v27 = vld [vmem:[%s7909_s1 + $0xc0] ss:$16 sps:$4 sm:$0xff]  }
   0xa   :  { %v5613_v28 = vld [vmem:[%s7909_s1 + $0xc8] ss:$16 sps:$4 sm:$0xff]   ;;  %v5614_v29 = vld [vmem:[%s7909_s1 + $0xe4] ss:$16 sps:$4 sm:$0xff]   ;;  %v5616_v30 = vld [vmem:[%s7909_s1 + $0xec] ss:$16 sps:$4 sm:$0xff]  }
   0xb   :  { %v5618_v31 = vld [vmem:[%s7909_s1 + $0xe0] ss:$16 sps:$4 sm:$0xff]   ;;  %v5619_v32 = vld [vmem:[%s7909_s1 + $0xe8] ss:$16 sps:$4 sm:$0xff]   ;;  %v5634_v35 = vld [vmem:[%s7911_s3 + $0x4] ss:$8 sps:$4 sm:$0xff]  }
   0xc   :  { %376 = vmatpush1.bf16.msra.mxu0 %v5588_v11  ;;  %569 = vmatpush1.bf16.msra.mxu1 %v5589_v12  ;;  %v5620_v33 = vld [vmem:[%s7910_s0] sm:$0xff]   ;;  %v5639_v38 = vld [vmem:[%s7911_s3 + $0x10] ss:$8 sps:$4 sm:$0xff]   ;;  %v5641_v39 = vld [vmem:[%s7911_s3 + $0x14] ss:$8 sps:$4 sm:$0xff]  }
   0xd   :  { %377 = vmatprep.subr.bf16.mxu0 %v5590_v13  ;;  %570 = vmatprep.subr.bf16.mxu1 %v5592_v14  ;;  %v5632_v34 = vld [vmem:[%s7911_s3] ss:$8 sps:$4 sm:$0xff]   ;;  %v5638_v37 = vld [vmem:[%s7911_s3 + $0x104] ss:$8 sps:$4 sm:$0xff]   ;;  %v5645_v41 = vld [vmem:[%s7911_s3 + $0x114] ss:$8 sps:$4 sm:$0xff]  }
   0xe   :  { %v5636_v36 = vld [vmem:[%s7911_s3 + $0x100] ss:$8 sps:$4 sm:$0xff]   ;;  %v5643_v42 = vld [vmem:[%s7911_s3 + $0x110] ss:$8 sps:$4 sm:$0xff]   ;;  %v5648_v43 = vld [vmem:[%s7911_s3 + $0x24] ss:$8 sps:$4 sm:$0xff]  }
   0xf   :  { %v5621_v40 = vld [vmem:[%s7910_s0 + $0x8] sm:$0xff]   ;;  %v5655_v47 = vld [vmem:[%s7911_s3 + $0x34] ss:$8 sps:$4 sm:$0xff]   ;;  %v5653_v48 = vld [vmem:[%s7911_s3 + $0x30] ss:$8 sps:$4 sm:$0xff]  }
  0x10   :  { %378 = vmatpush1.bf16.msra.mxu0 %v5594_v15  ;;  %571 = vmatpush1.bf16.msra.mxu1 %v5595_v16  ;;  %v5646_v44 = vld [vmem:[%s7911_s3 + $0x20] ss:$8 sps:$4 sm:$0xff]   ;;  %v5652_v45 = vld [vmem:[%s7911_s3 + $0x124] ss:$8 sps:$4 sm:$0xff]   ;;  %v5622_v49 = vld [vmem:[%s7910_s0 + $0x10] sm:$0xff]  }
  0x11   :  { %379 = vmatprep.subr.bf16.mxu0 %v5596_v17  ;;  %572 = vmatprep.subr.bf16.mxu1 %v5598_v18  ;;  %v5650_v46 = vld [vmem:[%s7911_s3 + $0x120] ss:$8 sps:$4 sm:$0xff]   ;;  %v5659_v50 = vld [vmem:[%s7911_s3 + $0x134] ss:$8 sps:$4 sm:$0xff]   ;;  %v5657_v51 = vld [vmem:[%s7911_s3 + $0x130] ss:$8 sps:$4 sm:$0xff]  }
  0x12   :  { %v5662_v52 = vld [vmem:[%s7911_s3 + $0x44] ss:$8 sps:$4 sm:$0xff]   ;;  %v5660_v53 = vld [vmem:[%s7911_s3 + $0x40] ss:$8 sps:$4 sm:$0xff]   ;;  %v5668_v55 = vld [vmem:[%s7911_s3 + $0x54] ss:$8 sps:$4 sm:$0xff]  }
  0x13   :  { %v5665_v54 = vld [vmem:[%s7911_s3 + $0x144] ss:$8 sps:$4 sm:$0xff]   ;;  %v5663_v56 = vld [vmem:[%s7911_s3 + $0x140] ss:$8 sps:$4 sm:$0xff]   ;;  %v5666_v57 = vld [vmem:[%s7911_s3 + $0x50] ss:$8 sps:$4 sm:$0xff]  }
  0x14   :  { %380 = vmatpush1.bf16.msra.mxu0 %v5600_v19  ;;  %573 = vmatpush1.bf16.msra.mxu1 %v5601_v20  ;;  %v5671_v58 = vld [vmem:[%s7911_s3 + $0x154] ss:$8 sps:$4 sm:$0xff]   ;;  %v5669_v60 = vld [vmem:[%s7911_s3 + $0x150] ss:$8 sps:$4 sm:$0xff]   ;;  %v5674_v61 = vld [vmem:[%s7911_s3 + $0x64] ss:$8 sps:$4 sm:$0xff]  }
  0x15   :  { %381 = vmatprep.subr.bf16.mxu0 %v5602_v21  ;;  %574 = vmatprep.subr.bf16.mxu1 %v5604_v22  ;;  %v5623_v59 = vld [vmem:[%s7910_s0 + $0x18] sm:$0xff]   ;;  %v5672_v62 = vld [vmem:[%s7911_s3 + $0x60] ss:$8 sps:$4 sm:$0xff]   ;;  %v5677_v63 = vld [vmem:[%s7911_s3 + $0x164] ss:$8 sps:$4 sm:$0xff]  }
  0x16   :  { %v5680_v0 = vld [vmem:[%s7911_s3 + $0x74] ss:$8 sps:$4 sm:$0xff]   ;;  %v5675_v2 = vld [vmem:[%s7911_s3 + $0x160] ss:$8 sps:$4 sm:$0xff]   ;;  %v5678_v3 = vld [vmem:[%s7911_s3 + $0x70] ss:$8 sps:$4 sm:$0xff]  }
  0x17   :  { %v5683_v4 = vld [vmem:[%s7911_s3 + $0x174] ss:$8 sps:$4 sm:$0xff]   ;;  %v5624_v5 = vld [vmem:[%s7910_s0 + $0x20] sm:$0xff]   ;;  %v5681_v6 = vld [vmem:[%s7911_s3 + $0x170] ss:$8 sps:$4 sm:$0xff]  }
  0x18   :  { %382 = vmatpush1.bf16.msra.mxu0 %v5606_v23  ;;  %575 = vmatpush1.bf16.msra.mxu1 %v5607_v24  ;;  %v5686_v7 = vld [vmem:[%s7911_s3 + $0x84] ss:$8 sps:$4 sm:$0xff]   ;;  %v5684_v8 = vld [vmem:[%s7911_s3 + $0x80] ss:$8 sps:$4 sm:$0xff]   ;;  %v5692_v10 = vld [vmem:[%s7911_s3 + $0x94] ss:$8 sps:$4 sm:$0xff]  }
  0x19   :  { %383 = vmatprep.subr.bf16.mxu0 %v5608_v25  ;;  %576 = vmatprep.subr.bf16.mxu1 %v5610_v26  ;;  %v5689_v9 = vld [vmem:[%s7911_s3 + $0x184] ss:$8 sps:$4 sm:$0xff]   ;;  %v5687_v11 = vld [vmem:[%s7911_s3 + $0x180] ss:$8 sps:$4 sm:$0xff]   ;;  %v5690_v12 = vld [vmem:[%s7911_s3 + $0x90] ss:$8 sps:$4 sm:$0xff]  }
  0x1a   :  { %v5695_v13 = vld [vmem:[%s7911_s3 + $0x194] ss:$8 sps:$4 sm:$0xff]   ;;  %v5625_v14 = vld [vmem:[%s7910_s0 + $0x28] sm:$0xff]   ;;  %v5693_v15 = vld [vmem:[%s7911_s3 + $0x190] ss:$8 sps:$4 sm:$0xff]  }
  0x1b   :  { %v5698_v16 = vld [vmem:[%s7911_s3 + $0xa4] ss:$8 sps:$4 sm:$0xff]   ;;  %v5696_v17 = vld [vmem:[%s7911_s3 + $0xa0] ss:$8 sps:$4 sm:$0xff]   ;;  %v5704_v19 = vld [vmem:[%s7911_s3 + $0xb4] ss:$8 sps:$4 sm:$0xff]  }
  0x1c   :  { %384 = vmatpush1.bf16.msra.mxu0 %v5612_v27  ;;  %577 = vmatpush1.bf16.msra.mxu1 %v5613_v28  ;;  %v5701_v18 = vld [vmem:[%s7911_s3 + $0x1a4] ss:$8 sps:$4 sm:$0xff]   ;;  %v5699_v20 = vld [vmem:[%s7911_s3 + $0x1a0] ss:$8 sps:$4 sm:$0xff]   ;;  %v5702_v21 = vld [vmem:[%s7911_s3 + $0xb0] ss:$8 sps:$4 sm:$0xff]  }
  0x1d   :  { %385 = vmatprep.subr.bf16.mxu0 %v5614_v29  ;;  %578 = vmatprep.subr.bf16.mxu1 %v5616_v30  ;;  %v5707_v22 = vld [vmem:[%s7911_s3 + $0x1b4] ss:$8 sps:$4 sm:$0xff]   ;;  %v5705_v24 = vld [vmem:[%s7911_s3 + $0x1b0] ss:$8 sps:$4 sm:$0xff]   ;;  %v5710_v25 = vld [vmem:[%s7911_s3 + $0xc4] ss:$8 sps:$4 sm:$0xff]  }
  0x1e   :  { %v5626_v23 = vld [vmem:[%s7910_s0 + $0x30] sm:$0xff]   ;;  %v5708_v26 = vld [vmem:[%s7911_s3 + $0xc0] ss:$8 sps:$4 sm:$0xff]   ;;  %v5713_v27 = vld [vmem:[%s7911_s3 + $0x1c4] ss:$8 sps:$4 sm:$0xff]  }
  0x1f   :  { %v5716_v28 = vld [vmem:[%s7911_s3 + $0xd4] ss:$8 sps:$4 sm:$0xff]   ;;  %v5711_v29 = vld [vmem:[%s7911_s3 + $0x1c0] ss:$8 sps:$4 sm:$0xff]   ;;  %v5714_v30 = vld [vmem:[%s7911_s3 + $0xd0] ss:$8 sps:$4 sm:$0xff]  }
  0x20   :  { %386 = vmatpush1.bf16.msra.mxu0 %v5618_v31  ;;  %579 = vmatpush1.bf16.msra.mxu1 %v5619_v32  ;;  %v5719_v31 = vld [vmem:[%s7911_s3 + $0x1d4] ss:$8 sps:$4 sm:$0xff]  }
  0x21   :  { %1601 = vmatprep.subr.bf16.mxu1 %v5634_v35  ;;  %1794 = vmatprep.subr.bf16.mxu0 %v5638_v37  ;;  %v5627_v32 = vld [vmem:[%s7910_s0 + $0x38] sm:$0xff]   ;;  %v5720_v35 = vld [vmem:[%s7911_s3 + $0xe0] ss:$8 sps:$4 sm:$0xff]  }
  0x22   :  { %v5723_v37 = vld [vmem:[%s7911_s3 + $0x1e0] ss:$8 sps:$4 sm:$0xff]  }
  0x23   :  { %404 = vmatmul.mubr.bf16.vlgmr.msra.gmra.mrb[0].mxu0 %v5620_v33  ;;  %597 = vmatmul.mubr.bf16.vlgmr.msra.gmra.mrb[0].mxu1 %v5620_v33  ;;  %v5717_v33 = vld [vmem:[%s7911_s3 + $0x1d0] ss:$8 sps:$4 sm:$0xff]  }
  0x24   :  { %413 = vmatprep.mubr.bf16.mxu0 %v5732_v1  ;;  %606 = vmatprep.mubr.bf16.mxu1 %v5732_v1 }
  0x25   :  { %1602 = vmatpush1.bf16.msra.mxu1 %v5632_v34  ;;  %1795 = vmatpush1.bf16.msra.mxu0 %v5636_v36  ;;  %v5722_v34 = vld [vmem:[%s7911_s3 + $0xe4] ss:$8 sps:$4 sm:$0xff]  }
  0x26   :  { %1603 = vmatprep.subr.bf16.mxu1 %v5641_v39  ;;  %1796 = vmatprep.subr.bf16.mxu0 %v5645_v41  ;;  %v5725_v36 = vld [vmem:[%s7911_s3 + $0x1e4] ss:$8 sps:$4 sm:$0xff]   ;;  %v5631_v41 = vld [vmem:[%s7910_s0 + $0x58] sm:$0xff]  }
  0x27   :  { %v5629_v39 = vld [vmem:[%s7910_s0 + $0x48] sm:$0xff]  }
  0x29   :  { %1604 = vmatpush1.bf16.msra.mxu1 %v5639_v38  ;;  %1797 = vmatpush1.bf16.msra.mxu0 %v5643_v42  ;;  %v5628_v38 = vld [vmem:[%s7910_s0 + $0x40] sm:$0xff]   ;;  %v5728_v42 = vld [vmem:[%s7911_s3 + $0xf4] ss:$8 sps:$4 sm:$0xff]  }
  0x2a   :  { %1605 = vmatprep.subr.bf16.mxu1 %v5648_v43  ;;  %1798 = vmatprep.subr.bf16.mxu0 %v5652_v45  ;;  %v5731_v43 = vld [vmem:[%s7911_s3 + $0x1f4] ss:$8 sps:$4 sm:$0xff]   ;;  %v5726_v45 = vld [vmem:[%s7911_s3 + $0xf0] ss:$8 sps:$4 sm:$0xff]  }
  0x2b   :  { %414 = vmatmul.mubr.bf16.gmra.mrb[4].mxu0 %v5621_v40  ;;  %607 = vmatmul.mubr.bf16.gmra.mrb[4].mxu1 %v5621_v40  ;;  %v5630_v40 = vld [vmem:[%s7910_s0 + $0x50] sm:$0xff]  }
  0x2c   :  { %423 = vmatprep.mubr.bf16.mxu0 %v5732_v1  ;;  %616 = vmatprep.mubr.bf16.mxu1 %v5732_v1 }
  0x2d   :  { %1606 = vmatpush1.bf16.msra.mxu1 %v5646_v44  ;;  %1799 = vmatpush1.bf16.msra.mxu0 %v5650_v46  ;;  %v5635_v44 = vld [vmem:[%s7910_s0 + $0x60] sm:$0xff]   ;;  %v5729_v46 = vld [vmem:[%s7911_s3 + $0x1f0] ss:$8 sps:$4 sm:$0xff]  }
  0x2e   :  { %1607 = vmatprep.subr.bf16.mxu1 %v5655_v47  ;;  %1800 = vmatprep.subr.bf16.mxu0 %v5659_v50  ;;  %v5642_v47 = vld [vmem:[%s7910_s0 + $0x68] sm:$0xff]   ;;  %v95_v50 = vlaneseq }
  0x31   :  { %1608 = vmatpush1.bf16.msra.mxu1 %v5653_v48  ;;  %1801 = vmatpush1.bf16.msra.mxu0 %v5657_v51  ;;  %v5649_v48 = vld [vmem:[%s7910_s0 + $0x70] sm:$0xff]   ;;  %v6145_v51 = vshrl.u32 %v95_v50, 7 }
  0x32   :  { %1609 = vmatprep.subr.bf16.mxu1 %v5662_v52  ;;  %1802 = vmatprep.subr.bf16.mxu0 %v5665_v54 }
  0x33   :  { %424 = vmatmul.mubr.bf16.gmra.mrb[8].mxu0 %v5622_v49  ;;  %617 = vmatmul.mubr.bf16.gmra.mrb[8].mxu1 %v5622_v49  ;;  %v5656_v49 = vld [vmem:[%s7910_s0 + $0x78] sm:$0xff]   ;;  %v6148_v52 = vsub.s32 0, %v6145_v51  ;;  %v6157_v54 = vsub.s32 1, %v6145_v51 }
  0x34   :  { %433 = vmatprep.mubr.bf16.mxu0 %v5732_v1  ;;  %626 = vmatprep.mubr.bf16.mxu1 %v5732_v1 }
  0x35   :  { %1610 = vmatpush1.bf16.msra.mxu1 %v5660_v53  ;;  %1803 = vmatpush1.bf16.msra.mxu0 %v5663_v56  ;;  %v6151_v53 = vsub.s32 2, %v6145_v51 }
  0x36   :  { %1611 = vmatprep.subr.bf16.mxu1 %v5668_v55  ;;  %1804 = vmatprep.subr.bf16.mxu0 %v5671_v58  ;;  %v6160_v55 = vsub.s32 3, %v6145_v51 }
  0x39   :  { %1612 = vmatpush1.bf16.msra.mxu1 %v5666_v57  ;;  %1805 = vmatpush1.bf16.msra.mxu0 %v5669_v60 }
  0x3a   :  { %1613 = vmatprep.subr.bf16.mxu1 %v5674_v61  ;;  %1806 = vmatprep.subr.bf16.mxu0 %v5677_v63 }
  0x3b   :  { %434 = vmatmul.mubr.bf16.gmra.mrb[12].mxu0 %v5623_v59  ;;  %627 = vmatmul.mubr.bf16.gmra.mrb[12].mxu1 %v5623_v59 }
  0x3c   :  { %443 = vmatprep.mubr.bf16.mxu0 %v5732_v1  ;;  %636 = vmatprep.mubr.bf16.mxu1 %v5732_v1 }
  0x3d   :  { %1614 = vmatpush1.bf16.msra.mxu1 %v5672_v62  ;;  %1807 = vmatpush1.bf16.msra.mxu0 %v5675_v2 }
  0x3e   :  { %1615 = vmatprep.subr.bf16.mxu1 %v5680_v0  ;;  %1808 = vmatprep.subr.bf16.mxu0 %v5683_v4 }
  0x41   :  { %1616 = vmatpush1.bf16.msra.mxu1 %v5678_v3  ;;  %1809 = vmatpush1.bf16.msra.mxu0 %v5681_v6 }
  0x42   :  { %1617 = vmatprep.subr.bf16.mxu1 %v5686_v7  ;;  %1810 = vmatprep.subr.bf16.mxu0 %v5689_v9 }
  0x43   :  { %444 = vmatmul.mubr.bf16.gmra.mrb[16].mxu0 %v5624_v5  ;;  %637 = vmatmul.mubr.bf16.gmra.mrb[16].mxu1 %v5624_v5 }
  0x44   :  { %453 = vmatprep.mubr.bf16.mxu0 %v5732_v1  ;;  %646 = vmatprep.mubr.bf16.mxu1 %v5732_v1 }
  0x45   :  { %1618 = vmatpush1.bf16.msra.mxu1 %v5684_v8  ;;  %1811 = vmatpush1.bf16.msra.mxu0 %v5687_v11 }
  0x46   :  { %1619 = vmatprep.subr.bf16.mxu1 %v5692_v10  ;;  %1812 = vmatprep.subr.bf16.mxu0 %v5695_v13 }
  0x49   :  { %1620 = vmatpush1.bf16.msra.mxu1 %v5690_v12  ;;  %1813 = vmatpush1.bf16.msra.mxu0 %v5693_v15 }
  0x4a   :  { %1621 = vmatprep.subr.bf16.mxu1 %v5698_v16  ;;  %1814 = vmatprep.subr.bf16.mxu0 %v5701_v18 }
  0x4b   :  { %454 = vmatmul.mubr.bf16.gmra.mrb[20].mxu0 %v5625_v14  ;;  %647 = vmatmul.mubr.bf16.gmra.mrb[20].mxu1 %v5625_v14 }
  0x4c   :  { %463 = vmatprep.mubr.bf16.mxu0 %v5732_v1  ;;  %656 = vmatprep.mubr.bf16.mxu1 %v5732_v1 }
  0x4d   :  { %1622 = vmatpush1.bf16.msra.mxu1 %v5696_v17  ;;  %1815 = vmatpush1.bf16.msra.mxu0 %v5699_v20 }
  0x4e   :  { %1623 = vmatprep.subr.bf16.mxu1 %v5704_v19  ;;  %1816 = vmatprep.subr.bf16.mxu0 %v5707_v22 }
  0x51   :  { %1624 = vmatpush1.bf16.msra.mxu1 %v5702_v21  ;;  %1817 = vmatpush1.bf16.msra.mxu0 %v5705_v24 }
  0x52   :  { %1625 = vmatprep.subr.bf16.mxu1 %v5710_v25  ;;  %1818 = vmatprep.subr.bf16.mxu0 %v5713_v27 }
  0x53   :  { %464 = vmatmul.mubr.bf16.gmra.mrb[24].mxu0 %v5626_v23  ;;  %657 = vmatmul.mubr.bf16.gmra.mrb[24].mxu1 %v5626_v23 }
  0x54   :  { %473 = vmatprep.mubr.bf16.mxu0 %v5732_v1  ;;  %666 = vmatprep.mubr.bf16.mxu1 %v5732_v1 }
  0x55   :  { %1626 = vmatpush1.bf16.msra.mxu1 %v5708_v26  ;;  %1819 = vmatpush1.bf16.msra.mxu0 %v5711_v29 }
  0x56   :  { %1627 = vmatprep.subr.bf16.mxu1 %v5716_v28  ;;  %1820 = vmatprep.subr.bf16.mxu0 %v5719_v31 }
  0x59   :  { %1628 = vmatpush1.bf16.msra.mxu1 %v5714_v30  ;;  %1821 = vmatpush1.bf16.msra.mxu0 %v5717_v33 }
  0x5a   :  { %1629 = vmatprep.subr.bf16.mxu1 %v5722_v34  ;;  %1822 = vmatprep.subr.bf16.mxu0 %v5725_v36 }
  0x5b   :  { %474 = vmatmul.mubr.bf16.gmra.mrb[28].mxu0 %v5627_v32  ;;  %667 = vmatmul.mubr.bf16.gmra.mrb[28].mxu1 %v5627_v32 }
  0x5c   :  { %483 = vmatprep.mubr.bf16.mxu0 %v5732_v1  ;;  %676 = vmatprep.mubr.bf16.mxu1 %v5732_v1 }
  0x5d   :  { %1630 = vmatpush1.bf16.msra.mxu1 %v5720_v35  ;;  %1823 = vmatpush1.bf16.msra.mxu0 %v5723_v37 }
  0x5e   :  { %1631 = vmatprep.subr.bf16.mxu1 %v5728_v42  ;;  %1824 = vmatprep.subr.bf16.mxu0 %v5731_v43 }
  0x61   :  { %1632 = vmatpush1.bf16.msra.mxu1 %v5726_v45  ;;  %1825 = vmatpush1.bf16.msra.mxu0 %v5729_v46 }
  0x63   :  { %484 = vmatmul.mubr.bf16.gmra.mrb[32].mxu0 %v5628_v38  ;;  %677 = vmatmul.mubr.bf16.gmra.mrb[32].mxu1 %v5628_v38 }
  0x64   :  { %493 = vmatprep.mubr.bf16.mxu0 %v5732_v1  ;;  %686 = vmatprep.mubr.bf16.mxu1 %v5732_v1 }
  0x6b   :  { %494 = vmatmul.mubr.bf16.gmra.mrb[36].mxu0 %v5629_v39  ;;  %687 = vmatmul.mubr.bf16.gmra.mrb[36].mxu1 %v5629_v39 }
  0x6c   :  { %503 = vmatprep.mubr.bf16.mxu0 %v5732_v1  ;;  %696 = vmatprep.mubr.bf16.mxu1 %v5732_v1 }
  0x73   :  { %504 = vmatmul.mubr.bf16.gmra.mrb[40].mxu0 %v5630_v40  ;;  %697 = vmatmul.mubr.bf16.gmra.mrb[40].mxu1 %v5630_v40 }
  0x74   :  { %513 = vmatprep.mubr.bf16.mxu0 %v5732_v1  ;;  %706 = vmatprep.mubr.bf16.mxu1 %v5732_v1 }
  0x7b   :  { %514 = vmatmul.mubr.bf16.gmra.mrb[44].mxu0 %v5631_v41  ;;  %707 = vmatmul.mubr.bf16.gmra.mrb[44].mxu1 %v5631_v41 }
  0x7c   :  { %523 = vmatprep.mubr.bf16.mxu0 %v5732_v1  ;;  %716 = vmatprep.mubr.bf16.mxu1 %v5732_v1 }
  0x83   :  { %524 = vmatmul.mubr.bf16.gmra.mrb[48].mxu0 %v5635_v44  ;;  %717 = vmatmul.mubr.bf16.gmra.mrb[48].mxu1 %v5635_v44 }
  0x84   :  { %533 = vmatprep.mubr.bf16.mxu0 %v5732_v1  ;;  %726 = vmatprep.mubr.bf16.mxu1 %v5732_v1 }
  0x8b   :  { %534 = vmatmul.mubr.bf16.gmra.mrb[52].mxu0 %v5642_v47  ;;  %727 = vmatmul.mubr.bf16.gmra.mrb[52].mxu1 %v5642_v47 }
  0x8c   :  { %543 = vmatprep.mubr.bf16.mxu0 %v5732_v1  ;;  %736 = vmatprep.mubr.bf16.mxu1 %v5732_v1 }
  0x93   :  { %544 = vmatmul.mubr.bf16.gmra.mrb[56].mxu0 %v5649_v48  ;;  %737 = vmatmul.mubr.bf16.gmra.mrb[56].mxu1 %v5649_v48 }
  0x94   :  { %553 = vmatprep.mubr.bf16.mxu0 %v5732_v1  ;;  %746 = vmatprep.mubr.bf16.mxu1 %v5732_v1  ;;  %v93_v1 = vld [vmem:[%s7912_s2] sm:$0xf] }
  0x95   :  { %v6163_v56 = vrot.slane %v93_v1, %v6148_v52  ;;  %v6166_v57 = vrot.slane %v93_v1, %v6151_v53  ;;  %v6169_v58 = vrot.slane %v93_v1, %v6157_v54  ;;  %v6172_v59 = vrot.slane %v93_v1, %v6160_v55 }
  0x9b   :  { %554 = vmatmul.mubr.bf16.gmra.mrb[60].mxu0 %v5656_v49  ;;  %747 = vmatmul.mubr.bf16.gmra.mrb[60].mxu1 %v5656_v49 }
  0xf6   :  { %v405_v60 = vpop.f32.mrb[0].mxu0  ;;  %v598_v61 = vpop.f32.mrb[0].mxu1 }
  0xf7   :  { %v406_v62 = vadd.f32 %v405_v60, %v6163_v56  ;;  %v599_v63 = vadd.f32 %v598_v61, %v6166_v57  ;;  %v407_v0 = vpop.f32.mrb[1].mxu0  ;;  %v600_v2 = vpop.f32.mrb[1].mxu1 }
  0xf8   :  { %v408_v3 = vadd.f32 %v407_v0, %v6169_v58  ;;  %v601_v4 = vadd.f32 %v600_v2, %v6172_v59  ;;  %v409_v5 = vpop.f32.mrb[2].mxu0  ;;  %v602_v6 = vpop.f32.mrb[2].mxu1 }
  0xf9   :  { %vm757_vm0 = vcmp.gt.f32.partialorder %v406_v62, 0.0  ;;  %v885_v7 = vmul.f32 0.2, %v406_v62  ;;  %vm759_vm1 = vcmp.gt.f32.partialorder %v599_v63, 0.0  ;;  %v887_v8 = vmul.f32 0.2, %v599_v63 }
  0xfa   :  { %vm758_vm2 = vcmp.gt.f32.partialorder %v408_v3, 0.0  ;;  %v886_v9 = vmul.f32 0.2, %v408_v3  ;;  %v410_v10 = vadd.f32 %v409_v5, %v6163_v56  ;;  %v603_v11 = vadd.f32 %v602_v6, %v6166_v57  ;;  %v411_v12 = vpop.f32.mrb[3].mxu0  ;;  %v604_v13 = vpop.f32.mrb[3].mxu1 }
  0xfb   :  { %vm760_vm3 = vcmp.gt.f32.partialorder %v601_v4, 0.0  ;;  %v888_v14 = vmul.f32 0.2, %v601_v4  ;;  %v412_v15 = vadd.f32 %v411_v12, %v6169_v58  ;;  %v605_v16 = vadd.f32 %v604_v13, %v6172_v59 }
  0xfc   :  { %vm761_vm4 = vcmp.gt.f32.partialorder %v410_v10, 0.0  ;;  %v889_v17 = vmul.f32 0.2, %v410_v10  ;;  %vm763_vm5 = vcmp.gt.f32.partialorder %v603_v11, 0.0  ;;  %v891_v18 = vmul.f32 0.2, %v603_v11 }
  0xfd   :  { %vm762_vm6 = vcmp.gt.f32.partialorder %v412_v15, 0.0  ;;  %v890_v19 = vmul.f32 0.2, %v412_v15  ;;  %vm764_vm7 = vcmp.gt.f32.partialorder %v605_v16, 0.0  ;;  %v892_v20 = vmul.f32 0.2, %v605_v16 }
  0xfe   :  { %v1013_v21 = vsel %vm757_vm0, %v406_v62, %v885_v7  ;;  %v1015_v22 = vsel %vm759_vm1, %v599_v63, %v887_v8  ;;  %v1017_v23 = vsel %vm761_vm4, %v410_v10, %v889_v17  ;;  %v1019_v24 = vsel %vm763_vm5, %v603_v11, %v891_v18  ;;  %v415_v25 = vpop.f32.mrb[4].mxu0  ;;  %v608_v26 = vpop.f32.mrb[4].mxu1 }
  0xff   :  { %v1141_v27 = vpack.c.bf16 %v1017_v23, %v1013_v21  ;;  %v1143_v28 = vpack.c.bf16 %v1019_v24, %v1015_v22  ;;  %v416_v29 = vadd.f32 %v415_v25, %v6163_v56  ;;  %v417_v30 = vpop.f32.mrb[5].mxu0  ;;  %v610_v31 = vpop.f32.mrb[5].mxu1  ;;  %v1018_v36 = vsel %vm762_vm6, %v412_v15, %v890_v19 }
 0x100   :  { %v418_v32 = vadd.f32 %v417_v30, %v6169_v58  ;;  %v611_v33 = vadd.f32 %v610_v31, %v6172_v59  ;;  %v419_v34 = vpop.f32.mrb[6].mxu0  ;;  %v612_v35 = vpop.f32.mrb[6].mxu1  ;;  %v1020_v37 = vsel %vm764_vm7, %v605_v16, %v892_v20  ;;  %v1014_v38 = vsel %vm758_vm2, %v408_v3, %v886_v9 }
 0x101   :  { %v1016_v39 = vsel %vm760_vm3, %v601_v4, %v888_v14  ;;  %v893_v40 = vmul.f32 0.2, %v416_v29  ;;  %v609_v41 = vadd.f32 %v608_v26, %v6166_v57  ;;  %v420_v43 = vadd.f32 %v419_v34, %v6163_v56  ;;  %v421_v45 = vpop.f32.mrb[7].mxu0  ;;  %v614_v46 = vpop.f32.mrb[7].mxu1 }
 0x102   :  { %vm766_vm8 = vcmp.gt.f32.partialorder %v418_v32, 0.0  ;;  %v894_v42 = vmul.f32 0.2, %v418_v32  ;;  %v613_v44 = vadd.f32 %v612_v35, %v6166_v57  ;;  %v1142_v47 = vpack.c.bf16 %v1018_v36, %v1014_v38 }
 0x103   :  { %v1144_v48 = vpack.c.bf16 %v1020_v37, %v1016_v39  ;;  %vm768_vm9 = vcmp.gt.f32.partialorder %v611_v33, 0.0  ;;  %v896_v49 = vmul.f32 0.2, %v611_v33  ;;  %v422_v1 = vadd.f32 %v421_v45, %v6169_v58 }
 0x104   :  { %v615_v60 = vadd.f32 %v614_v46, %v6172_v59  ;;  %vm769_vm10 = vcmp.gt.f32.partialorder %v420_v43, 0.0  ;;  %v897_v61 = vmul.f32 0.2, %v420_v43  ;;  %vm771_vm11 = vcmp.gt.f32.partialorder %v613_v44, 0.0  ;;  %1633 = vmatprep.mubr.bf16.mxu1 %v1142_v47 }
 0x105   :  { %v899_v62 = vmul.f32 0.2, %v613_v44  ;;  %1826 = vmatprep.mubr.bf16.mxu0 %v1144_v48  ;;  %vm770_vm12 = vcmp.gt.f32.partialorder %v422_v1, 0.0  ;;  %v898_v63 = vmul.f32 0.2, %v422_v1  ;;  %1634 = vmatmul.mubr.bf16.vlgmr.msra.gmra.mrb[64].mxu1 %v1141_v27  ;;  %vm765_vm14 = vcmp.gt.f32.partialorder %v416_v29, 0.0 }
 0x106   :  { %vm772_vm13 = vcmp.gt.f32.partialorder %v615_v60, 0.0  ;;  %v900_v0 = vmul.f32 0.2, %v615_v60  ;;  %1827 = vmatmul.mubr.bf16.vlgmr.msra.gmra.mrb[64].mxu0 %v1143_v28  ;;  %vm767_vm15 = vcmp.gt.f32.partialorder %v609_v41, 0.0  ;;  %v895_v2 = vmul.f32 0.2, %v609_v41 }
 0x107   :  { %v425_v3 = vpop.f32.mrb[8].mxu0  ;;  %v618_v4 = vpop.f32.mrb[8].mxu1  ;;  %v1022_v5 = vsel %vm766_vm8, %v418_v32, %v894_v42  ;;  %v1026_v8 = vsel %vm770_vm12, %v422_v1, %v898_v63  ;;  %v1024_v9 = vsel %vm768_vm9, %v611_v33, %v896_v49  ;;  %v1025_v11 = vsel %vm769_vm10, %v420_v43, %v897_v61 }
 0x108   :  { %v427_v6 = vpop.f32.mrb[9].mxu0  ;;  %v620_v7 = vpop.f32.mrb[9].mxu1  ;;  %v1028_v10 = vsel %vm772_vm13, %v615_v60, %v900_v0  ;;  %v1146_v15 = vpack.c.bf16 %v1026_v8, %v1022_v5  ;;  %v1027_v17 = vsel %vm771_vm11, %v613_v44, %v899_v62  ;;  %v1021_v19 = vsel %vm765_vm14, %v416_v29, %v893_v40 }
 0x109   :  { %v428_v12 = vadd.f32 %v427_v6, %v6169_v58  ;;  %v429_v13 = vpop.f32.mrb[10].mxu0  ;;  %v622_v14 = vpop.f32.mrb[10].mxu1  ;;  %v1148_v16 = vpack.c.bf16 %v1028_v10, %v1024_v9  ;;  %v621_v18 = vadd.f32 %v620_v7, %v6172_v59  ;;  %v1023_v20 = vsel %vm767_vm15, %v609_v41, %v895_v2 }
 0x10a   :  { %1643 = vmatprep.mubr.bf16.mxu1 %v1146_v15  ;;  %v426_v21 = vadd.f32 %v425_v3, %v6163_v56  ;;  %v430_v22 = vadd.f32 %v429_v13, %v6163_v56  ;;  %v431_v23 = vpop.f32.mrb[11].mxu0  ;;  %v624_v24 = vpop.f32.mrb[11].mxu1  ;;  %v1145_v25 = vpack.c.bf16 %v1025_v11, %v1021_v19  ;;  %v1147_v26 = vpack.c.bf16 %v1027_v17, %v1023_v20 }
 0x10b   :  { %1836 = vmatprep.mubr.bf16.mxu0 %v1148_v16  ;;  %v902_v27 = vmul.f32 0.2, %v428_v12  ;;  %v432_v28 = vadd.f32 %v431_v23, %v6169_v58  ;;  %v625_v30 = vadd.f32 %v624_v24, %v6172_v59  ;;  %v619_v33 = vadd.f32 %v618_v4, %v6166_v57 }
 0x10c   :  { %v904_v29 = vmul.f32 0.2, %v621_v18  ;;  %vm777_vm0 = vcmp.gt.f32.partialorder %v430_v22, 0.0  ;;  %v905_v34 = vmul.f32 0.2, %v430_v22  ;;  %vm774_vm3 = vcmp.gt.f32.partialorder %v428_v12, 0.0 }
 0x10d   :  { %1644 = vmatmul.mubr.bf16.gmra.mrb[68].mxu1 %v1145_v25  ;;  %vm778_vm1 = vcmp.gt.f32.partialorder %v432_v28, 0.0  ;;  %v906_v35 = vmul.f32 0.2, %v432_v28  ;;  %vm780_vm2 = vcmp.gt.f32.partialorder %v625_v30, 0.0  ;;  %v908_v36 = vmul.f32 0.2, %v625_v30 }
 0x10e   :  { %v435_v31 = vpop.f32.mrb[12].mxu0  ;;  %v628_v32 = vpop.f32.mrb[12].mxu1  ;;  %1837 = vmatmul.mubr.bf16.gmra.mrb[68].mxu0 %v1147_v26  ;;  %v901_v37 = vmul.f32 0.2, %v426_v21  ;;  %vm776_vm4 = vcmp.gt.f32.partialorder %v621_v18, 0.0  ;;  %v623_v38 = vadd.f32 %v622_v14, %v6166_v57  ;;  %vm773_vm5 = vcmp.gt.f32.partialorder %v426_v21, 0.0 }
 0x10f   :  { %v437_v39 = vpop.f32.mrb[13].mxu0  ;;  %v630_v40 = vpop.f32.mrb[13].mxu1  ;;  %v1034_v43 = vsel %vm778_vm1, %v432_v28, %v906_v35  ;;  %v1036_v44 = vsel %vm780_vm2, %v625_v30, %v908_v36  ;;  %vm775_vm6 = vcmp.gt.f32.partialorder %v619_v33, 0.0  ;;  %v6211_v45 = vadd.f32 %v435_v31, %v6163_v56 }
 0x110   :  { %v439_v41 = vpop.f32.mrb[14].mxu0  ;;  %v632_v42 = vpop.f32.mrb[14].mxu1  ;;  %v6214_v46 = vadd.f32 %v628_v32, %v6166_v57  ;;  %v1033_v47 = vsel %vm777_vm0, %v430_v22, %v905_v34  ;;  %v903_v48 = vmul.f32 0.2, %v619_v33  ;;  %v438_v49 = vadd.f32 %v437_v39, %v6169_v58 }
 0x111   :  { %v1030_v1 = vsel %vm774_vm3, %v428_v12, %v902_v27  ;;  %v1032_v60 = vsel %vm776_vm4, %v621_v18, %v904_v29  ;;  %v907_v61 = vmul.f32 0.2, %v623_v38  ;;  %v441_v62 = vpop.f32.mrb[15].mxu0  ;;  %v634_v63 = vpop.f32.mrb[15].mxu1  ;;  %v1029_v3 = vsel %vm773_vm5, %v426_v21, %v901_v37 }
 0x112   :  { %v1150_v0 = vpack.c.bf16 %v1034_v43, %v1030_v1  ;;  %v1152_v2 = vpack.c.bf16 %v1036_v44, %v1032_v60  ;;  %vm779_vm7 = vcmp.gt.f32.partialorder %v623_v38, 0.0  ;;  %v442_v4 = vadd.f32 %v441_v62, %v6169_v58 }
 0x113   :  { %v635_v5 = vadd.f32 %v634_v63, %v6172_v59  ;;  %v1149_v6 = vpack.c.bf16 %v1033_v47, %v1029_v3  ;;  %vm781_vm8 = vcmp.gt.f32.partialorder %v6211_v45, 0.0  ;;  %v909_v9 = vmul.f32 0.2, %v6211_v45 }
 0x114   :  { %vm783_vm9 = vcmp.gt.f32.partialorder %v6214_v46, 0.0  ;;  %v631_v10 = vadd.f32 %v630_v40, %v6172_v59  ;;  %1653 = vmatprep.mubr.bf16.mxu1 %v1150_v0  ;;  %1846 = vmatprep.mubr.bf16.mxu0 %v1152_v2  ;;  %v910_v11 = vmul.f32 0.2, %v438_v49  ;;  %v440_v12 = vadd.f32 %v439_v41, %v6163_v56 }
 0x115   :  { %vm786_vm10 = vcmp.gt.f32.partialorder %v442_v4, 0.0  ;;  %v914_v13 = vmul.f32 0.2, %v442_v4  ;;  %1654 = vmatmul.mubr.bf16.gmra.mrb[72].mxu1 %v1149_v6  ;;  %vm782_vm11 = vcmp.gt.f32.partialorder %v438_v49, 0.0  ;;  %v633_v14 = vadd.f32 %v632_v42, %v6166_v57 }
 0x116   :  { %v445_v7 = vpop.f32.mrb[16].mxu0  ;;  %v638_v8 = vpop.f32.mrb[16].mxu1  ;;  %v1031_v15 = vsel %vm775_vm6, %v619_v33, %v903_v48  ;;  %v1035_v16 = vsel %vm779_vm7, %v623_v38, %v907_v61  ;;  %v916_v19 = vmul.f32 0.2, %v635_v5  ;;  %v911_v25 = vmul.f32 0.2, %v6214_v46 }
 0x117   :  { %v447_v17 = vpop.f32.mrb[17].mxu0  ;;  %v640_v18 = vpop.f32.mrb[17].mxu1  ;;  %v1151_v20 = vpack.c.bf16 %v1035_v16, %v1031_v15  ;;  %v6232_v21 = vadd.f32 %v445_v7, %v6163_v56  ;;  %v1042_v24 = vsel %vm786_vm10, %v442_v4, %v914_v13  ;;  %vm788_vm12 = vcmp.gt.f32.partialorder %v635_v5, 0.0 }
 0x118   :  { %v449_v22 = vpop.f32.mrb[18].mxu0  ;;  %v642_v23 = vpop.f32.mrb[18].mxu1  ;;  %v6236_v26 = vadd.f32 %v638_v8, %v6166_v57  ;;  %v6239_v27 = vadd.f32 %v447_v17, %v6169_v58  ;;  %vm784_vm13 = vcmp.gt.f32.partialorder %v631_v10, 0.0  ;;  %v912_v28 = vmul.f32 0.2, %v631_v10 }
 0x119   :  { %v913_v30 = vmul.f32 0.2, %v440_v12  ;;  %1847 = vmatmul.mubr.bf16.gmra.mrb[72].mxu0 %v1151_v20  ;;  %v1038_v31 = vsel %vm782_vm11, %v438_v49, %v910_v11  ;;  %vm785_vm14 = vcmp.gt.f32.partialorder %v440_v12, 0.0  ;;  %vm787_vm15 = vcmp.gt.f32.partialorder %v633_v14, 0.0  ;;  %v451_v33 = vpop.f32.mrb[19].mxu0  ;;  %v644_v29 = vpop.f32.mrb[19].mxu1 }
 0x11a   :  { %v915_v32 = vmul.f32 0.2, %v633_v14  ;;  %v1154_v34 = vpack.c.bf16 %v1042_v24, %v1038_v31  ;;  %vm789_vm0 = vcmp.gt.f32.partialorder %v6232_v21, 0.0  ;;  %v6244_v35 = vmul.f32 0.2, %v6232_v21 }
 0x11b   :  { %v641_v36 = vadd.f32 %v640_v18, %v6172_v59  ;;  %v1044_v37 = vsel %vm788_vm12, %v635_v5, %v916_v19  ;;  %vm791_vm1 = vcmp.gt.f32.partialorder %v6236_v26, 0.0  ;;  %v919_v40 = vmul.f32 0.2, %v6236_v26 }
 0x11c   :  { %vm790_vm2 = vcmp.gt.f32.partialorder %v6239_v27, 0.0  ;;  %v450_v41 = vadd.f32 %v449_v22, %v6163_v56  ;;  %v452_v42 = vadd.f32 %v451_v33, %v6169_v58  ;;  %1663 = vmatprep.mubr.bf16.mxu1 %v1154_v34  ;;  %v643_v43 = vadd.f32 %v642_v23, %v6166_v57 }
 0x11d   :  { %v645_v44 = vadd.f32 %v644_v29, %v6172_v59  ;;  %v1040_v47 = vsel %vm784_vm13, %v631_v10, %v912_v28  ;;  %v1037_v48 = vsel %vm781_vm8, %v6211_v45, %v909_v9  ;;  %v1041_v1 = vsel %vm785_vm14, %v440_v12, %v913_v30 }
 0x11e   :  { %v455_v38 = vpop.f32.mrb[20].mxu0  ;;  %v648_v39 = vpop.f32.mrb[20].mxu1  ;;  %v1156_v49 = vpack.c.bf16 %v1044_v37, %v1040_v47  ;;  %v1039_v60 = vsel %vm783_vm9, %v6214_v46, %v911_v25  ;;  %v1043_v61 = vsel %vm787_vm15, %v633_v14, %v915_v32  ;;  %v918_v0 = vmul.f32 0.2, %v6239_v27 }
 0x11f   :  { %v457_v62 = vpop.f32.mrb[21].mxu0  ;;  %v650_v63 = vpop.f32.mrb[21].mxu1  ;;  %vm792_vm3 = vcmp.gt.f32.partialorder %v641_v36, 0.0  ;;  %v1153_v2 = vpack.c.bf16 %v1041_v1, %v1037_v48  ;;  %v1155_v3 = vpack.c.bf16 %v1043_v61, %v1039_v60  ;;  %v920_v6 = vmul.f32 0.2, %v641_v36 }
 0x120   :  { %v459_v4 = vpop.f32.mrb[22].mxu0  ;;  %v652_v5 = vpop.f32.mrb[22].mxu1  ;;  %v922_v45 = vmul.f32 0.2, %v452_v42  ;;  %1856 = vmatprep.mubr.bf16.mxu0 %v1156_v49  ;;  %v6266_v7 = vadd.f32 %v455_v38, %v6163_v56  ;;  %vm793_vm4 = vcmp.gt.f32.partialorder %v450_v41, 0.0  ;;  %vm794_vm5 = vcmp.gt.f32.partialorder %v452_v42, 0.0 }
 0x121   :  { %v461_v8 = vpop.f32.mrb[23].mxu0  ;;  %v654_v9 = vpop.f32.mrb[23].mxu1  ;;  %v924_v46 = vmul.f32 0.2, %v645_v44  ;;  %1664 = vmatmul.mubr.bf16.gmra.mrb[76].mxu1 %v1153_v2  ;;  %1857 = vmatmul.mubr.bf16.gmra.mrb[76].mxu0 %v1155_v3  ;;  %v6269_v10 = vadd.f32 %v648_v39, %v6166_v57  ;;  %v921_v11 = vmul.f32 0.2, %v450_v41  ;;  %v458_v13 = vadd.f32 %v457_v62, %v6169_v58 }
 0x122   :  { %vm795_vm6 = vcmp.gt.f32.partialorder %v643_v43, 0.0  ;;  %v923_v12 = vmul.f32 0.2, %v643_v43  ;;  %vm796_vm7 = vcmp.gt.f32.partialorder %v645_v44, 0.0  ;;  %v6273_v14 = vadd.f32 %v650_v63, %v6172_v59 }
 0x123   :  { %v6276_v15 = vadd.f32 %v459_v4, %v6163_v56  ;;  %v6279_v16 = vadd.f32 %v652_v5, %v6166_v57  ;;  %vm797_vm8 = vcmp.gt.f32.partialorder %v6266_v7, 0.0  ;;  %v6283_v17 = vmul.f32 0.2, %v6266_v7 }
 0x124   :  { %v1046_v18 = vsel %vm790_vm2, %v6239_v27, %v918_v0  ;;  %v1050_v19 = vsel %vm794_vm5, %v452_v42, %v922_v45  ;;  %vm799_vm9 = vcmp.gt.f32.partialorder %v6269_v10, 0.0  ;;  %v462_v23 = vadd.f32 %v461_v8, %v6169_v58 }
 0x125   :  { %v1158_v24 = vpack.c.bf16 %v1050_v19, %v1046_v18  ;;  %v1052_v25 = vsel %vm796_vm7, %v645_v44, %v924_v46  ;;  %v927_v31 = vmul.f32 0.2, %v6269_v10  ;;  %v655_v32 = vadd.f32 %v654_v9, %v6172_v59 }
 0x126   :  { %v465_v20 = vpop.f32.mrb[24].mxu0  ;;  %v658_v22 = vpop.f32.mrb[24].mxu1  ;;  %v1048_v33 = vsel %vm792_vm3, %v641_v36, %v920_v6  ;;  %v1045_v27 = vsel %vm789_vm0, %v6232_v21, %v6244_v35  ;;  %v1049_v34 = vsel %vm793_vm4, %v450_v41, %v921_v11  ;;  %v1047_v37 = vsel %vm791_vm1, %v6236_v26, %v919_v40 }
 0x127   :  { %v467_v28 = vpop.f32.mrb[25].mxu0  ;;  %v660_v30 = vpop.f32.mrb[25].mxu1  ;;  %1673 = vmatprep.mubr.bf16.mxu1 %v1158_v24  ;;  %v1160_v29 = vpack.c.bf16 %v1052_v25, %v1048_v33  ;;  %v1051_v38 = vsel %vm795_vm6, %v643_v43, %v923_v12  ;;  %vm798_vm10 = vcmp.gt.f32.partialorder %v458_v13, 0.0  ;;  %v926_v44 = vmul.f32 0.2, %v458_v13 }
 0x128   :  { %v469_v39 = vpop.f32.mrb[26].mxu0  ;;  %v662_v42 = vpop.f32.mrb[26].mxu1  ;;  %v1157_v36 = vpack.c.bf16 %v1049_v34, %v1045_v27  ;;  %v1159_v47 = vpack.c.bf16 %v1051_v38, %v1047_v37  ;;  %vm800_vm11 = vcmp.gt.f32.partialorder %v6273_v14, 0.0  ;;  %v928_v21 = vmul.f32 0.2, %v6273_v14 }
 0x129   :  { %v471_v48 = vpop.f32.mrb[27].mxu0  ;;  %v664_v49 = vpop.f32.mrb[27].mxu1  ;;  %v930_v35 = vmul.f32 0.2, %v462_v23  ;;  %1866 = vmatprep.mubr.bf16.mxu0 %v1160_v29  ;;  %v6306_v41 = vadd.f32 %v465_v20, %v6163_v56  ;;  %vm801_vm12 = vcmp.gt.f32.partialorder %v6276_v15, 0.0  ;;  %vm802_vm13 = vcmp.gt.f32.partialorder %v462_v23, 0.0 }
 0x12a   :  { %v932_v26 = vmul.f32 0.2, %v655_v32  ;;  %1674 = vmatmul.mubr.bf16.gmra.mrb[80].mxu1 %v1157_v36  ;;  %1867 = vmatmul.mubr.bf16.gmra.mrb[80].mxu0 %v1159_v47  ;;  %v6310_v40 = vadd.f32 %v658_v22, %v6166_v57  ;;  %v929_v43 = vmul.f32 0.2, %v6276_v15  ;;  %vm803_vm14 = vcmp.gt.f32.partialorder %v6279_v16, 0.0 }
 0x12b   :  { %v931_v1 = vmul.f32 0.2, %v6279_v16  ;;  %vm804_vm15 = vcmp.gt.f32.partialorder %v655_v32, 0.0  ;;  %v468_v60 = vadd.f32 %v467_v28, %v6169_v58  ;;  %v6317_v61 = vadd.f32 %v660_v30, %v6172_v59 }
 0x12c   :  { %v6320_v62 = vadd.f32 %v469_v39, %v6163_v56  ;;  %v6323_v63 = vadd.f32 %v662_v42, %v6166_v57  ;;  %vm805_vm0 = vcmp.gt.f32.partialorder %v6306_v41, 0.0  ;;  %v6327_v0 = vmul.f32 0.2, %v6306_v41 }
 0x12d   :  { %v1054_v2 = vsel %vm798_vm10, %v458_v13, %v926_v44  ;;  %v1058_v3 = vsel %vm802_vm13, %v462_v23, %v930_v35  ;;  %vm807_vm1 = vcmp.gt.f32.partialorder %v6310_v40, 0.0  ;;  %v472_v6 = vadd.f32 %v471_v48, %v6169_v58 }
 0x12e   :  { %v475_v4 = vpop.f32.mrb[28].mxu0  ;;  %v668_v5 = vpop.f32.mrb[28].mxu1  ;;  %v1162_v45 = vpack.c.bf16 %v1058_v3, %v1054_v2  ;;  %v1060_v8 = vsel %vm804_vm15, %v655_v32, %v932_v26  ;;  %v935_v11 = vmul.f32 0.2, %v6310_v40  ;;  %v665_v12 = vadd.f32 %v664_v49, %v6172_v59 }
 0x12f   :  { %v477_v9 = vpop.f32.mrb[29].mxu0  ;;  %v670_v46 = vpop.f32.mrb[29].mxu1  ;;  %v1056_v13 = vsel %vm800_vm11, %v6273_v14, %v928_v21  ;;  %v1053_v18 = vsel %vm797_vm8, %v6266_v7, %v6283_v17  ;;  %v1057_v20 = vsel %vm801_vm12, %v6276_v15, %v929_v43  ;;  %v1055_v22 = vsel %vm799_vm9, %v6269_v10, %v927_v31 }
 0x130   :  { %1683 = vmatprep.mubr.bf16.mxu1 %v1162_v45  ;;  %v1164_v19 = vpack.c.bf16 %v1060_v8, %v1056_v13  ;;  %v1059_v23 = vsel %vm803_vm14, %v6279_v16, %v931_v1  ;;  %v479_v14 = vpop.f32.mrb[30].mxu0  ;;  %v672_v24 = vpop.f32.mrb[30].mxu1  ;;  %vm806_vm2 = vcmp.gt.f32.partialorder %v468_v60, 0.0  ;;  %v934_v25 = vmul.f32 0.2, %v468_v60 }
 0x131   :  { %v1161_v28 = vpack.c.bf16 %v1057_v20, %v1053_v18  ;;  %v1163_v7 = vpack.c.bf16 %v1059_v23, %v1055_v22  ;;  %v481_v17 = vpop.f32.mrb[31].mxu0  ;;  %v674_v30 = vpop.f32.mrb[31].mxu1  ;;  %vm808_vm3 = vcmp.gt.f32.partialorder %v6317_v61, 0.0  ;;  %v936_v15 = vmul.f32 0.2, %v6317_v61 }
 0x132   :  { %v938_v32 = vmul.f32 0.2, %v472_v6  ;;  %1876 = vmatprep.mubr.bf16.mxu0 %v1164_v19  ;;  %v6354_v10 = vadd.f32 %v475_v4, %v6163_v56  ;;  %vm809_vm4 = vcmp.gt.f32.partialorder %v6320_v62, 0.0  ;;  %vm810_vm5 = vcmp.gt.f32.partialorder %v472_v6, 0.0 }
 0x133   :  { %v940_v16 = vmul.f32 0.2, %v665_v12  ;;  %1684 = vmatmul.mubr.bf16.gmra.mrb[84].mxu1 %v1161_v28  ;;  %1877 = vmatmul.mubr.bf16.gmra.mrb[84].mxu0 %v1163_v7  ;;  %v6358_v31 = vadd.f32 %v668_v5, %v6166_v57  ;;  %v937_v33 = vmul.f32 0.2, %v6320_v62  ;;  %vm811_vm6 = vcmp.gt.f32.partialorder %v6323_v63, 0.0 }
 0x134   :  { %vm812_vm7 = vcmp.gt.f32.partialorder %v665_v12, 0.0  ;;  %v478_v27 = vadd.f32 %v477_v9, %v6169_v58  ;;  %v939_v29 = vmul.f32 0.2, %v6323_v63  ;;  %v6365_v34 = vadd.f32 %v670_v46, %v6172_v59 }
 0x135   :  { %v6368_v37 = vadd.f32 %v479_v14, %v6163_v56  ;;  %v6371_v38 = vadd.f32 %v672_v24, %v6166_v57  ;;  %vm813_vm8 = vcmp.gt.f32.partialorder %v6354_v10, 0.0  ;;  %v6375_v39 = vmul.f32 0.2, %v6354_v10 }
 0x136   :  { %v1062_v42 = vsel %vm806_vm2, %v468_v60, %v934_v25  ;;  %v1066_v44 = vsel %vm810_vm5, %v472_v6, %v938_v32  ;;  %v485_v36 = vpop.f32.mrb[32].mxu0  ;;  %v678_v47 = vpop.f32.mrb[32].mxu1  ;;  %vm815_vm9 = vcmp.gt.f32.partialorder %v6358_v31, 0.0  ;;  %v6381_v48 = vmul.f32 0.2, %v6358_v31 }
 0x137   :  { %v482_v49 = vadd.f32 %v481_v17, %v6169_v58  ;;  %v1166_v21 = vpack.c.bf16 %v1066_v44, %v1062_v42  ;;  %v1068_v35 = vsel %vm812_vm7, %v665_v12, %v940_v16  ;;  %v487_v26 = vpop.f32.mrb[33].mxu0  ;;  %v680_v43 = vpop.f32.mrb[33].mxu1  ;;  %vm814_vm10 = vcmp.gt.f32.partialorder %v478_v27, 0.0 }
 0x138   :  { %v675_v1 = vadd.f32 %v674_v30, %v6172_v59  ;;  %v1064_v60 = vsel %vm808_vm3, %v6317_v61, %v936_v15  ;;  %v1061_v2 = vsel %vm805_vm0, %v6306_v41, %v6327_v0  ;;  %v1065_v4 = vsel %vm809_vm4, %v6320_v62, %v937_v33  ;;  %v489_v61 = vpop.f32.mrb[34].mxu0  ;;  %v682_v45 = vpop.f32.mrb[34].mxu1 }
 0x139   :  { %1693 = vmatprep.mubr.bf16.mxu1 %v1166_v21  ;;  %v1168_v3 = vpack.c.bf16 %v1068_v35, %v1064_v60  ;;  %v1063_v5 = vsel %vm807_vm1, %v6310_v40, %v935_v11  ;;  %v1067_v6 = vsel %vm811_vm6, %v6323_v63, %v939_v29  ;;  %v942_v8 = vmul.f32 0.2, %v478_v27  ;;  %v491_v9 = vpop.f32.mrb[35].mxu0  ;;  %v684_v46 = vpop.f32.mrb[35].mxu1 }
 0x13a   :  { %vm816_vm11 = vcmp.gt.f32.partialorder %v6365_v34, 0.0  ;;  %v1165_v41 = vpack.c.bf16 %v1065_v4, %v1061_v2  ;;  %v1167_v0 = vpack.c.bf16 %v1067_v6, %v1063_v5  ;;  %v944_v12 = vmul.f32 0.2, %v6365_v34 }
 0x13b   :  { %v946_v62 = vmul.f32 0.2, %v482_v49  ;;  %1886 = vmatprep.mubr.bf16.mxu0 %v1168_v3  ;;  %v6405_v13 = vadd.f32 %v485_v36, %v6163_v56  ;;  %vm817_vm12 = vcmp.gt.f32.partialorder %v6368_v37, 0.0  ;;  %vm818_vm13 = vcmp.gt.f32.partialorder %v482_v49, 0.0 }
 0x13c   :  { %v948_v63 = vmul.f32 0.2, %v675_v1  ;;  %1694 = vmatmul.mubr.bf16.gmra.mrb[88].mxu1 %v1165_v41  ;;  %1887 = vmatmul.mubr.bf16.gmra.mrb[88].mxu0 %v1167_v0  ;;  %v6409_v18 = vadd.f32 %v678_v47, %v6166_v57  ;;  %v945_v19 = vmul.f32 0.2, %v6368_v37  ;;  %vm819_vm14 = vcmp.gt.f32.partialorder %v6371_v38, 0.0 }
 0x13d   :  { %vm820_vm15 = vcmp.gt.f32.partialorder %v675_v1, 0.0  ;;  %v488_v20 = vadd.f32 %v487_v26, %v6169_v58  ;;  %v947_v22 = vmul.f32 0.2, %v6371_v38  ;;  %v6416_v23 = vadd.f32 %v680_v43, %v6172_v59 }
 0x13e   :  { %v495_v40 = vpop.f32.mrb[36].mxu0  ;;  %v688_v11 = vpop.f32.mrb[36].mxu1  ;;  %v6419_v14 = vadd.f32 %v489_v61, %v6163_v56  ;;  %v6422_v24 = vadd.f32 %v682_v45, %v6166_v57  ;;  %vm821_vm0 = vcmp.gt.f32.partialorder %v6405_v13, 0.0  ;;  %v6426_v25 = vmul.f32 0.2, %v6405_v13 }
 0x13f   :  { %v1070_v28 = vsel %vm814_vm10, %v478_v27, %v942_v8  ;;  %v1074_v7 = vsel %vm818_vm13, %v482_v49, %v946_v62  ;;  %v497_v17 = vpop.f32.mrb[37].mxu0  ;;  %v690_v30 = vpop.f32.mrb[37].mxu1  ;;  %vm823_vm1 = vcmp.gt.f32.partialorder %v6409_v18, 0.0  ;;  %v6432_v15 = vmul.f32 0.2, %v6409_v18 }
 0x140   :  { %v492_v32 = vadd.f32 %v491_v9, %v6169_v58  ;;  %v1170_v16 = vpack.c.bf16 %v1074_v7, %v1070_v28  ;;  %v1076_v33 = vsel %vm820_vm15, %v675_v1, %v948_v63  ;;  %v499_v29 = vpop.f32.mrb[38].mxu0  ;;  %v692_v42 = vpop.f32.mrb[38].mxu1  ;;  %vm822_vm2 = vcmp.gt.f32.partialorder %v488_v20, 0.0 }
 0x141   :  { %v685_v44 = vadd.f32 %v684_v46, %v6172_v59  ;;  %v1072_v27 = vsel %vm816_vm11, %v6365_v34, %v944_v12  ;;  %v1069_v36 = vsel %vm813_vm8, %v6354_v10, %v6375_v39  ;;  %v1073_v49 = vsel %vm817_vm12, %v6368_v37, %v945_v19  ;;  %v501_v35 = vpop.f32.mrb[39].mxu0  ;;  %v694_v26 = vpop.f32.mrb[39].mxu1 }
 0x142   :  { %1703 = vmatprep.mubr.bf16.mxu1 %v1170_v16  ;;  %v1172_v47 = vpack.c.bf16 %v1076_v33, %v1072_v27  ;;  %v1071_v21 = vsel %vm815_vm9, %v6358_v31, %v6381_v48  ;;  %v1075_v34 = vsel %vm819_vm14, %v6371_v38, %v947_v22  ;;  %v950_v43 = vmul.f32 0.2, %v488_v20 }
 0x143   :  { %vm824_vm3 = vcmp.gt.f32.partialorder %v6416_v23, 0.0  ;;  %v1169_v10 = vpack.c.bf16 %v1073_v49, %v1069_v36  ;;  %v1171_v39 = vpack.c.bf16 %v1075_v34, %v1071_v21  ;;  %v952_v37 = vmul.f32 0.2, %v6416_v23 }
 0x144   :  { %v954_v2 = vmul.f32 0.2, %v492_v32  ;;  %1896 = vmatprep.mubr.bf16.mxu0 %v1172_v47  ;;  %v6457_v3 = vadd.f32 %v495_v40, %v6163_v56  ;;  %vm825_vm4 = vcmp.gt.f32.partialorder %v6419_v14, 0.0  ;;  %vm826_vm5 = vcmp.gt.f32.partialorder %v492_v32, 0.0 }
 0x145   :  { %v956_v38 = vmul.f32 0.2, %v685_v44  ;;  %1704 = vmatmul.mubr.bf16.gmra.mrb[92].mxu1 %v1169_v10  ;;  %1897 = vmatmul.mubr.bf16.gmra.mrb[92].mxu0 %v1171_v39  ;;  %v6461_v4 = vadd.f32 %v688_v11, %v6166_v57  ;;  %v953_v5 = vmul.f32 0.2, %v6419_v14  ;;  %vm827_vm6 = vcmp.gt.f32.partialorder %v6422_v24, 0.0 }
 0x146   :  { %v505_v1 = vpop.f32.mrb[40].mxu0  ;;  %v698_v60 = vpop.f32.mrb[40].mxu1  ;;  %vm828_vm7 = vcmp.gt.f32.partialorder %v685_v44, 0.0  ;;  %v498_v6 = vadd.f32 %v497_v17, %v6169_v58  ;;  %v955_v61 = vmul.f32 0.2, %v6422_v24  ;;  %v6468_v45 = vadd.f32 %v690_v30, %v6172_v59 }
 0x147   :  { %v507_v31 = vpop.f32.mrb[41].mxu0  ;;  %v700_v48 = vpop.f32.mrb[41].mxu1  ;;  %v6471_v8 = vadd.f32 %v499_v29, %v6163_v56  ;;  %v6474_v41 = vadd.f32 %v692_v42, %v6166_v57  ;;  %vm829_vm8 = vcmp.gt.f32.partialorder %v6457_v3, 0.0  ;;  %v6478_v0 = vmul.f32 0.2, %v6457_v3 }
 0x148   :  { %v1078_v9 = vsel %vm822_vm2, %v488_v20, %v950_v43  ;;  %v1082_v46 = vsel %vm826_vm5, %v492_v32, %v954_v2  ;;  %v509_v12 = vpop.f32.mrb[42].mxu0  ;;  %v702_v62 = vpop.f32.mrb[42].mxu1  ;;  %vm831_vm9 = vcmp.gt.f32.partialorder %v6461_v4, 0.0  ;;  %v959_v40 = vmul.f32 0.2, %v6461_v4 }
 0x149   :  { %v502_v11 = vadd.f32 %v501_v35, %v6169_v58  ;;  %v1174_v63 = vpack.c.bf16 %v1082_v46, %v1078_v9  ;;  %v1084_v19 = vsel %vm828_vm7, %v685_v44, %v956_v38  ;;  %v511_v22 = vpop.f32.mrb[43].mxu0  ;;  %v704_v28 = vpop.f32.mrb[43].mxu1  ;;  %vm830_vm10 = vcmp.gt.f32.partialorder %v498_v6, 0.0 }
 0x14a   :  { %v695_v7 = vadd.f32 %v694_v26, %v6172_v59  ;;  %v1080_v20 = vsel %vm824_vm3, %v6416_v23, %v952_v37  ;;  %v1077_v17 = vsel %vm821_vm0, %v6405_v13, %v6426_v25  ;;  %v1081_v32 = vsel %vm825_vm4, %v6419_v14, %v953_v5 }
 0x14b   :  { %1713 = vmatprep.mubr.bf16.mxu1 %v1174_v63  ;;  %v1176_v30 = vpack.c.bf16 %v1084_v19, %v1080_v20  ;;  %v1079_v16 = vsel %vm823_vm1, %v6409_v18, %v6432_v15  ;;  %v1083_v23 = vsel %vm827_vm6, %v6422_v24, %v955_v61  ;;  %v958_v42 = vmul.f32 0.2, %v498_v6 }
 0x14c   :  { %vm832_vm11 = vcmp.gt.f32.partialorder %v6468_v45, 0.0  ;;  %v1173_v13 = vpack.c.bf16 %v1081_v32, %v1077_v17  ;;  %v1175_v25 = vpack.c.bf16 %v1083_v23, %v1079_v16  ;;  %v960_v14 = vmul.f32 0.2, %v6468_v45 }
 0x14d   :  { %v962_v36 = vmul.f32 0.2, %v502_v11  ;;  %1906 = vmatprep.mubr.bf16.mxu0 %v1176_v30  ;;  %v6509_v18 = vadd.f32 %v505_v1, %v6163_v56  ;;  %vm833_vm12 = vcmp.gt.f32.partialorder %v6471_v8, 0.0  ;;  %vm834_vm13 = vcmp.gt.f32.partialorder %v502_v11, 0.0 }
 0x14e   :  { %v515_v33 = vpop.f32.mrb[44].mxu0  ;;  %v708_v29 = vpop.f32.mrb[44].mxu1  ;;  %v964_v47 = vmul.f32 0.2, %v695_v7  ;;  %1714 = vmatmul.mubr.bf16.gmra.mrb[96].mxu1 %v1173_v13  ;;  %1907 = vmatmul.mubr.bf16.gmra.mrb[96].mxu0 %v1175_v25  ;;  %v6517_v49 = vadd.f32 %v698_v60, %v6166_v57  ;;  %v961_v21 = vmul.f32 0.2, %v6471_v8  ;;  %v508_v34 = vadd.f32 %v507_v31, %v6169_v58 }
 0x14f   :  { %v517_v44 = vpop.f32.mrb[45].mxu0  ;;  %v6505_v27 = vpop.f32.mrb[45].mxu1  ;;  %vm835_vm14 = vcmp.gt.f32.partialorder %v6474_v41, 0.0  ;;  %vm836_vm15 = vcmp.gt.f32.partialorder %v695_v7, 0.0  ;;  %v963_v35 = vmul.f32 0.2, %v6474_v41  ;;  %v6524_v26 = vadd.f32 %v700_v48, %v6172_v59 }
 0x150   :  { %v6511_v15 = vpop.f32.mrb[46].mxu0  ;;  %v6513_v24 = vpop.f32.mrb[46].mxu1  ;;  %v6527_v43 = vadd.f32 %v509_v12, %v6163_v56  ;;  %v6530_v10 = vadd.f32 %v702_v62, %v6166_v57  ;;  %vm837_vm0 = vcmp.gt.f32.partialorder %v6509_v18, 0.0  ;;  %v6534_v39 = vmul.f32 0.2, %v6509_v18 }
 0x151   :  { %v1086_v1 = vsel %vm830_vm10, %v498_v6, %v958_v42  ;;  %v1090_v60 = vsel %vm834_vm13, %v502_v11, %v962_v36  ;;  %v521_v37 = vpop.f32.mrb[47].mxu0  ;;  %v714_v2 = vpop.f32.mrb[47].mxu1  ;;  %vm839_vm1 = vcmp.gt.f32.partialorder %v6517_v49, 0.0  ;;  %v6540_v31 = vmul.f32 0.2, %v6517_v49 }
 0x152   :  { %v512_v48 = vadd.f32 %v511_v22, %v6169_v58  ;;  %v1178_v38 = vpack.c.bf16 %v1090_v60, %v1086_v1  ;;  %v1092_v5 = vsel %vm836_vm15, %v695_v7, %v964_v47  ;;  %vm838_vm2 = vcmp.gt.f32.partialorder %v508_v34, 0.0 }
 0x153   :  { %v705_v61 = vadd.f32 %v704_v28, %v6172_v59  ;;  %v1088_v6 = vsel %vm832_vm11, %v6468_v45, %v960_v14  ;;  %v1085_v9 = vsel %vm829_vm8, %v6457_v3, %v6478_v0  ;;  %v1089_v12 = vsel %vm833_vm12, %v6471_v8, %v961_v21 }
 0x154   :  { %1723 = vmatprep.mubr.bf16.mxu1 %v1178_v38  ;;  %v1180_v46 = vpack.c.bf16 %v1092_v5, %v1088_v6  ;;  %v1087_v62 = vsel %vm831_vm9, %v6461_v4, %v959_v40  ;;  %v1091_v11 = vsel %vm835_vm14, %v6474_v41, %v963_v35  ;;  %v966_v19 = vmul.f32 0.2, %v508_v34 }
 0x155   :  { %v1177_v22 = vpack.c.bf16 %v1089_v12, %v1085_v9  ;;  %v1179_v28 = vpack.c.bf16 %v1091_v11, %v1087_v62  ;;  %v6562_v3 = vadd.f32 %v515_v33, %v6163_v56  ;;  %vm840_vm3 = vcmp.gt.f32.partialorder %v6524_v26, 0.0 }
 0x156   :  { %v525_v45 = vpop.f32.mrb[48].mxu0  ;;  %v718_v63 = vpop.f32.mrb[48].mxu1  ;;  %v970_v8 = vmul.f32 0.2, %v512_v48  ;;  %1916 = vmatprep.mubr.bf16.mxu0 %v1180_v46  ;;  %v6566_v4 = vadd.f32 %v708_v29, %v6166_v57  ;;  %v6569_v40 = vadd.f32 %v517_v44, %v6169_v58  ;;  %v968_v17 = vmul.f32 0.2, %v6524_v26 }
 0x157   :  { %v527_v0 = vpop.f32.mrb[49].mxu0  ;;  %v720_v7 = vpop.f32.mrb[49].mxu1  ;;  %vm841_vm4 = vcmp.gt.f32.partialorder %v6527_v43, 0.0  ;;  %vm842_vm5 = vcmp.gt.f32.partialorder %v512_v48, 0.0  ;;  %v972_v30 = vmul.f32 0.2, %v705_v61  ;;  %1724 = vmatmul.mubr.bf16.gmra.mrb[100].mxu1 %v1177_v22  ;;  %1917 = vmatmul.mubr.bf16.gmra.mrb[100].mxu0 %v1179_v28  ;;  %v6581_v16 = vadd.f32 %v6505_v27, %v6172_v59 }
 0x158   :  { %v6571_v41 = vpop.f32.mrb[50].mxu0  ;;  %v6573_v20 = vpop.f32.mrb[50].mxu1  ;;  %v969_v32 = vmul.f32 0.2, %v6527_v43  ;;  %vm843_vm6 = vcmp.gt.f32.partialorder %v6530_v10, 0.0  ;;  %vm844_vm7 = vcmp.gt.f32.partialorder %v705_v61, 0.0  ;;  %v6589_v29 = vadd.f32 %v6511_v15, %v6163_v56 }
 0x159   :  { %v971_v23 = vmul.f32 0.2, %v6530_v10  ;;  %v6585_v33 = vmul.f32 0.2, %v6562_v3  ;;  %v6593_v42 = vadd.f32 %v6513_v24, %v6166_v57  ;;  %vm845_vm8 = vcmp.gt.f32.partialorder %v6562_v3, 0.0  ;;  %v531_v27 = vpop.f32.mrb[51].mxu0 }
 0x15a   :  { %v6597_v13 = vmul.f32 0.2, %v6566_v4  ;;  %vm846_vm9 = vcmp.gt.f32.partialorder %v6569_v40, 0.0  ;;  %v1094_v25 = vsel %vm838_vm2, %v508_v34, %v966_v19  ;;  %v1098_v44 = vsel %vm842_vm5, %v512_v48, %v970_v8  ;;  %v724_v14 = vpop.f32.mrb[51].mxu1 }
 0x15b   :  { %vm847_vm10 = vcmp.gt.f32.partialorder %v6566_v4, 0.0  ;;  %v974_v36 = vmul.f32 0.2, %v6569_v40  ;;  %v522_v15 = vadd.f32 %v521_v37, %v6169_v58  ;;  %v1182_v24 = vpack.c.bf16 %v1098_v44, %v1094_v25 }
 0x15c   :  { %v1100_v47 = vsel %vm844_vm7, %v705_v61, %v972_v30  ;;  %vm848_vm11 = vcmp.gt.f32.partialorder %v6581_v16, 0.0  ;;  %v715_v34 = vadd.f32 %v714_v2, %v6172_v59  ;;  %v1096_v1 = vsel %vm840_vm3, %v6524_v26, %v968_v17 }
 0x15d   :  { %v1093_v60 = vsel %vm837_vm0, %v6509_v18, %v6534_v39  ;;  %1733 = vmatprep.mubr.bf16.mxu1 %v1182_v24  ;;  %v1184_v37 = vpack.c.bf16 %v1100_v47, %v1096_v1  ;;  %v1097_v48 = vsel %vm841_vm4, %v6527_v43, %v969_v32  ;;  %v1095_v2 = vsel %vm839_vm1, %v6517_v49, %v6540_v31 }
 0x15e   :  { %v6606_v21 = vpop.f32.mrb[52].mxu0  ;;  %v6608_v35 = vpop.f32.mrb[52].mxu1  ;;  %v1099_v26 = vsel %vm843_vm6, %v6530_v10, %v971_v23  ;;  %v1181_v18 = vpack.c.bf16 %v1097_v48, %v1093_v60  ;;  %v6634_v61 = vadd.f32 %v525_v45, %v6163_v56  ;;  %v6637_v43 = vadd.f32 %v718_v63, %v6166_v57 }
 0x15f   :  { %v6629_v38 = vpop.f32.mrb[53].mxu0  ;;  %v6631_v5 = vpop.f32.mrb[53].mxu1  ;;  %v1183_v39 = vpack.c.bf16 %v1099_v26, %v1095_v2  ;;  %v976_v49 = vmul.f32 0.2, %v6581_v16  ;;  %v978_v31 = vmul.f32 0.2, %v522_v15  ;;  %1926 = vmatprep.mubr.bf16.mxu0 %v1184_v37  ;;  %v6645_v10 = vadd.f32 %v527_v0, %v6169_v58 }
 0x160   :  { %v6639_v6 = vpop.f32.mrb[54].mxu0  ;;  %v6641_v9 = vpop.f32.mrb[54].mxu1  ;;  %v6648_v46 = vadd.f32 %v720_v7, %v6172_v59  ;;  %vm849_vm12 = vcmp.gt.f32.partialorder %v6589_v29, 0.0  ;;  %v977_v11 = vmul.f32 0.2, %v6589_v29  ;;  %vm850_vm13 = vcmp.gt.f32.partialorder %v522_v15, 0.0  ;;  %1734 = vmatmul.mubr.bf16.gmra.mrb[104].mxu1 %v1181_v18 }
 0x161   :  { %v6650_v12 = vpop.f32.mrb[55].mxu0  ;;  %v6652_v62 = vpop.f32.mrb[55].mxu1  ;;  %v980_v45 = vmul.f32 0.2, %v715_v34  ;;  %1927 = vmatmul.mubr.bf16.gmra.mrb[104].mxu0 %v1183_v39  ;;  %vm851_vm14 = vcmp.gt.f32.partialorder %v6593_v42, 0.0  ;;  %vm852_vm15 = vcmp.gt.f32.partialorder %v715_v34, 0.0  ;;  %v6660_v19 = vadd.f32 %v6571_v41, %v6163_v56 }
 0x162   :  { %v979_v63 = vmul.f32 0.2, %v6593_v42  ;;  %v6663_v22 = vmul.f32 0.2, %v6634_v61  ;;  %v6666_v28 = vmul.f32 0.2, %v6637_v43  ;;  %v6671_v0 = vadd.f32 %v6573_v20, %v6166_v57 }
 0x163   :  { %vm854_vm0 = vcmp.gt.f32.partialorder %v6645_v10, 0.0  ;;  %vm853_vm1 = vcmp.gt.f32.partialorder %v6634_v61, 0.0  ;;  %v982_v7 = vmul.f32 0.2, %v6645_v10  ;;  %vm856_vm2 = vcmp.gt.f32.partialorder %v6648_v46, 0.0 }
 0x164   :  { %v1102_v8 = vsel %vm846_vm9, %v6569_v40, %v974_v36  ;;  %v1106_v41 = vsel %vm850_vm13, %v522_v15, %v978_v31  ;;  %vm855_vm3 = vcmp.gt.f32.partialorder %v6637_v43, 0.0  ;;  %v984_v20 = vmul.f32 0.2, %v6648_v46 }
 0x165   :  { %v532_v32 = vadd.f32 %v531_v27, %v6169_v58  ;;  %v1186_v23 = vpack.c.bf16 %v1106_v41, %v1102_v8  ;;  %v1108_v25 = vsel %vm852_vm15, %v715_v34, %v980_v45  ;;  %vm857_vm4 = vcmp.gt.f32.partialorder %v6660_v19, 0.0 }
 0x166   :  { %v6680_v17 = vpop.f32.mrb[56].mxu0  ;;  %v6682_v30 = vpop.f32.mrb[56].mxu1  ;;  %v725_v40 = vadd.f32 %v724_v14, %v6172_v59  ;;  %v1104_v36 = vsel %vm848_vm11, %v6581_v16, %v976_v49  ;;  %v1101_v27 = vsel %vm845_vm8, %v6562_v3, %v6585_v33  ;;  %v1105_v47 = vsel %vm849_vm12, %v6589_v29, %v977_v11 }
 0x167   :  { %v6688_v44 = vpop.f32.mrb[57].mxu0  ;;  %v6690_v24 = vpop.f32.mrb[57].mxu1  ;;  %1743 = vmatprep.mubr.bf16.mxu1 %v1186_v23  ;;  %v1188_v15 = vpack.c.bf16 %v1108_v25, %v1104_v36  ;;  %v1103_v14 = vsel %vm847_vm10, %v6566_v4, %v6597_v13  ;;  %v1107_v16 = vsel %vm851_vm14, %v6593_v42, %v979_v63  ;;  %v1185_v60 = vpack.c.bf16 %v1105_v47, %v1101_v27 }
 0x168   :  { %v549_v34 = vpop.f32.mrb[58].mxu0  ;;  %v742_v1 = vpop.f32.mrb[58].mxu1  ;;  %v1187_v37 = vpack.c.bf16 %v1107_v16, %v1103_v14  ;;  %v6713_v3 = vadd.f32 %v6606_v21, %v6163_v56  ;;  %v6717_v33 = vadd.f32 %v6608_v35, %v6166_v57  ;;  %v985_v4 = vmul.f32 0.2, %v6660_v19 }
 0x169   :  { %v6719_v29 = vpop.f32.mrb[59].mxu0  ;;  %v6721_v48 = vpop.f32.mrb[59].mxu1  ;;  %v986_v13 = vmul.f32 0.2, %v532_v32  ;;  %1936 = vmatprep.mubr.bf16.mxu0 %v1188_v15  ;;  %v6726_v42 = vadd.f32 %v6629_v38, %v6169_v58  ;;  %v6730_v21 = vadd.f32 %v6631_v5, %v6172_v59  ;;  %vm858_vm5 = vcmp.gt.f32.partialorder %v532_v32, 0.0  ;;  %1744 = vmatmul.mubr.bf16.gmra.mrb[108].mxu1 %v1185_v60 }
 0x16a   :  { %v988_v2 = vmul.f32 0.2, %v725_v40  ;;  %1937 = vmatmul.mubr.bf16.gmra.mrb[108].mxu0 %v1187_v37  ;;  %v6734_v35 = vadd.f32 %v6639_v6, %v6163_v56  ;;  %v6738_v26 = vadd.f32 %v6641_v9, %v6166_v57  ;;  %vm859_vm6 = vcmp.gt.f32.partialorder %v6671_v0, 0.0 }
 0x16b   :  { %v987_v38 = vmul.f32 0.2, %v6671_v0  ;;  %vm860_vm7 = vcmp.gt.f32.partialorder %v725_v40, 0.0  ;;  %v6743_v5 = vmul.f32 0.2, %v6713_v3  ;;  %vm861_vm8 = vcmp.gt.f32.partialorder %v6713_v3, 0.0 }
 0x16c   :  { %v6747_v18 = vmul.f32 0.2, %v6717_v33  ;;  %vm862_vm9 = vcmp.gt.f32.partialorder %v6726_v42, 0.0  ;;  %v990_v39 = vmul.f32 0.2, %v6726_v42  ;;  %vm864_vm10 = vcmp.gt.f32.partialorder %v6730_v21, 0.0 }
 0x16d   :  { %v992_v6 = vmul.f32 0.2, %v6730_v21  ;;  %v542_v9 = vadd.f32 %v6650_v12, %v6169_v58  ;;  %v1110_v49 = vsel %vm854_vm0, %v6645_v10, %v982_v7  ;;  %v1114_v31 = vsel %vm858_vm5, %v532_v32, %v986_v13 }
 0x16e   :  { %v6759_v11 = vpop.f32.mrb[60].mxu0  ;;  %v6761_v45 = vpop.f32.mrb[60].mxu1  ;;  %vm863_vm11 = vcmp.gt.f32.partialorder %v6717_v33, 0.0  ;;  %vm865_vm12 = vcmp.gt.f32.partialorder %v6734_v35, 0.0  ;;  %v993_v63 = vmul.f32 0.2, %v6734_v35  ;;  %v1190_v41 = vpack.c.bf16 %v1114_v31, %v1110_v49 }
 0x16f   :  { %v995_v8 = vmul.f32 0.2, %v6738_v26  ;;  %v1116_v12 = vsel %vm860_vm7, %v725_v40, %v988_v2  ;;  %v6768_v23 = vpop.f32.mrb[61].mxu0  ;;  %v6770_v10 = vpop.f32.mrb[61].mxu1  ;;  %v994_v7 = vmul.f32 0.2, %v542_v9  ;;  %v735_v32 = vadd.f32 %v6652_v62, %v6172_v59 }
 0x170   :  { %v1112_v25 = vsel %vm856_vm2, %v6648_v46, %v984_v20  ;;  %v1109_v36 = vsel %vm853_vm1, %v6634_v61, %v6663_v22  ;;  %1753 = vmatprep.mubr.bf16.mxu1 %v1190_v41  ;;  %v1113_v40 = vsel %vm857_vm4, %v6660_v19, %v985_v4  ;;  %v1111_v62 = vsel %vm855_vm3, %v6637_v43, %v6666_v28  ;;  %v559_v20 = vpop.f32.mrb[62].mxu0  ;;  %v752_v15 = vpop.f32.mrb[62].mxu1 }
 0x171   :  { %v1192_v27 = vpack.c.bf16 %v1116_v12, %v1112_v25  ;;  %v1115_v46 = vsel %vm859_vm6, %v6671_v0, %v987_v38  ;;  %v1189_v47 = vpack.c.bf16 %v1113_v40, %v1109_v36  ;;  %v6793_v61 = vadd.f32 %v6680_v17, %v6163_v56  ;;  %v6799_v22 = vpop.f32.mrb[63].mxu0  ;;  %v6801_v16 = vpop.f32.mrb[63].mxu1 }
 0x172   :  { %v1191_v14 = vpack.c.bf16 %v1115_v46, %v1111_v62  ;;  %v6797_v19 = vadd.f32 %v6682_v30, %v6166_v57  ;;  %v6805_v43 = vadd.f32 %v6688_v44, %v6169_v58  ;;  %v6809_v28 = vadd.f32 %v6690_v24, %v6172_v59 }
 0x173   :  { %1946 = vmatprep.mubr.bf16.mxu0 %v1192_v27  ;;  %v6812_v0 = vadd.f32 %v549_v34, %v6163_v56  ;;  %v6815_v17 = vadd.f32 %v742_v1, %v6166_v57  ;;  %vm867_vm13 = vcmp.gt.f32.partialorder %v6738_v26, 0.0  ;;  %vm866_vm14 = vcmp.gt.f32.partialorder %v542_v9, 0.0  ;;  %1754 = vmatmul.mubr.bf16.gmra.mrb[112].mxu1 %v1189_v47 }
 0x174   :  { %v996_v30 = vmul.f32 0.2, %v735_v32  ;;  %1947 = vmatmul.mubr.bf16.gmra.mrb[112].mxu0 %v1191_v14  ;;  %v997_v60 = vmul.f32 0.2, %v6793_v61  ;;  %vm868_vm15 = vcmp.gt.f32.partialorder %v735_v32, 0.0  ;;  %vm870_vm0 = vcmp.gt.f32.partialorder %v6805_v43, 0.0 }
 0x175   :  { %v6820_v44 = vmul.f32 0.2, %v6797_v19  ;;  %v998_v24 = vmul.f32 0.2, %v6805_v43  ;;  %vm869_vm1 = vcmp.gt.f32.partialorder %v6793_v61, 0.0  ;;  %vm872_vm2 = vcmp.gt.f32.partialorder %v6809_v28, 0.0 }
 0x176   :  { %v1000_v34 = vmul.f32 0.2, %v6809_v28  ;;  %v1001_v1 = vmul.f32 0.2, %v6812_v0  ;;  %v1003_v37 = vmul.f32 0.2, %v6815_v17  ;;  %v552_v4 = vadd.f32 %v6719_v29, %v6169_v58 }
 0x177   :  { %v745_v13 = vadd.f32 %v6721_v48, %v6172_v59  ;;  %v1118_v2 = vsel %vm862_vm9, %v6726_v42, %v990_v39  ;;  %v1122_v38 = vsel %vm866_vm14, %v542_v9, %v994_v7  ;;  %vm871_vm3 = vcmp.gt.f32.partialorder %v6797_v19, 0.0 }
 0x178   :  { %vm873_vm4 = vcmp.gt.f32.partialorder %v6812_v0, 0.0  ;;  %vm875_vm5 = vcmp.gt.f32.partialorder %v6815_v17, 0.0  ;;  %v1194_v49 = vpack.c.bf16 %v1122_v38, %v1118_v2  ;;  %v1120_v29 = vsel %vm864_vm10, %v6730_v21, %v992_v6 }
 0x179   :  { %v1124_v31 = vsel %vm868_vm15, %v735_v32, %v996_v30  ;;  %v1117_v48 = vsel %vm861_vm8, %v6713_v3, %v6743_v5  ;;  %vm874_vm6 = vcmp.gt.f32.partialorder %v552_v4, 0.0  ;;  %v1002_v42 = vmul.f32 0.2, %v552_v4 }
 0x17a   :  { %vm876_vm7 = vcmp.gt.f32.partialorder %v745_v13, 0.0  ;;  %v1004_v39 = vmul.f32 0.2, %v745_v13  ;;  %1763 = vmatprep.mubr.bf16.mxu1 %v1194_v49  ;;  %v1196_v9 = vpack.c.bf16 %v1124_v31, %v1120_v29  ;;  %v1121_v41 = vsel %vm865_vm12, %v6734_v35, %v993_v63 }
 0x17b   :  { %v1119_v21 = vsel %vm863_vm11, %v6717_v33, %v6747_v18  ;;  %v1123_v6 = vsel %vm867_vm13, %v6738_v26, %v995_v8  ;;  %v1193_v3 = vpack.c.bf16 %v1121_v41, %v1117_v48  ;;  %v556_v12 = vadd.f32 %v6759_v11, %v6163_v56 }
 0x17c   :  { %v1195_v5 = vpack.c.bf16 %v1123_v6, %v1119_v21  ;;  %v749_v7 = vadd.f32 %v6761_v45, %v6166_v57  ;;  %1956 = vmatprep.mubr.bf16.mxu0 %v1196_v9  ;;  %v558_v35 = vadd.f32 %v6768_v23, %v6169_v58  ;;  %v751_v63 = vadd.f32 %v6770_v10, %v6172_v59 }
 0x17d   :  { %v560_v33 = vadd.f32 %v559_v20, %v6163_v56  ;;  %v753_v18 = vadd.f32 %v752_v15, %v6166_v57  ;;  %1764 = vmatmul.mubr.bf16.gmra.mrb[116].mxu1 %v1193_v3  ;;  %vm877_vm8 = vcmp.gt.f32.partialorder %v556_v12, 0.0  ;;  %v1005_v26 = vmul.f32 0.2, %v556_v12 }
 0x17e   :  { %1957 = vmatmul.mubr.bf16.gmra.mrb[116].mxu0 %v1195_v5  ;;  %vm879_vm9 = vcmp.gt.f32.partialorder %v749_v7, 0.0  ;;  %v1007_v11 = vmul.f32 0.2, %v749_v7  ;;  %vm878_vm10 = vcmp.gt.f32.partialorder %v558_v35, 0.0  ;;  %v1006_v8 = vmul.f32 0.2, %v558_v35 }
 0x17f   :  { %vm880_vm11 = vcmp.gt.f32.partialorder %v751_v63, 0.0  ;;  %v1008_v45 = vmul.f32 0.2, %v751_v63  ;;  %vm881_vm12 = vcmp.gt.f32.partialorder %v560_v33, 0.0  ;;  %v1009_v32 = vmul.f32 0.2, %v560_v33 }
 0x180   :  { %vm883_vm13 = vcmp.gt.f32.partialorder %v753_v18, 0.0  ;;  %v1011_v23 = vmul.f32 0.2, %v753_v18  ;;  %v562_v10 = vadd.f32 %v6799_v22, %v6169_v58  ;;  %v755_v56 = vadd.f32 %v6801_v16, %v6172_v59 }
 0x181   :  { %v1126_v57 = vsel %vm870_vm0, %v6805_v43, %v998_v24  ;;  %v1130_v25 = vsel %vm874_vm6, %v552_v4, %v1002_v42  ;;  %v1128_v27 = vsel %vm872_vm2, %v6809_v28, %v1000_v34  ;;  %v1132_v40 = vsel %vm876_vm7, %v745_v13, %v1004_v39  ;;  %v1269_v4 = vld [vmem:[%s7914_s4] sm:$0x3] }
 0x182   :  { %v1198_v36 = vpack.c.bf16 %v1130_v25, %v1126_v57  ;;  %v1125_v58 = vsel %vm869_vm1, %v6793_v61, %v997_v60  ;;  %vm882_vm14 = vcmp.gt.f32.partialorder %v562_v10, 0.0  ;;  %v1010_v62 = vmul.f32 0.2, %v562_v10  ;;  %v2179_v42 = vld [vmem:[%s7915_s5] sm:$0x3] }
 0x183   :  { %vm884_vm15 = vcmp.gt.f32.partialorder %v755_v56, 0.0  ;;  %v1012_v59 = vmul.f32 0.2, %v755_v56  ;;  %v1200_v46 = vpack.c.bf16 %v1132_v40, %v1128_v27  ;;  %v1129_v20 = vsel %vm873_vm4, %v6812_v0, %v1001_v1 }
 0x184   :  { %1773 = vmatprep.mubr.bf16.mxu1 %v1198_v36  ;;  %v1127_v15 = vsel %vm871_vm3, %v6797_v19, %v6820_v44  ;;  %v1131_v47 = vsel %vm875_vm5, %v6815_v17, %v1003_v37  ;;  %v1197_v14 = vpack.c.bf16 %v1129_v20, %v1125_v58  ;;  %v1134_v22 = vsel %vm878_vm10, %v558_v35, %v1006_v8 }
 0x185   :  { %v1199_v61 = vpack.c.bf16 %v1131_v47, %v1127_v15  ;;  %v1138_v16 = vsel %vm882_vm14, %v562_v10, %v1010_v62  ;;  %1966 = vmatprep.mubr.bf16.mxu0 %v1200_v46  ;;  %v1136_v28 = vsel %vm880_vm11, %v751_v63, %v1008_v45  ;;  %v1140_v30 = vsel %vm884_vm15, %v755_v56, %v1012_v59 }
 0x186   :  { %v1202_v43 = vpack.c.bf16 %v1138_v16, %v1134_v22  ;;  %1774 = vmatmul.mubr.bf16.gmra.mrb[120].mxu1 %v1197_v14  ;;  %v1204_v0 = vpack.c.bf16 %v1140_v30, %v1136_v28  ;;  %v1133_v60 = vsel %vm877_vm8, %v556_v12, %v1005_v26  ;;  %v1137_v19 = vsel %vm881_vm12, %v560_v33, %v1009_v32 }
 0x187   :  { %1967 = vmatmul.mubr.bf16.gmra.mrb[120].mxu0 %v1199_v61  ;;  %v12_v17 = vstv %s7913_s6  ;;  %v1201_v44 = vpack.c.bf16 %v1137_v19, %v1133_v60  ;;  %v1135_v24 = vsel %vm879_vm9, %v749_v7, %v1007_v11  ;;  %v1139_v34 = vsel %vm883_vm13, %v753_v18, %v1011_v23 }
 0x188   :  { %1783 = vmatprep.mubr.bf16.mxu1 %v1202_v43  ;;  %13 = vst [vmem:[#allocation2] sm:$0x1] %v12_v17  ;;  %1976 = vmatprep.mubr.bf16.mxu0 %v1204_v0  ;;  %v1203_v1 = vpack.c.bf16 %v1139_v34, %v1135_v24  ;;  %v6906_v13 = vrot.slane %v1269_v4, %v6148_v52 }
 0x189   :  { %v6909_v2 = vrot.slane %v1269_v4, %v6157_v54  ;;  %v6919_v35 = vrot.slane %v2179_v42, %v6148_v52  ;;  %v6922_v18 = vrot.slane %v2179_v42, %v6157_v54 }
 0x18e   :  { %1784 = vmatmul.mubr.bf16.gmra.mrb[124].mxu1 %v1201_v44 }
 0x18f   :  { %1977 = vmatmul.mubr.bf16.gmra.mrb[124].mxu0 %v1203_v1  ;;  %v2351_v37 = vld [vmem:[#allocation2] sm:$0x1] }
 0x190   :  { %2354 = vperm.xlu1 %5570, %v2351_v37  }
 0x1d8   :  { %v1635_v38 = vpop.f32.mrb[64].mxu1 }
 0x1d9   :  { %v1828_v49 = vpop.f32.mrb[64].mxu0  ;;  %v1636_v29 = vadd.f32 %v1635_v38, %v6906_v13  ;;  %v1637_v31 = vpop.f32.mrb[65].mxu1 }
 0x1da   :  { %v1830_v48 = vpop.f32.mrb[65].mxu0  ;;  %v1638_v39 = vadd.f32 %v1637_v31, %v6909_v2  ;;  %v1639_v9 = vpop.f32.mrb[66].mxu1 }
 0x1db   :  { %v1832_v41 = vpop.f32.mrb[66].mxu0  ;;  %v1829_v21 = vadd.f32 %v1828_v49, %v1636_v29  ;;  %v1640_v6 = vadd.f32 %v1639_v9, %v6906_v13  ;;  %v1641_v3 = vpop.f32.mrb[67].mxu1 }
 0x1dc   :  { %v1834_v5 = vpop.f32.mrb[67].mxu0  ;;  %v1831_v12 = vadd.f32 %v1830_v48, %v1638_v39  ;;  %v1642_v7 = vadd.f32 %v1641_v3, %v6909_v2 }
 0x1dd   :  { %vm1987_vm0 = vcmp.gt.f32.partialorder %v1829_v21, 0.0  ;;  %v2051_v63 = vmul.f32 0.2, %v1829_v21  ;;  %v1833_v33 = vadd.f32 %v1832_v41, %v1640_v6 }
 0x1de   :  { %vm1988_vm1 = vcmp.gt.f32.partialorder %v1831_v12, 0.0  ;;  %v2052_v26 = vmul.f32 0.2, %v1831_v12  ;;  %v1835_v11 = vadd.f32 %v1834_v5, %v1642_v7 }
 0x1df   :  { %vm1989_vm2 = vcmp.gt.f32.partialorder %v1833_v33, 0.0  ;;  %v2053_v8 = vmul.f32 0.2, %v1833_v33  ;;  %v2115_v45 = vsel %vm1987_vm0, %v1829_v21, %v2051_v63 }
 0x1e0   :  { %vm1990_vm3 = vcmp.gt.f32.partialorder %v1835_v11, 0.0  ;;  %v2054_v32 = vmul.f32 0.2, %v1835_v11  ;;  %v1645_v23 = vpop.f32.mrb[68].mxu1  ;;  %v2116_v56 = vsel %vm1988_vm1, %v1831_v12, %v2052_v26  ;;  %v2191_v57 = vmul.f32 %v6919_v35, %v2115_v45 }
 0x1e1   :  { %v1838_v10 = vpop.f32.mrb[68].mxu0  ;;  %v1646_v25 = vadd.f32 %v1645_v23, %v6906_v13  ;;  %v1647_v36 = vpop.f32.mrb[69].mxu1  ;;  %v2192_v40 = vmul.f32 %v6922_v18, %v2116_v56  ;;  %v2117_v58 = vsel %vm1989_vm2, %v1833_v33, %v2053_v8 }
 0x1e2   :  { %v1840_v27 = vpop.f32.mrb[69].mxu0  ;;  %v1648_v62 = vadd.f32 %v1647_v36, %v6909_v2  ;;  %v1649_v59 = vpop.f32.mrb[70].mxu1  ;;  %v2118_v20 = vsel %vm1990_vm3, %v1835_v11, %v2054_v32  ;;  %v2193_v15 = vmul.f32 %v6919_v35, %v2117_v58 }
 0x1e3   :  { %v1842_v46 = vpop.f32.mrb[70].mxu0  ;;  %v1839_v47 = vadd.f32 %v1838_v10, %v1646_v25  ;;  %v1650_v14 = vadd.f32 %v1649_v59, %v6906_v13  ;;  %v1651_v61 = vpop.f32.mrb[71].mxu1  ;;  %v2255_v16 = vadd.f32 %v2192_v40, %v2191_v57  ;;  %v2194_v43 = vmul.f32 %v6922_v18, %v2118_v20 }
 0x1e4   :  { %v1844_v22 = vpop.f32.mrb[71].mxu0  ;;  %v1841_v28 = vadd.f32 %v1840_v27, %v1648_v62  ;;  %v1652_v30 = vadd.f32 %v1651_v61, %v6909_v2 }
 0x1e5   :  { %vm1991_vm4 = vcmp.gt.f32.partialorder %v1839_v47, 0.0  ;;  %v2055_v0 = vmul.f32 0.2, %v1839_v47  ;;  %v1843_v60 = vadd.f32 %v1842_v46, %v1650_v14  ;;  %2256 = vadd.xlane.f32.xlu0 %v2255_v16  ;;  %v2258_v19 = vadd.f32 %v2194_v43, %v2193_v15 }
 0x1e6   :  { %vm1992_vm5 = vcmp.gt.f32.partialorder %v1841_v28, 0.0  ;;  %v2056_v17 = vmul.f32 0.2, %v1841_v28  ;;  %v1845_v44 = vadd.f32 %v1844_v22, %v1652_v30 }
 0x1e7   :  { %vm1993_vm6 = vcmp.gt.f32.partialorder %v1843_v60, 0.0  ;;  %v2057_v24 = vmul.f32 0.2, %v1843_v60  ;;  %v2119_v34 = vsel %vm1991_vm4, %v1839_v47, %v2055_v0 }
 0x1e8   :  { %vm1994_vm7 = vcmp.gt.f32.partialorder %v1845_v44, 0.0  ;;  %v2058_v1 = vmul.f32 0.2, %v1845_v44  ;;  %v2120_v37 = vsel %vm1992_vm5, %v1841_v28, %v2056_v17  ;;  %v2195_v4 = vmul.f32 %v6919_v35, %v2119_v34  ;;  %v1655_v38 = vpop.f32.mrb[72].mxu1 }
 0x1e9   :  { %2259 = vadd.xlane.f32.xlu0 %v2258_v19  ;;  %v2196_v49 = vmul.f32 %v6922_v18, %v2120_v37  ;;  %v2121_v29 = vsel %vm1993_vm6, %v1843_v60, %v2057_v24  ;;  %v1656_v31 = vadd.f32 %v1655_v38, %v6906_v13  ;;  %v1657_v48 = vpop.f32.mrb[73].mxu1 }
 0x1ea   :  { %v2122_v42 = vsel %vm1994_vm7, %v1845_v44, %v2058_v1  ;;  %v2197_v39 = vmul.f32 %v6919_v35, %v2121_v29  ;;  %v1658_v9 = vadd.f32 %v1657_v48, %v6909_v2  ;;  %v1659_v41 = vpop.f32.mrb[74].mxu1 }
 0x1eb   :  { %v2261_v21 = vadd.f32 %v2196_v49, %v2195_v4  ;;  %v2198_v6 = vmul.f32 %v6922_v18, %v2122_v42  ;;  %v1660_v3 = vadd.f32 %v1659_v41, %v6906_v13  ;;  %v1661_v5 = vpop.f32.mrb[75].mxu1 }
 0x1ec   :  { %v1848_v12 = vpop.f32.mrb[72].mxu0  ;;  %v1662_v7 = vadd.f32 %v1661_v5, %v6909_v2 }
 0x1ed   :  { %2262 = vadd.xlane.f32.xlu1 %v2261_v21  ;;  %v2264_v63 = vadd.f32 %v2198_v6, %v2197_v39  ;;  %v1849_v33 = vadd.f32 %v1848_v12, %v1656_v31  ;;  %v1850_v26 = vpop.f32.mrb[73].mxu0 }
 0x1ee   :  { %v1851_v11 = vadd.f32 %v1850_v26, %v1658_v9  ;;  %v1852_v8 = vpop.f32.mrb[74].mxu0 }
 0x1ef   :  { %vm1995_vm8 = vcmp.gt.f32.partialorder %v1849_v33, 0.0  ;;  %v2059_v45 = vmul.f32 0.2, %v1849_v33  ;;  %v1853_v32 = vadd.f32 %v1852_v8, %v1660_v3  ;;  %v1854_v23 = vpop.f32.mrb[75].mxu0 }
 0x1f0   :  { %vm1996_vm9 = vcmp.gt.f32.partialorder %v1851_v11, 0.0  ;;  %v2060_v10 = vmul.f32 0.2, %v1851_v11  ;;  %v1855_v56 = vadd.f32 %v1854_v23, %v1662_v7 }
 0x1f1   :  { %2265 = vadd.xlane.f32.xlu1 %v2264_v63  ;;  %vm1997_vm10 = vcmp.gt.f32.partialorder %v1853_v32, 0.0  ;;  %v2061_v57 = vmul.f32 0.2, %v1853_v32  ;;  %v2123_v25 = vsel %vm1995_vm8, %v1849_v33, %v2059_v45 }
 0x1f2   :  { %vm1998_vm11 = vcmp.gt.f32.partialorder %v1855_v56, 0.0  ;;  %v2062_v36 = vmul.f32 0.2, %v1855_v56  ;;  %v2124_v27 = vsel %vm1996_vm9, %v1851_v11, %v2060_v10  ;;  %v2199_v40 = vmul.f32 %v6919_v35, %v2123_v25 }
 0x1f3   :  { %v2200_v58 = vmul.f32 %v6922_v18, %v2124_v27  ;;  %v2125_v62 = vsel %vm1997_vm10, %v1853_v32, %v2061_v57 }
 0x1f4   :  { %v1665_v59 = vpop.f32.mrb[76].mxu1  ;;  %v1858_v46 = vpop.f32.mrb[76].mxu0  ;;  %v2126_v20 = vsel %vm1998_vm11, %v1855_v56, %v2062_v36  ;;  %v2201_v15 = vmul.f32 %v6919_v35, %v2125_v62 }
 0x1f5   :  { %v1666_v47 = vadd.f32 %v1665_v59, %v6906_v13  ;;  %v1667_v14 = vpop.f32.mrb[77].mxu1  ;;  %v1860_v61 = vpop.f32.mrb[77].mxu0  ;;  %v2267_v22 = vadd.f32 %v2200_v58, %v2199_v40  ;;  %v2202_v16 = vmul.f32 %v6922_v18, %v2126_v20 }
 0x1f6   :  { %v1668_v43 = vadd.f32 %v1667_v14, %v6909_v2  ;;  %v1669_v28 = vpop.f32.mrb[78].mxu1  ;;  %v1862_v30 = vpop.f32.mrb[78].mxu0 }
 0x1f7   :  { %v1859_v0 = vadd.f32 %v1858_v46, %v1666_v47  ;;  %v1670_v60 = vadd.f32 %v1669_v28, %v6906_v13  ;;  %v1671_v19 = vpop.f32.mrb[79].mxu1  ;;  %v1864_v17 = vpop.f32.mrb[79].mxu0  ;;  %2268 = vadd.xlane.f32.xlu0 %v2267_v22  ;;  %v2270_v44 = vadd.f32 %v2202_v16, %v2201_v15 }
 0x1f8   :  { %v1861_v24 = vadd.f32 %v1860_v61, %v1668_v43  ;;  %v1672_v34 = vadd.f32 %v1671_v19, %v6909_v2 }
 0x1f9   :  { %vm1999_vm12 = vcmp.gt.f32.partialorder %v1859_v0, 0.0  ;;  %v2063_v1 = vmul.f32 0.2, %v1859_v0  ;;  %v1863_v37 = vadd.f32 %v1862_v30, %v1670_v60  ;;  %2271 = vadd.xlane.f32.xlu1 %v2270_v44 }
 0x1fa   :  { %vm2000_vm13 = vcmp.gt.f32.partialorder %v1861_v24, 0.0  ;;  %v2064_v4 = vmul.f32 0.2, %v1861_v24  ;;  %v1865_v38 = vadd.f32 %v1864_v17, %v1672_v34 }
 0x1fb   :  { %vm2001_vm14 = vcmp.gt.f32.partialorder %v1863_v37, 0.0  ;;  %v2065_v49 = vmul.f32 0.2, %v1863_v37  ;;  %v2127_v29 = vsel %vm1999_vm12, %v1859_v0, %v2063_v1 }
 0x1fc   :  { %vm2002_vm15 = vcmp.gt.f32.partialorder %v1865_v38, 0.0  ;;  %v2066_v31 = vmul.f32 0.2, %v1865_v38  ;;  %v2128_v48 = vsel %vm2000_vm13, %v1861_v24, %v2064_v4  ;;  %v2203_v42 = vmul.f32 %v6919_v35, %v2127_v29 }
 0x1fd   :  { %v1675_v39 = vpop.f32.mrb[80].mxu1  ;;  %v1868_v9 = vpop.f32.mrb[80].mxu0  ;;  %v2204_v41 = vmul.f32 %v6922_v18, %v2128_v48  ;;  %v2129_v21 = vsel %vm2001_vm14, %v1863_v37, %v2065_v49 }
 0x1fe   :  { %v1676_v6 = vadd.f32 %v1675_v39, %v6906_v13  ;;  %v1677_v3 = vpop.f32.mrb[81].mxu1  ;;  %v1870_v5 = vpop.f32.mrb[81].mxu0  ;;  %v2130_v12 = vsel %vm2002_vm15, %v1865_v38, %v2066_v31  ;;  %v2205_v7 = vmul.f32 %v6919_v35, %v2129_v21 }
 0x1ff   :  { %v1678_v63 = vadd.f32 %v1677_v3, %v6909_v2  ;;  %v1679_v33 = vpop.f32.mrb[82].mxu1  ;;  %v1872_v26 = vpop.f32.mrb[82].mxu0  ;;  %v2273_v11 = vadd.f32 %v2204_v41, %v2203_v42  ;;  %v2206_v8 = vmul.f32 %v6922_v18, %v2130_v12 }
 0x200   :  { %v1869_v45 = vadd.f32 %v1868_v9, %v1676_v6  ;;  %v1680_v32 = vadd.f32 %v1679_v33, %v6906_v13  ;;  %v1681_v23 = vpop.f32.mrb[83].mxu1  ;;  %v1874_v10 = vpop.f32.mrb[83].mxu0 }
 0x201   :  { %v1871_v56 = vadd.f32 %v1870_v5, %v1678_v63  ;;  %v1682_v57 = vadd.f32 %v1681_v23, %v6909_v2  ;;  %2274 = vadd.xlane.f32.xlu0 %v2273_v11  ;;  %v2276_v25 = vadd.f32 %v2206_v8, %v2205_v7 }
 0x202   :  { %vm2003_vm0 = vcmp.gt.f32.partialorder %v1869_v45, 0.0  ;;  %v2067_v36 = vmul.f32 0.2, %v1869_v45  ;;  %v1873_v27 = vadd.f32 %v1872_v26, %v1680_v32 }
 0x203   :  { %vm2004_vm1 = vcmp.gt.f32.partialorder %v1871_v56, 0.0  ;;  %v2068_v40 = vmul.f32 0.2, %v1871_v56  ;;  %v1875_v58 = vadd.f32 %v1874_v10, %v1682_v57  ;;  %2277 = vadd.xlane.f32.xlu1 %v2276_v25 }
 0x204   :  { %vm2005_vm2 = vcmp.gt.f32.partialorder %v1873_v27, 0.0  ;;  %v2069_v62 = vmul.f32 0.2, %v1873_v27  ;;  %v2131_v59 = vsel %vm2003_vm0, %v1869_v45, %v2067_v36 }
 0x205   :  { %vm2006_vm3 = vcmp.gt.f32.partialorder %v1875_v58, 0.0  ;;  %v2070_v46 = vmul.f32 0.2, %v1875_v58  ;;  %v2132_v20 = vsel %vm2004_vm1, %v1871_v56, %v2068_v40  ;;  %v2207_v15 = vmul.f32 %v6919_v35, %v2131_v59 }
 0x206   :  { %v1685_v47 = vpop.f32.mrb[84].mxu1  ;;  %v1878_v14 = vpop.f32.mrb[84].mxu0  ;;  %v2208_v61 = vmul.f32 %v6922_v18, %v2132_v20  ;;  %v2133_v22 = vsel %vm2005_vm2, %v1873_v27, %v2069_v62 }
 0x207   :  { %v1686_v16 = vadd.f32 %v1685_v47, %v6906_v13  ;;  %v1687_v43 = vpop.f32.mrb[85].mxu1  ;;  %v1880_v28 = vpop.f32.mrb[85].mxu0  ;;  %v2134_v30 = vsel %vm2006_vm3, %v1875_v58, %v2070_v46  ;;  %v2209_v0 = vmul.f32 %v6919_v35, %v2133_v22 }
 0x208   :  { %v1688_v60 = vadd.f32 %v1687_v43, %v6909_v2  ;;  %v1689_v19 = vpop.f32.mrb[86].mxu1  ;;  %v1882_v17 = vpop.f32.mrb[86].mxu0  ;;  %v2279_v44 = vadd.f32 %v2208_v61, %v2207_v15  ;;  %v2210_v24 = vmul.f32 %v6922_v18, %v2134_v30 }
 0x209   :  { %v1879_v34 = vadd.f32 %v1878_v14, %v1686_v16  ;;  %v1690_v1 = vadd.f32 %v1689_v19, %v6906_v13  ;;  %v1691_v37 = vpop.f32.mrb[87].mxu1  ;;  %v1884_v4 = vpop.f32.mrb[87].mxu0 }
 0x20a   :  { %v1881_v38 = vadd.f32 %v1880_v28, %v1688_v60  ;;  %v1692_v49 = vadd.f32 %v1691_v37, %v6909_v2  ;;  %2280 = vadd.xlane.f32.xlu0 %v2279_v44  ;;  %v2282_v29 = vadd.f32 %v2210_v24, %v2209_v0 }
 0x20b   :  { %vm2007_vm4 = vcmp.gt.f32.partialorder %v1879_v34, 0.0  ;;  %v2071_v31 = vmul.f32 0.2, %v1879_v34  ;;  %v1883_v48 = vadd.f32 %v1882_v17, %v1690_v1 }
 0x20c   :  { %vm2008_vm5 = vcmp.gt.f32.partialorder %v1881_v38, 0.0  ;;  %v2072_v42 = vmul.f32 0.2, %v1881_v38  ;;  %v1885_v39 = vadd.f32 %v1884_v4, %v1692_v49  ;;  %2283 = vadd.xlane.f32.xlu1 %v2282_v29 }
 0x20d   :  { %vm2009_vm6 = vcmp.gt.f32.partialorder %v1883_v48, 0.0  ;;  %v2073_v9 = vmul.f32 0.2, %v1883_v48  ;;  %v2135_v41 = vsel %vm2007_vm4, %v1879_v34, %v2071_v31 }
 0x20e   :  { %vm2010_vm7 = vcmp.gt.f32.partialorder %v1885_v39, 0.0  ;;  %v2074_v21 = vmul.f32 0.2, %v1885_v39  ;;  %v2136_v6 = vsel %vm2008_vm5, %v1881_v38, %v2072_v42  ;;  %v2211_v3 = vmul.f32 %v6919_v35, %v2135_v41 }
 0x20f   :  { %v1695_v5 = vpop.f32.mrb[88].mxu1  ;;  %v1888_v12 = vpop.f32.mrb[88].mxu0  ;;  %v2212_v7 = vmul.f32 %v6922_v18, %v2136_v6  ;;  %v2137_v63 = vsel %vm2009_vm6, %v1883_v48, %v2073_v9 }
 0x210   :  { %v1696_v33 = vadd.f32 %v1695_v5, %v6906_v13  ;;  %v1697_v26 = vpop.f32.mrb[89].mxu1  ;;  %v1890_v11 = vpop.f32.mrb[89].mxu0  ;;  %v2138_v8 = vsel %vm2010_vm7, %v1885_v39, %v2074_v21  ;;  %v2213_v45 = vmul.f32 %v6919_v35, %v2137_v63 }
 0x211   :  { %v1698_v32 = vadd.f32 %v1697_v26, %v6909_v2  ;;  %v1699_v23 = vpop.f32.mrb[90].mxu1  ;;  %v1892_v10 = vpop.f32.mrb[90].mxu0  ;;  %v2285_v56 = vadd.f32 %v2212_v7, %v2211_v3  ;;  %v2214_v57 = vmul.f32 %v6922_v18, %v2138_v8 }
 0x212   :  { %v1889_v25 = vadd.f32 %v1888_v12, %v1696_v33  ;;  %v1700_v36 = vadd.f32 %v1699_v23, %v6906_v13  ;;  %v1701_v27 = vpop.f32.mrb[91].mxu1  ;;  %v1894_v40 = vpop.f32.mrb[91].mxu0 }
 0x213   :  { %v1891_v58 = vadd.f32 %v1890_v11, %v1698_v32  ;;  %v1702_v62 = vadd.f32 %v1701_v27, %v6909_v2  ;;  %2286 = vadd.xlane.f32.xlu0 %v2285_v56  ;;  %v2288_v59 = vadd.f32 %v2214_v57, %v2213_v45 }
 0x214   :  { %vm2011_vm8 = vcmp.gt.f32.partialorder %v1889_v25, 0.0  ;;  %v2075_v46 = vmul.f32 0.2, %v1889_v25  ;;  %v1893_v20 = vadd.f32 %v1892_v10, %v1700_v36 }
 0x215   :  { %vm2012_vm9 = vcmp.gt.f32.partialorder %v1891_v58, 0.0  ;;  %v2076_v15 = vmul.f32 0.2, %v1891_v58  ;;  %v1895_v47 = vadd.f32 %v1894_v40, %v1702_v62  ;;  %2289 = vadd.xlane.f32.xlu1 %v2288_v59 }
 0x216   :  { %vm2013_vm10 = vcmp.gt.f32.partialorder %v1893_v20, 0.0  ;;  %v2077_v14 = vmul.f32 0.2, %v1893_v20  ;;  %v2139_v61 = vsel %vm2011_vm8, %v1889_v25, %v2075_v46 }
 0x217   :  { %vm2014_vm11 = vcmp.gt.f32.partialorder %v1895_v47, 0.0  ;;  %v2078_v22 = vmul.f32 0.2, %v1895_v47  ;;  %v2140_v16 = vsel %vm2012_vm9, %v1891_v58, %v2076_v15  ;;  %v2215_v43 = vmul.f32 %v6919_v35, %v2139_v61 }
 0x218   :  { %v1705_v28 = vpop.f32.mrb[92].mxu1  ;;  %v1898_v30 = vpop.f32.mrb[92].mxu0  ;;  %v2216_v0 = vmul.f32 %v6922_v18, %v2140_v16  ;;  %v2141_v60 = vsel %vm2013_vm10, %v1893_v20, %v2077_v14 }
 0x219   :  { %v1706_v19 = vadd.f32 %v1705_v28, %v6906_v13  ;;  %v1707_v17 = vpop.f32.mrb[93].mxu1  ;;  %v1900_v44 = vpop.f32.mrb[93].mxu0  ;;  %v2142_v24 = vsel %vm2014_vm11, %v1895_v47, %v2078_v22  ;;  %v2217_v34 = vmul.f32 %v6919_v35, %v2141_v60 }
 0x21a   :  { %v1708_v1 = vadd.f32 %v1707_v17, %v6909_v2  ;;  %v1709_v37 = vpop.f32.mrb[94].mxu1  ;;  %v1902_v4 = vpop.f32.mrb[94].mxu0  ;;  %v2291_v38 = vadd.f32 %v2216_v0, %v2215_v43  ;;  %v2218_v49 = vmul.f32 %v6922_v18, %v2142_v24 }
 0x21b   :  { %v1899_v29 = vadd.f32 %v1898_v30, %v1706_v19  ;;  %v1710_v31 = vadd.f32 %v1709_v37, %v6906_v13  ;;  %v1711_v48 = vpop.f32.mrb[95].mxu1  ;;  %v1904_v42 = vpop.f32.mrb[95].mxu0 }
 0x21c   :  { %v1901_v39 = vadd.f32 %v1900_v44, %v1708_v1  ;;  %v1712_v9 = vadd.f32 %v1711_v48, %v6909_v2  ;;  %2292 = vadd.xlane.f32.xlu0 %v2291_v38  ;;  %v2294_v41 = vadd.f32 %v2218_v49, %v2217_v34 }
 0x21d   :  { %vm2015_vm12 = vcmp.gt.f32.partialorder %v1899_v29, 0.0  ;;  %v2079_v21 = vmul.f32 0.2, %v1899_v29  ;;  %v1903_v6 = vadd.f32 %v1902_v4, %v1710_v31 }
 0x21e   :  { %vm2016_vm13 = vcmp.gt.f32.partialorder %v1901_v39, 0.0  ;;  %v2080_v3 = vmul.f32 0.2, %v1901_v39  ;;  %v1905_v5 = vadd.f32 %v1904_v42, %v1712_v9  ;;  %2295 = vadd.xlane.f32.xlu1 %v2294_v41 }
 0x21f   :  { %vm2017_vm14 = vcmp.gt.f32.partialorder %v1903_v6, 0.0  ;;  %v2081_v12 = vmul.f32 0.2, %v1903_v6  ;;  %v2143_v7 = vsel %vm2015_vm12, %v1899_v29, %v2079_v21 }
 0x220   :  { %vm2018_vm15 = vcmp.gt.f32.partialorder %v1905_v5, 0.0  ;;  %v2082_v63 = vmul.f32 0.2, %v1905_v5  ;;  %v2144_v33 = vsel %vm2016_vm13, %v1901_v39, %v2080_v3  ;;  %v2219_v26 = vmul.f32 %v6919_v35, %v2143_v7 }
 0x221   :  { %v1715_v11 = vpop.f32.mrb[96].mxu1  ;;  %v1908_v8 = vpop.f32.mrb[96].mxu0  ;;  %v2220_v45 = vmul.f32 %v6922_v18, %v2144_v33  ;;  %v2145_v32 = vsel %vm2017_vm14, %v1903_v6, %v2081_v12 }
 0x222   :  { %v1716_v23 = vadd.f32 %v1715_v11, %v6906_v13  ;;  %v1717_v10 = vpop.f32.mrb[97].mxu1  ;;  %v1910_v56 = vpop.f32.mrb[97].mxu0  ;;  %v2146_v57 = vsel %vm2018_vm15, %v1905_v5, %v2082_v63  ;;  %v2221_v25 = vmul.f32 %v6919_v35, %v2145_v32 }
 0x223   :  { %v1718_v36 = vadd.f32 %v1717_v10, %v6909_v2  ;;  %v1719_v27 = vpop.f32.mrb[98].mxu1  ;;  %v1912_v40 = vpop.f32.mrb[98].mxu0  ;;  %v2297_v58 = vadd.f32 %v2220_v45, %v2219_v26  ;;  %v2222_v62 = vmul.f32 %v6922_v18, %v2146_v57 }
 0x224   :  { %v1909_v59 = vadd.f32 %v1908_v8, %v1716_v23  ;;  %v1720_v46 = vadd.f32 %v1719_v27, %v6906_v13  ;;  %v1721_v20 = vpop.f32.mrb[99].mxu1  ;;  %v1914_v15 = vpop.f32.mrb[99].mxu0 }
 0x225   :  { %v1911_v47 = vadd.f32 %v1910_v56, %v1718_v36  ;;  %v1722_v14 = vadd.f32 %v1721_v20, %v6909_v2  ;;  %2298 = vadd.xlane.f32.xlu0 %v2297_v58  ;;  %v2300_v61 = vadd.f32 %v2222_v62, %v2221_v25 }
 0x226   :  { %vm2019_vm0 = vcmp.gt.f32.partialorder %v1909_v59, 0.0  ;;  %v2083_v22 = vmul.f32 0.2, %v1909_v59  ;;  %v1913_v16 = vadd.f32 %v1912_v40, %v1720_v46 }
 0x227   :  { %vm2020_vm1 = vcmp.gt.f32.partialorder %v1911_v47, 0.0  ;;  %v2084_v43 = vmul.f32 0.2, %v1911_v47  ;;  %v1915_v28 = vadd.f32 %v1914_v15, %v1722_v14  ;;  %2301 = vadd.xlane.f32.xlu1 %v2300_v61 }
 0x228   :  { %vm2021_vm2 = vcmp.gt.f32.partialorder %v1913_v16, 0.0  ;;  %v2085_v30 = vmul.f32 0.2, %v1913_v16  ;;  %v2147_v0 = vsel %vm2019_vm0, %v1909_v59, %v2083_v22 }
 0x229   :  { %vm2022_vm3 = vcmp.gt.f32.partialorder %v1915_v28, 0.0  ;;  %v2086_v60 = vmul.f32 0.2, %v1915_v28  ;;  %v2148_v19 = vsel %vm2020_vm1, %v1911_v47, %v2084_v43  ;;  %v2223_v17 = vmul.f32 %v6919_v35, %v2147_v0 }
 0x22a   :  { %v1725_v44 = vpop.f32.mrb[100].mxu1  ;;  %v1918_v24 = vpop.f32.mrb[100].mxu0  ;;  %v2224_v34 = vmul.f32 %v6922_v18, %v2148_v19  ;;  %v2149_v1 = vsel %vm2021_vm2, %v1913_v16, %v2085_v30 }
 0x22b   :  { %v1726_v37 = vadd.f32 %v1725_v44, %v6906_v13  ;;  %v1727_v4 = vpop.f32.mrb[101].mxu1  ;;  %v1920_v38 = vpop.f32.mrb[101].mxu0  ;;  %v2150_v49 = vsel %vm2022_vm3, %v1915_v28, %v2086_v60  ;;  %v2225_v29 = vmul.f32 %v6919_v35, %v2149_v1 }
 0x22c   :  { %v1728_v31 = vadd.f32 %v1727_v4, %v6909_v2  ;;  %v1729_v48 = vpop.f32.mrb[102].mxu1  ;;  %v1922_v42 = vpop.f32.mrb[102].mxu0  ;;  %v2303_v39 = vadd.f32 %v2224_v34, %v2223_v17  ;;  %v2226_v9 = vmul.f32 %v6922_v18, %v2150_v49 }
 0x22d   :  { %v1919_v41 = vadd.f32 %v1918_v24, %v1726_v37  ;;  %v1730_v21 = vadd.f32 %v1729_v48, %v6906_v13  ;;  %v1731_v6 = vpop.f32.mrb[103].mxu1  ;;  %v1924_v3 = vpop.f32.mrb[103].mxu0 }
 0x22e   :  { %v1921_v5 = vadd.f32 %v1920_v38, %v1728_v31  ;;  %v1732_v12 = vadd.f32 %v1731_v6, %v6909_v2  ;;  %2304 = vadd.xlane.f32.xlu0 %v2303_v39  ;;  %v2306_v7 = vadd.f32 %v2226_v9, %v2225_v29 }
 0x22f   :  { %vm2023_vm4 = vcmp.gt.f32.partialorder %v1919_v41, 0.0  ;;  %v2087_v63 = vmul.f32 0.2, %v1919_v41  ;;  %v1923_v33 = vadd.f32 %v1922_v42, %v1730_v21 }
 0x230   :  { %vm2024_vm5 = vcmp.gt.f32.partialorder %v1921_v5, 0.0  ;;  %v2088_v26 = vmul.f32 0.2, %v1921_v5  ;;  %v1925_v11 = vadd.f32 %v1924_v3, %v1732_v12  ;;  %2307 = vadd.xlane.f32.xlu1 %v2306_v7 }
 0x231   :  { %vm2025_vm6 = vcmp.gt.f32.partialorder %v1923_v33, 0.0  ;;  %v2089_v8 = vmul.f32 0.2, %v1923_v33  ;;  %v2151_v45 = vsel %vm2023_vm4, %v1919_v41, %v2087_v63 }
 0x232   :  { %vm2026_vm7 = vcmp.gt.f32.partialorder %v1925_v11, 0.0  ;;  %v2090_v32 = vmul.f32 0.2, %v1925_v11  ;;  %v2152_v23 = vsel %vm2024_vm5, %v1921_v5, %v2088_v26  ;;  %v2227_v10 = vmul.f32 %v6919_v35, %v2151_v45 }
 0x233   :  { %v1735_v56 = vpop.f32.mrb[104].mxu1  ;;  %v2228_v25 = vmul.f32 %v6922_v18, %v2152_v23  ;;  %v2153_v36 = vsel %vm2025_vm6, %v1923_v33, %v2089_v8 }
 0x234   :  { %v1928_v57 = vpop.f32.mrb[104].mxu0  ;;  %v1736_v27 = vadd.f32 %v1735_v56, %v6906_v13  ;;  %v1737_v40 = vpop.f32.mrb[105].mxu1  ;;  %v2154_v62 = vsel %vm2026_vm7, %v1925_v11, %v2090_v32  ;;  %v2229_v59 = vmul.f32 %v6919_v35, %v2153_v36 }
 0x235   :  { %v1930_v58 = vpop.f32.mrb[105].mxu0  ;;  %v1738_v46 = vadd.f32 %v1737_v40, %v6909_v2  ;;  %v1739_v20 = vpop.f32.mrb[106].mxu1  ;;  %v2309_v47 = vadd.f32 %v2228_v25, %v2227_v10  ;;  %v2230_v14 = vmul.f32 %v6922_v18, %v2154_v62 }
 0x236   :  { %v1932_v15 = vpop.f32.mrb[106].mxu0  ;;  %v1929_v61 = vadd.f32 %v1928_v57, %v1736_v27  ;;  %v1740_v22 = vadd.f32 %v1739_v20, %v6906_v13  ;;  %v1741_v16 = vpop.f32.mrb[107].mxu1 }
 0x237   :  { %v1934_v43 = vpop.f32.mrb[107].mxu0  ;;  %v1931_v28 = vadd.f32 %v1930_v58, %v1738_v46  ;;  %v1742_v30 = vadd.f32 %v1741_v16, %v6909_v2  ;;  %2310 = vadd.xlane.f32.xlu0 %v2309_v47  ;;  %v2312_v0 = vadd.f32 %v2230_v14, %v2229_v59 }
 0x238   :  { %vm2027_vm8 = vcmp.gt.f32.partialorder %v1929_v61, 0.0  ;;  %v2091_v60 = vmul.f32 0.2, %v1929_v61  ;;  %v1933_v19 = vadd.f32 %v1932_v15, %v1740_v22 }
 0x239   :  { %vm2028_vm9 = vcmp.gt.f32.partialorder %v1931_v28, 0.0  ;;  %v2092_v17 = vmul.f32 0.2, %v1931_v28  ;;  %v1935_v44 = vadd.f32 %v1934_v43, %v1742_v30  ;;  %2313 = vadd.xlane.f32.xlu1 %v2312_v0 }
 0x23a   :  { %vm2029_vm10 = vcmp.gt.f32.partialorder %v1933_v19, 0.0  ;;  %v2093_v24 = vmul.f32 0.2, %v1933_v19  ;;  %v2155_v34 = vsel %vm2027_vm8, %v1929_v61, %v2091_v60 }
 0x23b   :  { %vm2030_vm11 = vcmp.gt.f32.partialorder %v1935_v44, 0.0  ;;  %v2094_v1 = vmul.f32 0.2, %v1935_v44  ;;  %v2156_v37 = vsel %vm2028_vm9, %v1931_v28, %v2092_v17  ;;  %v2231_v4 = vmul.f32 %v6919_v35, %v2155_v34 }
 0x23c   :  { %v1745_v38 = vpop.f32.mrb[108].mxu1  ;;  %v2232_v29 = vmul.f32 %v6922_v18, %v2156_v37  ;;  %v2157_v31 = vsel %vm2029_vm10, %v1933_v19, %v2093_v24 }
 0x23d   :  { %v1938_v49 = vpop.f32.mrb[108].mxu0  ;;  %v1746_v48 = vadd.f32 %v1745_v38, %v6906_v13  ;;  %v1747_v42 = vpop.f32.mrb[109].mxu1  ;;  %v2158_v9 = vsel %vm2030_vm11, %v1935_v44, %v2094_v1  ;;  %v2233_v41 = vmul.f32 %v6919_v35, %v2157_v31 }
 0x23e   :  { %v1940_v39 = vpop.f32.mrb[109].mxu0  ;;  %v1748_v21 = vadd.f32 %v1747_v42, %v6909_v2  ;;  %v1749_v6 = vpop.f32.mrb[110].mxu1  ;;  %v2315_v5 = vadd.f32 %v2232_v29, %v2231_v4  ;;  %v2234_v12 = vmul.f32 %v6922_v18, %v2158_v9 }
 0x23f   :  { %v1942_v3 = vpop.f32.mrb[110].mxu0  ;;  %v1939_v7 = vadd.f32 %v1938_v49, %v1746_v48  ;;  %v1750_v63 = vadd.f32 %v1749_v6, %v6906_v13  ;;  %v1751_v33 = vpop.f32.mrb[111].mxu1 }
 0x240   :  { %v1944_v26 = vpop.f32.mrb[111].mxu0  ;;  %v1941_v11 = vadd.f32 %v1940_v39, %v1748_v21  ;;  %v1752_v8 = vadd.f32 %v1751_v33, %v6909_v2  ;;  %2316 = vadd.xlane.f32.xlu0 %v2315_v5  ;;  %v2318_v45 = vadd.f32 %v2234_v12, %v2233_v41 }
 0x241   :  { %vm2031_vm12 = vcmp.gt.f32.partialorder %v1939_v7, 0.0  ;;  %v2095_v32 = vmul.f32 0.2, %v1939_v7  ;;  %v1943_v23 = vadd.f32 %v1942_v3, %v1750_v63 }
 0x242   :  { %vm2032_vm13 = vcmp.gt.f32.partialorder %v1941_v11, 0.0  ;;  %v2096_v10 = vmul.f32 0.2, %v1941_v11  ;;  %v1945_v56 = vadd.f32 %v1944_v26, %v1752_v8  ;;  %2319 = vadd.xlane.f32.xlu1 %v2318_v45 }
 0x243   :  { %vm2033_vm14 = vcmp.gt.f32.partialorder %v1943_v23, 0.0  ;;  %v2097_v57 = vmul.f32 0.2, %v1943_v23  ;;  %v2159_v25 = vsel %vm2031_vm12, %v1939_v7, %v2095_v32 }
 0x244   :  { %vm2034_vm15 = vcmp.gt.f32.partialorder %v1945_v56, 0.0  ;;  %v2098_v36 = vmul.f32 0.2, %v1945_v56  ;;  %v2160_v27 = vsel %vm2032_vm13, %v1941_v11, %v2096_v10  ;;  %v2235_v40 = vmul.f32 %v6919_v35, %v2159_v25 }
 0x245   :  { %v2236_v59 = vmul.f32 %v6922_v18, %v2160_v27  ;;  %v2161_v46 = vsel %vm2033_vm14, %v1943_v23, %v2097_v57 }
 0x246   :  { %v1755_v58 = vpop.f32.mrb[112].mxu1  ;;  %v2162_v14 = vsel %vm2034_vm15, %v1945_v56, %v2098_v36  ;;  %v2237_v61 = vmul.f32 %v6919_v35, %v2161_v46 }
 0x247   :  { %v1948_v62 = vpop.f32.mrb[112].mxu0  ;;  %v1756_v20 = vadd.f32 %v1755_v58, %v6906_v13  ;;  %v1757_v15 = vpop.f32.mrb[113].mxu1  ;;  %v2321_v28 = vadd.f32 %v2236_v59, %v2235_v40  ;;  %v2238_v30 = vmul.f32 %v6922_v18, %v2162_v14 }
 0x248   :  { %v1950_v47 = vpop.f32.mrb[113].mxu0  ;;  %v1758_v22 = vadd.f32 %v1757_v15, %v6909_v2  ;;  %v1759_v16 = vpop.f32.mrb[114].mxu1 }
 0x249   :  { %v1952_v43 = vpop.f32.mrb[114].mxu0  ;;  %v1949_v0 = vadd.f32 %v1948_v62, %v1756_v20  ;;  %v1760_v60 = vadd.f32 %v1759_v16, %v6906_v13  ;;  %v1761_v19 = vpop.f32.mrb[115].mxu1  ;;  %2322 = vadd.xlane.f32.xlu0 %v2321_v28  ;;  %v2324_v34 = vadd.f32 %v2238_v30, %v2237_v61 }
 0x24a   :  { %v1954_v17 = vpop.f32.mrb[115].mxu0  ;;  %v1951_v44 = vadd.f32 %v1950_v47, %v1758_v22  ;;  %v1762_v24 = vadd.f32 %v1761_v19, %v6909_v2 }
 0x24b   :  { %vm2035_vm0 = vcmp.gt.f32.partialorder %v1949_v0, 0.0  ;;  %v2099_v1 = vmul.f32 0.2, %v1949_v0  ;;  %v1953_v37 = vadd.f32 %v1952_v43, %v1760_v60 }
 0x24c   :  { %vm2036_vm1 = vcmp.gt.f32.partialorder %v1951_v44, 0.0  ;;  %v2100_v4 = vmul.f32 0.2, %v1951_v44  ;;  %v1955_v38 = vadd.f32 %v1954_v17, %v1762_v24 }
 0x24d   :  { %vm2037_vm2 = vcmp.gt.f32.partialorder %v1953_v37, 0.0  ;;  %v2101_v49 = vmul.f32 0.2, %v1953_v37  ;;  %v2163_v29 = vsel %vm2035_vm0, %v1949_v0, %v2099_v1  ;;  %2325 = vadd.xlane.f32.xlu0 %v2324_v34  ;;  %vm5124_vm0 = vcmask 130112  }
 0x24e   :  { %vm2038_vm3 = vcmp.gt.f32.partialorder %v1955_v38, 0.0  ;;  %v2102_v31 = vmul.f32 0.2, %v1955_v38  ;;  %v2164_v48 = vsel %vm2036_vm1, %v1951_v44, %v2100_v4  ;;  %v2239_v42 = vmul.f32 %v6919_v35, %v2163_v29 }
 0x24f   :  { %v2240_v41 = vmul.f32 %v6922_v18, %v2164_v48  ;;  %v2165_v21 = vsel %vm2037_vm2, %v1953_v37, %v2101_v49  ;;  %vm5131_vm1 = vcmask 195712   ;;  %vm5138_vm2 = vcmask 261312  }
 0x250   :  { %v1765_v39 = vpop.f32.mrb[116].mxu1  ;;  %v2166_v12 = vsel %vm2038_vm3, %v1955_v38, %v2102_v31  ;;  %v2241_v7 = vmul.f32 %v6919_v35, %v2165_v21  ;;  %vm5145_vm3 = vcmask 326912  }
 0x251   :  { %v1958_v9 = vpop.f32.mrb[116].mxu0  ;;  %v1766_v6 = vadd.f32 %v1765_v39, %v6906_v13  ;;  %v1767_v3 = vpop.f32.mrb[117].mxu1  ;;  %v2327_v11 = vadd.f32 %v2240_v41, %v2239_v42  ;;  %v2242_v8 = vmul.f32 %v6922_v18, %v2166_v12 }
 0x252   :  { %v1960_v5 = vpop.f32.mrb[117].mxu0  ;;  %v1768_v63 = vadd.f32 %v1767_v3, %v6909_v2  ;;  %v1769_v33 = vpop.f32.mrb[118].mxu1 }
 0x253   :  { %v1962_v26 = vpop.f32.mrb[118].mxu0  ;;  %v1959_v45 = vadd.f32 %v1958_v9, %v1766_v6  ;;  %v1770_v32 = vadd.f32 %v1769_v33, %v6906_v13  ;;  %v1771_v23 = vpop.f32.mrb[119].mxu1  ;;  %2328 = vadd.xlane.f32.xlu0 %v2327_v11  ;;  %v2330_v25 = vadd.f32 %v2242_v8, %v2241_v7 }
 0x254   :  { %v1964_v10 = vpop.f32.mrb[119].mxu0  ;;  %v1961_v56 = vadd.f32 %v1960_v5, %v1768_v63  ;;  %v1772_v57 = vadd.f32 %v1771_v23, %v6909_v2 }
 0x255   :  { %vm2039_vm4 = vcmp.gt.f32.partialorder %v1959_v45, 0.0  ;;  %v2103_v36 = vmul.f32 0.2, %v1959_v45  ;;  %v1963_v27 = vadd.f32 %v1962_v26, %v1770_v32 }
 0x256   :  { %vm2040_vm5 = vcmp.gt.f32.partialorder %v1961_v56, 0.0  ;;  %v2104_v40 = vmul.f32 0.2, %v1961_v56  ;;  %v1965_v58 = vadd.f32 %v1964_v10, %v1772_v57 }
 0x257   :  { %vm2041_vm6 = vcmp.gt.f32.partialorder %v1963_v27, 0.0  ;;  %v2105_v62 = vmul.f32 0.2, %v1963_v27  ;;  %v2167_v59 = vsel %vm2039_vm4, %v1959_v45, %v2103_v36  ;;  %2331 = vadd.xlane.f32.xlu0 %v2330_v25  ;;  %vm5152_vm4 = vcmask 392512  }
 0x258   :  { %vm2042_vm7 = vcmp.gt.f32.partialorder %v1965_v58, 0.0  ;;  %v2106_v46 = vmul.f32 0.2, %v1965_v58  ;;  %v2168_v20 = vsel %vm2040_vm5, %v1961_v56, %v2104_v40  ;;  %v2243_v15 = vmul.f32 %v6919_v35, %v2167_v59 }
 0x259   :  { %v1775_v47 = vpop.f32.mrb[120].mxu1  ;;  %v2244_v61 = vmul.f32 %v6922_v18, %v2168_v20  ;;  %v2169_v22 = vsel %vm2041_vm6, %v1963_v27, %v2105_v62  ;;  %vm5159_vm5 = vcmask 458112   ;;  %vm5166_vm6 = vcmask 523712  }
 0x25a   :  { %v1968_v14 = vpop.f32.mrb[120].mxu0  ;;  %v1776_v16 = vadd.f32 %v1775_v47, %v6906_v13  ;;  %v1777_v43 = vpop.f32.mrb[121].mxu1  ;;  %v2170_v30 = vsel %vm2042_vm7, %v1965_v58, %v2106_v46  ;;  %v2245_v0 = vmul.f32 %v6919_v35, %v2169_v22  ;;  %vm5173_vm7 = vcmask 589312  }
 0x25b   :  { %v1970_v28 = vpop.f32.mrb[121].mxu0  ;;  %v1778_v60 = vadd.f32 %v1777_v43, %v6909_v2  ;;  %v1779_v19 = vpop.f32.mrb[122].mxu1  ;;  %v2333_v44 = vadd.f32 %v2244_v61, %v2243_v15  ;;  %v2246_v24 = vmul.f32 %v6922_v18, %v2170_v30 }
 0x25c   :  { %v1972_v17 = vpop.f32.mrb[122].mxu0  ;;  %v1969_v34 = vadd.f32 %v1968_v14, %v1776_v16  ;;  %v1780_v1 = vadd.f32 %v1779_v19, %v6906_v13  ;;  %v1781_v37 = vpop.f32.mrb[123].mxu1  ;;  %v5733_v19 = vmov 1966171168  }
 0x25d   :  { %v1974_v4 = vpop.f32.mrb[123].mxu0  ;;  %v1971_v38 = vadd.f32 %v1970_v28, %v1778_v60  ;;  %v1782_v49 = vadd.f32 %v1781_v37, %v6909_v2  ;;  %2334 = vadd.xlane.f32.xlu0 %v2333_v44  ;;  %v2336_v29 = vadd.f32 %v2246_v24, %v2245_v0  ;;  %v2355_v24 = vpop.permute.xlu1 %2354 }
 0x25e   :  { %vm2043_vm8 = vcmp.gt.f32.partialorder %v1969_v34, 0.0  ;;  %v2107_v31 = vmul.f32 0.2, %v1969_v34  ;;  %v1973_v48 = vadd.f32 %v1972_v17, %v1780_v1  ;;  %v3454_v17 = vunpack.c.l.s4 %v5733_v19 }
 0x25f   :  { %vm2044_vm9 = vcmp.gt.f32.partialorder %v1971_v38, 0.0  ;;  %v2108_v42 = vmul.f32 0.2, %v1971_v38  ;;  %v1975_v39 = vadd.f32 %v1974_v4, %v1782_v49  ;;  %2337 = vadd.xlane.f32.xlu1 %v2336_v29  ;;  %v7049_v1 = vrot.slane %v2355_v24, %v6148_v52 }
 0x260   :  { %vm2045_vm10 = vcmp.gt.f32.partialorder %v1973_v48, 0.0  ;;  %v2109_v9 = vmul.f32 0.2, %v1973_v48  ;;  %v2171_v41 = vsel %vm2043_vm8, %v1969_v34, %v2107_v31  ;;  %v3455_v34 = vunpack.c.0.s8 %v3454_v17 }
 0x261   :  { %vm2046_vm11 = vcmp.gt.f32.partialorder %v1975_v39, 0.0  ;;  %v2110_v21 = vmul.f32 0.2, %v1975_v39  ;;  %v1785_v6 = vpop.f32.mrb[124].mxu1  ;;  %v2172_v5 = vsel %vm2044_vm9, %v1971_v38, %v2108_v42  ;;  %v2247_v12 = vmul.f32 %v6919_v35, %v2171_v41 }
 0x262   :  { %v1978_v3 = vpop.f32.mrb[124].mxu0  ;;  %v1786_v7 = vadd.f32 %v1785_v6, %v6906_v13  ;;  %v1787_v63 = vpop.f32.mrb[125].mxu1  ;;  %v2248_v26 = vmul.f32 %v6922_v18, %v2172_v5  ;;  %v2173_v11 = vsel %vm2045_vm10, %v1973_v48, %v2109_v9  ;;  %v7052_v4 = vsub.s32 4, %v6145_v51 }
 0x263   :  { %v1980_v33 = vpop.f32.mrb[125].mxu0  ;;  %v1788_v8 = vadd.f32 %v1787_v63, %v6909_v2  ;;  %v1789_v45 = vpop.f32.mrb[126].mxu1  ;;  %v2174_v23 = vsel %vm2046_vm11, %v1975_v39, %v2110_v21  ;;  %v2249_v10 = vmul.f32 %v6919_v35, %v2173_v11  ;;  %v7055_v38 = vsub.s32 5, %v6145_v51 }
 0x264   :  { %v1982_v32 = vpop.f32.mrb[126].mxu0  ;;  %v1979_v56 = vadd.f32 %v1978_v3, %v1786_v7  ;;  %v1790_v57 = vadd.f32 %v1789_v45, %v6906_v13  ;;  %v1791_v25 = vpop.f32.mrb[127].mxu1  ;;  %v2339_v27 = vadd.f32 %v2248_v26, %v2247_v12  ;;  %v2250_v40 = vmul.f32 %v6922_v18, %v2174_v23 }
 0x265   :  { %v1984_v36 = vpop.f32.mrb[127].mxu0  ;;  %v1981_v58 = vadd.f32 %v1980_v33, %v1788_v8  ;;  %v1792_v62 = vadd.f32 %v1791_v25, %v6909_v2  ;;  %v7065_v29 = vsub.s32 %v3455_v34, %v6145_v51  ;;  %vm5180_vm8 = vcmask 654912  }
 0x266   :  { %vm2047_vm12 = vcmp.gt.f32.partialorder %v1979_v56, 0.0  ;;  %v2111_v59 = vmul.f32 0.2, %v1979_v56  ;;  %v1983_v46 = vadd.f32 %v1982_v32, %v1790_v57  ;;  %2340 = vadd.xlane.f32.xlu0 %v2339_v27  ;;  %v2342_v20 = vadd.f32 %v2250_v40, %v2249_v10 }
 0x267   :  { %vm2048_vm13 = vcmp.gt.f32.partialorder %v1981_v58, 0.0  ;;  %v2112_v15 = vmul.f32 0.2, %v1981_v58  ;;  %v1985_v47 = vadd.f32 %v1984_v36, %v1792_v62  ;;  %vm5187_vm9 = vcmask 720512  }
 0x268   :  { %vm2049_vm14 = vcmp.gt.f32.partialorder %v1983_v46, 0.0  ;;  %v2113_v14 = vmul.f32 0.2, %v1983_v46  ;;  %v2175_v61 = vsel %vm2047_vm12, %v1979_v56, %v2111_v59  ;;  %vm5194_vm10 = vcmask 786112  }
 0x269   :  { %vm2050_vm15 = vcmp.gt.f32.partialorder %v1985_v47, 0.0  ;;  %v2114_v13 = vmul.f32 0.2, %v1985_v47  ;;  %v2176_v22 = vsel %vm2048_vm13, %v1981_v58, %v2112_v15  ;;  %v2251_v16 = vmul.f32 %v6919_v35, %v2175_v61 }
 0x26a   :  { %2343 = vadd.xlane.f32.xlu0 %v2342_v20  ;;  %v2252_v43 = vmul.f32 %v6922_v18, %v2176_v22  ;;  %v2177_v2 = vsel %vm2049_vm14, %v1983_v46, %v2113_v14  ;;  %vm5201_vm11 = vcmask 851712   ;;  %vm5208_vm12 = vcmask 917312  }
 0x26b   :  { %v2178_v28 = vsel %vm2050_vm15, %v1985_v47, %v2114_v13  ;;  %v2253_v30 = vmul.f32 %v6919_v35, %v2177_v2  ;;  %v7058_v35 = vsub.s32 6, %v6145_v51  ;;  %vm5215_vm13 = vcmask 982912  }
 0x26c   :  { %v2345_v0 = vadd.f32 %v2252_v43, %v2251_v16  ;;  %v2254_v60 = vmul.f32 %v6922_v18, %v2178_v28  ;;  %v7061_v18 = vsub.s32 7, %v6145_v51  ;;  %vm5222_vm14 = vcmask 1048512  }
 0x26d   :  { %vm5321_vm15 = vcmp.lt.s32.totalorder %v95_v50, 256 }
 0x26e   :  { %2346 = vadd.xlane.f32.xlu0 %v2345_v0  ;;  %v2348_v44 = vadd.f32 %v2254_v60, %v2253_v30 }
 0x272   :  { %2349 = vadd.xlane.f32.xlu0 %v2348_v44  ;;  %v2257_v37 = vpop.xlane.xlu0 %2256 }
 0x273   :  { %v2361_v49 = vadd.f32 %v7049_v1, %v2257_v37 }
 0x275   :  { %v2428_v31 = vrot.slane %v2361_v49, %v6148_v52  ;;  %v2432_v48 = vrot.slane %v2361_v49, %v6157_v54  ;;  %v2436_v42 = vrot.slane %v2361_v49, %v6151_v53  ;;  %v2440_v39 = vrot.slane %v2361_v49, %v6160_v55 }
 0x276   :  { %v2260_v9 = vpop.xlane.xlu0 %2259  ;;  %v2444_v41 = vrot.slane %v2361_v49, %v7052_v4  ;;  %v2448_v21 = vrot.slane %v2361_v49, %v7055_v38  ;;  %v2452_v6 = vrot.slane %v2361_v49, %v7058_v35  ;;  %v2456_v3 = vrot.slane %v2361_v49, %v7061_v18 }
 0x277   :  { %v2362_v5 = vadd.f32 %v7049_v1, %v2260_v9  ;;  %v3449_v12 = vcombine.low %v2428_v31, %v2432_v48  ;;  %v3450_v7 = vcombine.low %v2436_v42, %v2440_v39 }
 0x278   :  { %v3451_v63 = vcombine.low %v2444_v41, %v2448_v21  ;;  %v3452_v33 = vcombine.low %v2452_v6, %v2456_v3 }
 0x279   :  { %v3459_v26 = vrot.slane %v3449_v12, %v7065_v29  ;;  %v3466_v11 = vrot.slane %v3450_v7, %v7065_v29  ;;  %v2460_v8 = vrot.slane %v2362_v5, %v6148_v52  ;;  %v2464_v45 = vrot.slane %v2362_v5, %v6157_v54 }
 0x27a   :  { %v2263_v32 = vpop.xlane.xlu1 %2262  ;;  %v3473_v23 = vrot.slane %v3451_v63, %v7065_v29  ;;  %v3480_v10 = vrot.slane %v3452_v33, %v7065_v29  ;;  %v2468_v56 = vrot.slane %v2362_v5, %v6151_v53  ;;  %v2472_v57 = vrot.slane %v2362_v5, %v6160_v55 }
 0x27b   :  { %v2363_v25 = vadd.f32 %v7049_v1, %v2263_v32  ;;  %v3481_v36 = vcombine.low %v3459_v26, %v3466_v11  ;;  %v2476_v27 = vrot.slane %v2362_v5, %v7052_v4  ;;  %v2480_v40 = vrot.slane %v2362_v5, %v7055_v38 }
 0x27c   :  { %v3482_v58 = vcombine.low %v3473_v23, %v3480_v10  ;;  %v2484_v62 = vrot.slane %v2362_v5, %v7058_v35  ;;  %v2488_v59 = vrot.slane %v2362_v5, %v7061_v18  ;;  %v3498_v46 = vcombine.low %v2460_v8, %v2464_v45 }
 0x27d   :  { %v3489_v20 = vrot.slane %v3481_v36, %v7065_v29  ;;  %v3499_v15 = vcombine.low %v2468_v56, %v2472_v57  ;;  %v3500_v47 = vcombine.low %v2476_v27, %v2480_v40  ;;  %v2492_v14 = vrot.slane %v2363_v25, %v6148_v52 }
 0x27e   :  { %v2266_v61 = vpop.xlane.xlu1 %2265  ;;  %v3496_v13 = vrot.slane %v3482_v58, %v7065_v29  ;;  %v3501_v22 = vcombine.low %v2484_v62, %v2488_v59  ;;  %v3508_v16 = vrot.slane %v3498_v46, %v7065_v29  ;;  %v2496_v43 = vrot.slane %v2363_v25, %v6157_v54 }
 0x27f   :  { %v2364_v2 = vadd.f32 %v7049_v1, %v2266_v61  ;;  %v3515_v28 = vrot.slane %v3499_v15, %v7065_v29  ;;  %v3522_v30 = vrot.slane %v3500_v47, %v7065_v29  ;;  %v2500_v0 = vrot.slane %v2363_v25, %v6151_v53 }
 0x280   :  { %v3497_v60 = vcombine.low %v3489_v20, %v3496_v13  ;;  %v3529_v19 = vrot.slane %v3501_v22, %v7065_v29  ;;  %v2504_v17 = vrot.slane %v2363_v25, %v6160_v55  ;;  %v2508_v44 = vrot.slane %v2363_v25, %v7052_v4 }
 0x281   :  { %v3530_v24 = vcombine.low %v3508_v16, %v3515_v28  ;;  %v2512_v34 = vrot.slane %v2363_v25, %v7055_v38  ;;  %v2516_v37 = vrot.slane %v2363_v25, %v7058_v35  ;;  %v2520_v49 = vrot.slane %v2363_v25, %v7061_v18 }
 0x282   :  { %v3531_v31 = vcombine.low %v3522_v30, %v3529_v19  ;;  %v3547_v48 = vcombine.low %v2492_v14, %v2496_v43  ;;  %v3548_v42 = vcombine.low %v2500_v0, %v2504_v17  ;;  %v2524_v39 = vrot.slane %v2364_v2, %v6148_v52 }
 0x283   :  { %v3538_v9 = vrot.slane %v3530_v24, %v7065_v29  ;;  %v3549_v41 = vcombine.low %v2508_v44, %v2512_v34  ;;  %v3550_v21 = vcombine.low %v2516_v37, %v2520_v49  ;;  %v2528_v6 = vrot.slane %v2364_v2, %v6157_v54 }
 0x284   :  { %v3545_v3 = vrot.slane %v3531_v31, %v7065_v29  ;;  %v3557_v5 = vrot.slane %v3547_v48, %v7065_v29  ;;  %v3564_v12 = vrot.slane %v3548_v42, %v7065_v29  ;;  %v2532_v7 = vrot.slane %v2364_v2, %v6151_v53  ;;  %v2269_v63 = vpop.xlane.xlu0 %2268 }
 0x285   :  { %v3571_v33 = vrot.slane %v3549_v41, %v7065_v29  ;;  %v3578_v26 = vrot.slane %v3550_v21, %v7065_v29  ;;  %v2536_v11 = vrot.slane %v2364_v2, %v6160_v55  ;;  %v2540_v8 = vrot.slane %v2364_v2, %v7052_v4 }
 0x286   :  { %v2365_v45 = vadd.f32 %v7049_v1, %v2269_v63  ;;  %v3546_v32 = vcombine.low %v3538_v9, %v3545_v3  ;;  %v3579_v23 = vcombine.low %v3557_v5, %v3564_v12  ;;  %v2544_v10 = vrot.slane %v2364_v2, %v7055_v38  ;;  %v2272_v56 = vpop.xlane.xlu1 %2271 }
 0x287   :  { %v3580_v57 = vcombine.low %v3571_v33, %v3578_v26  ;;  %v2548_v25 = vrot.slane %v2364_v2, %v7058_v35  ;;  %v2552_v36 = vrot.slane %v2364_v2, %v7061_v18  ;;  %v3596_v27 = vcombine.low %v2524_v39, %v2528_v6 }
 0x288   :  { %5018 = vperm.xlu0 %5571, %v3497_v60   ;;  %v2366_v40 = vadd.f32 %v7049_v1, %v2272_v56  ;;  %5021 = vperm.xlu1 %5570, %v3546_v32   ;;  %v3587_v58 = vrot.slane %v3579_v23, %v7065_v29  ;;  %v3597_v62 = vcombine.low %v2532_v7, %v2536_v11 }
 0x289   :  { %v3598_v59 = vcombine.low %v2540_v8, %v2544_v10  ;;  %v3594_v46 = vrot.slane %v3580_v57, %v7065_v29  ;;  %v3599_v20 = vcombine.low %v2548_v25, %v2552_v36  ;;  %v3606_v15 = vrot.slane %v3596_v27, %v7065_v29 }
 0x28a   :  { %v2556_v47 = vrot.slane %v2365_v45, %v6148_v52  ;;  %v3613_v14 = vrot.slane %v3597_v62, %v7065_v29  ;;  %v2560_v13 = vrot.slane %v2365_v45, %v6157_v54  ;;  %v2564_v22 = vrot.slane %v2365_v45, %v6151_v53 }
 0x28b   :  { %v3620_v61 = vrot.slane %v3598_v59, %v7065_v29  ;;  %v3595_v16 = vcombine.low %v3587_v58, %v3594_v46  ;;  %v3627_v43 = vrot.slane %v3599_v20, %v7065_v29  ;;  %v2568_v2 = vrot.slane %v2365_v45, %v6160_v55 }
 0x28c   :  { %v2572_v28 = vrot.slane %v2365_v45, %v7052_v4  ;;  %v3628_v30 = vcombine.low %v3606_v15, %v3613_v14  ;;  %v2576_v0 = vrot.slane %v2365_v45, %v7055_v38  ;;  %v2580_v60 = vrot.slane %v2365_v45, %v7058_v35 }
 0x28d   :  { %v2584_v19 = vrot.slane %v2365_v45, %v7061_v18  ;;  %5024 = vperm.xlu1 %5570, %v3595_v16   ;;  %v3629_v17 = vcombine.low %v3620_v61, %v3627_v43  ;;  %v3645_v44 = vcombine.low %v2556_v47, %v2560_v13  ;;  %v3646_v24 = vcombine.low %v2564_v22, %v2568_v2 }
 0x28e   :  { %v2588_v34 = vrot.slane %v2366_v40, %v6148_v52  ;;  %v3636_v37 = vrot.slane %v3628_v30, %v7065_v29  ;;  %v3647_v49 = vcombine.low %v2572_v28, %v2576_v0  ;;  %v2592_v48 = vrot.slane %v2366_v40, %v6157_v54  ;;  %v2275_v42 = vpop.xlane.xlu0 %2274 }
 0x28f   :  { %v3648_v31 = vcombine.low %v2580_v60, %v2584_v19  ;;  %v3643_v39 = vrot.slane %v3629_v17, %v7065_v29  ;;  %v3655_v9 = vrot.slane %v3645_v44, %v7065_v29  ;;  %v3662_v41 = vrot.slane %v3646_v24, %v7065_v29 }
 0x290   :  { %v2596_v21 = vrot.slane %v2366_v40, %v6151_v53  ;;  %v2367_v6 = vadd.f32 %v7049_v1, %v2275_v42  ;;  %v3669_v3 = vrot.slane %v3647_v49, %v7065_v29  ;;  %v2600_v12 = vrot.slane %v2366_v40, %v6160_v55  ;;  %v2278_v7 = vpop.xlane.xlu1 %2277 }
 0x291   :  { %v3676_v5 = vrot.slane %v3648_v31, %v7065_v29  ;;  %v3644_v63 = vcombine.low %v3636_v37, %v3643_v39  ;;  %v3677_v33 = vcombine.low %v3655_v9, %v3662_v41  ;;  %v2604_v26 = vrot.slane %v2366_v40, %v7052_v4 }
 0x292   :  { %v2608_v11 = vrot.slane %v2366_v40, %v7055_v38  ;;  %v2368_v8 = vadd.f32 %v7049_v1, %v2278_v7  ;;  %v2612_v32 = vrot.slane %v2366_v40, %v7058_v35  ;;  %v2616_v23 = vrot.slane %v2366_v40, %v7061_v18 }
 0x293   :  { %v3678_v45 = vcombine.low %v3669_v3, %v3676_v5  ;;  %5027 = vperm.xlu1 %5570, %v3644_v63   ;;  %v3685_v10 = vrot.slane %v3677_v33, %v7065_v29  ;;  %v3694_v56 = vcombine.low %v2588_v34, %v2592_v48  ;;  %v3695_v57 = vcombine.low %v2596_v21, %v2600_v12 }
 0x294   :  { %v3696_v25 = vcombine.low %v2604_v26, %v2608_v11  ;;  %v3697_v27 = vcombine.low %v2612_v32, %v2616_v23  ;;  %v2620_v58 = vrot.slane %v2367_v6, %v6148_v52  ;;  %v2624_v62 = vrot.slane %v2367_v6, %v6157_v54 }
 0x295   :  { %v3692_v36 = vrot.slane %v3678_v45, %v7065_v29  ;;  %v3704_v59 = vrot.slane %v3694_v56, %v7065_v29  ;;  %v3711_v46 = vrot.slane %v3695_v57, %v7065_v29  ;;  %v2628_v40 = vrot.slane %v2367_v6, %v6151_v53 }
 0x296   :  { %v3718_v20 = vrot.slane %v3696_v25, %v7065_v29  ;;  %v3725_v47 = vrot.slane %v3697_v27, %v7065_v29  ;;  %v2632_v14 = vrot.slane %v2367_v6, %v6160_v55  ;;  %v2636_v61 = vrot.slane %v2367_v6, %v7052_v4 }
 0x297   :  { %v3693_v15 = vcombine.low %v3685_v10, %v3692_v36  ;;  %v3726_v13 = vcombine.low %v3704_v59, %v3711_v46  ;;  %v2640_v22 = vrot.slane %v2367_v6, %v7055_v38  ;;  %v2644_v16 = vrot.slane %v2367_v6, %v7058_v35  ;;  %v2281_v2 = vpop.xlane.xlu0 %2280 }
 0x298   :  { %v2648_v43 = vrot.slane %v2367_v6, %v7061_v18  ;;  %v3727_v28 = vcombine.low %v3718_v20, %v3725_v47  ;;  %v3743_v30 = vcombine.low %v2620_v58, %v2624_v62  ;;  %v3744_v0 = vcombine.low %v2628_v40, %v2632_v14 }
 0x299   :  { %5030 = vperm.xlu1 %5570, %v3693_v15   ;;  %v2652_v60 = vrot.slane %v2368_v8, %v6148_v52  ;;  %v2369_v19 = vadd.f32 %v7049_v1, %v2281_v2  ;;  %v3734_v17 = vrot.slane %v3726_v13, %v7065_v29  ;;  %v3745_v44 = vcombine.low %v2636_v61, %v2640_v22  ;;  %v2284_v34 = vpop.xlane.xlu1 %2283 }
 0x29a   :  { %v3746_v24 = vcombine.low %v2644_v16, %v2648_v43  ;;  %v3741_v37 = vrot.slane %v3727_v28, %v7065_v29  ;;  %v3753_v49 = vrot.slane %v3743_v30, %v7065_v29  ;;  %v3760_v31 = vrot.slane %v3744_v0, %v7065_v29 }
 0x29b   :  { %v2656_v48 = vrot.slane %v2368_v8, %v6157_v54  ;;  %v7172_v42 = vadd.f32 %v7049_v1, %v2284_v34  ;;  %v3767_v39 = vrot.slane %v3745_v44, %v7065_v29  ;;  %v2660_v41 = vrot.slane %v2368_v8, %v6151_v53 }
 0x29c   :  { %v3774_v9 = vrot.slane %v3746_v24, %v7065_v29  ;;  %v3742_v21 = vcombine.low %v3734_v17, %v3741_v37  ;;  %v3775_v6 = vcombine.low %v3753_v49, %v3760_v31  ;;  %v2664_v3 = vrot.slane %v2368_v8, %v6160_v55 }
 0x29d   :  { %v2668_v5 = vrot.slane %v2368_v8, %v7052_v4  ;;  %v2672_v7 = vrot.slane %v2368_v8, %v7055_v38  ;;  %v2676_v63 = vrot.slane %v2368_v8, %v7058_v35  ;;  %v2680_v33 = vrot.slane %v2368_v8, %v7061_v18 }
 0x29e   :  { %v3776_v12 = vcombine.low %v3767_v39, %v3774_v9  ;;  %5033 = vperm.xlu1 %5570, %v3742_v21   ;;  %v3783_v26 = vrot.slane %v3775_v6, %v7065_v29  ;;  %v3792_v11 = vcombine.low %v2652_v60, %v2656_v48  ;;  %v3793_v45 = vcombine.low %v2660_v41, %v2664_v3 }
 0x29f   :  { %v2684_v32 = vrot.slane %v2369_v19, %v6148_v52  ;;  %v3794_v10 = vcombine.low %v2668_v5, %v2672_v7  ;;  %v3795_v56 = vcombine.low %v2676_v63, %v2680_v33  ;;  %v2688_v57 = vrot.slane %v2369_v19, %v6157_v54 }
 0x2a0   :  { %v3790_v23 = vrot.slane %v3776_v12, %v7065_v29  ;;  %v3802_v25 = vrot.slane %v3792_v11, %v7065_v29  ;;  %v3809_v36 = vrot.slane %v3793_v45, %v7065_v29  ;;  %v2692_v27 = vrot.slane %v2369_v19, %v6151_v53  ;;  %v2287_v62 = vpop.xlane.xlu0 %2286 }
 0x2a1   :  { %v2696_v8 = vrot.slane %v2369_v19, %v6160_v55  ;;  %v3816_v59 = vrot.slane %v3794_v10, %v7065_v29  ;;  %v3823_v46 = vrot.slane %v3795_v56, %v7065_v29  ;;  %v2700_v20 = vrot.slane %v2369_v19, %v7052_v4 }
 0x2a2   :  { %v3791_v58 = vcombine.low %v3783_v26, %v3790_v23  ;;  %v7194_v40 = vadd.f32 %v7049_v1, %v2287_v62  ;;  %v3824_v15 = vcombine.low %v3802_v25, %v3809_v36  ;;  %v2704_v47 = vrot.slane %v2369_v19, %v7055_v38  ;;  %v2290_v61 = vpop.xlane.xlu1 %2289 }
 0x2a3   :  { %v2708_v14 = vrot.slane %v2369_v19, %v7058_v35  ;;  %v3825_v13 = vcombine.low %v3816_v59, %v3823_v46  ;;  %v2712_v22 = vrot.slane %v2369_v19, %v7061_v18  ;;  %v3841_v16 = vcombine.low %v2684_v32, %v2688_v57 }
 0x2a4   :  { %5036 = vperm.xlu1 %5570, %v3791_v58   ;;  %v3842_v43 = vcombine.low %v2692_v27, %v2696_v8  ;;  %v7200_v2 = vadd.f32 %v7049_v1, %v2290_v61  ;;  %v3832_v28 = vrot.slane %v3824_v15, %v7065_v29  ;;  %v3843_v30 = vcombine.low %v2700_v20, %v2704_v47 }
 0x2a5   :  { %v2716_v0 = vrot.slane %v7172_v42, %v6148_v52  ;;  %v3839_v60 = vrot.slane %v3825_v13, %v7065_v29  ;;  %v3844_v17 = vcombine.low %v2708_v14, %v2712_v22  ;;  %v3851_v44 = vrot.slane %v3841_v16, %v7065_v29 }
 0x2a6   :  { %v3858_v24 = vrot.slane %v3842_v43, %v7065_v29  ;;  %v3865_v19 = vrot.slane %v3843_v30, %v7065_v29  ;;  %v2720_v34 = vrot.slane %v7172_v42, %v6157_v54  ;;  %v2724_v37 = vrot.slane %v7172_v42, %v6151_v53 }
 0x2a7   :  { %v2728_v49 = vrot.slane %v7172_v42, %v6160_v55  ;;  %v3840_v31 = vcombine.low %v3832_v28, %v3839_v60  ;;  %v3872_v48 = vrot.slane %v3844_v17, %v7065_v29  ;;  %v2732_v9 = vrot.slane %v7172_v42, %v7052_v4 }
 0x2a8   :  { %v3873_v39 = vcombine.low %v3851_v44, %v3858_v24  ;;  %v2736_v41 = vrot.slane %v7172_v42, %v7055_v38  ;;  %v2740_v21 = vrot.slane %v7172_v42, %v7058_v35  ;;  %v2744_v6 = vrot.slane %v7172_v42, %v7061_v18 }
 0x2a9   :  { %v3890_v3 = vcombine.low %v2716_v0, %v2720_v34  ;;  %5039 = vperm.xlu1 %5570, %v3840_v31   ;;  %v3874_v5 = vcombine.low %v3865_v19, %v3872_v48  ;;  %v3891_v7 = vcombine.low %v2724_v37, %v2728_v49  ;;  %v2748_v63 = vrot.slane %v7194_v40, %v6148_v52  ;;  %v2293_v33 = vpop.xlane.xlu0 %2292 }
 0x2aa   :  { %v3881_v12 = vrot.slane %v3873_v39, %v7065_v29  ;;  %v3892_v26 = vcombine.low %v2732_v9, %v2736_v41  ;;  %v3893_v11 = vcombine.low %v2740_v21, %v2744_v6  ;;  %v2752_v32 = vrot.slane %v7194_v40, %v6157_v54 }
 0x2ab   :  { %v3900_v45 = vrot.slane %v3890_v3, %v7065_v29  ;;  %v3888_v23 = vrot.slane %v3874_v5, %v7065_v29  ;;  %v7232_v42 = vadd.f32 %v7049_v1, %v2293_v33  ;;  %v3907_v10 = vrot.slane %v3891_v7, %v7065_v29  ;;  %v2296_v57 = vpop.xlane.xlu1 %2295 }
 0x2ac   :  { %v2756_v56 = vrot.slane %v7194_v40, %v6151_v53  ;;  %v3914_v25 = vrot.slane %v3892_v26, %v7065_v29  ;;  %v3921_v36 = vrot.slane %v3893_v11, %v7065_v29  ;;  %v2760_v27 = vrot.slane %v7194_v40, %v6160_v55 }
 0x2ad   :  { %v2764_v8 = vrot.slane %v7194_v40, %v7052_v4  ;;  %v3889_v58 = vcombine.low %v3881_v12, %v3888_v23  ;;  %v7244_v62 = vadd.f32 %v7049_v1, %v2296_v57  ;;  %v3922_v59 = vcombine.low %v3900_v45, %v3907_v10 }
 0x2ae   :  { %v2768_v46 = vrot.slane %v7194_v40, %v7055_v38  ;;  %v3923_v20 = vcombine.low %v3914_v25, %v3921_v36  ;;  %v2772_v15 = vrot.slane %v7194_v40, %v7058_v35  ;;  %v2776_v47 = vrot.slane %v7194_v40, %v7061_v18 }
 0x2af   :  { %v3939_v14 = vcombine.low %v2748_v63, %v2752_v32  ;;  %5042 = vperm.xlu1 %5570, %v3889_v58   ;;  %v3930_v61 = vrot.slane %v3922_v59, %v7065_v29  ;;  %v3940_v13 = vcombine.low %v2756_v56, %v2760_v27  ;;  %v2780_v16 = vrot.slane %v7200_v2, %v6148_v52 }
 0x2b0   :  { %v3941_v22 = vcombine.low %v2764_v8, %v2768_v46  ;;  %v3937_v43 = vrot.slane %v3923_v20, %v7065_v29  ;;  %v3942_v28 = vcombine.low %v2772_v15, %v2776_v47  ;;  %v2784_v0 = vrot.slane %v7200_v2, %v6157_v54 }
 0x2b1   :  { %v3949_v30 = vrot.slane %v3939_v14, %v7065_v29  ;;  %v3956_v60 = vrot.slane %v3940_v13, %v7065_v29  ;;  %v2788_v17 = vrot.slane %v7200_v2, %v6151_v53  ;;  %v2792_v44 = vrot.slane %v7200_v2, %v6160_v55 }
 0x2b2   :  { %v3963_v40 = vrot.slane %v3941_v22, %v7065_v29  ;;  %v3938_v24 = vcombine.low %v3930_v61, %v3937_v43  ;;  %v3970_v19 = vrot.slane %v3942_v28, %v7065_v29  ;;  %v2796_v34 = vrot.slane %v7200_v2, %v7052_v4  ;;  %v2299_v31 = vpop.xlane.xlu0 %2298 }
 0x2b3   :  { %v2800_v37 = vrot.slane %v7200_v2, %v7055_v38  ;;  %v3971_v49 = vcombine.low %v3949_v30, %v3956_v60  ;;  %v2804_v48 = vrot.slane %v7200_v2, %v7058_v35  ;;  %v2808_v39 = vrot.slane %v7200_v2, %v7061_v18 }
 0x2b4   :  { %v3988_v9 = vcombine.low %v2780_v16, %v2784_v0  ;;  %5045 = vperm.xlu1 %5570, %v3938_v24   ;;  %v3972_v41 = vcombine.low %v3963_v40, %v3970_v19  ;;  %v7275_v21 = vadd.f32 %v7049_v1, %v2299_v31  ;;  %v3989_v6 = vcombine.low %v2788_v17, %v2792_v44  ;;  %v2302_v12 = vpop.xlane.xlu1 %2301 }
 0x2b5   :  { %v3990_v3 = vcombine.low %v2796_v34, %v2800_v37  ;;  %v3979_v5 = vrot.slane %v3971_v49, %v7065_v29  ;;  %v3991_v7 = vcombine.low %v2804_v48, %v2808_v39  ;;  %v2812_v33 = vrot.slane %v7232_v42, %v6148_v52 }
 0x2b6   :  { %v3998_v63 = vrot.slane %v3988_v9, %v7065_v29  ;;  %v3986_v26 = vrot.slane %v3972_v41, %v7065_v29  ;;  %v7283_v2 = vadd.f32 %v7049_v1, %v2302_v12  ;;  %v4005_v11 = vrot.slane %v3989_v6, %v7065_v29 }
 0x2b7   :  { %v4012_v45 = vrot.slane %v3990_v3, %v7065_v29  ;;  %v4019_v32 = vrot.slane %v3991_v7, %v7065_v29  ;;  %v2816_v23 = vrot.slane %v7232_v42, %v6157_v54  ;;  %v2820_v10 = vrot.slane %v7232_v42, %v6151_v53 }
 0x2b8   :  { %v2824_v56 = vrot.slane %v7232_v42, %v6160_v55  ;;  %v3987_v57 = vcombine.low %v3979_v5, %v3986_v26  ;;  %v4020_v25 = vcombine.low %v3998_v63, %v4005_v11  ;;  %v2828_v36 = vrot.slane %v7232_v42, %v7052_v4 }
 0x2b9   :  { %v2832_v27 = vrot.slane %v7232_v42, %v7055_v38  ;;  %v4021_v8 = vcombine.low %v4012_v45, %v4019_v32  ;;  %v2836_v58 = vrot.slane %v7232_v42, %v7058_v35  ;;  %v2840_v59 = vrot.slane %v7232_v42, %v7061_v18 }
 0x2ba   :  { %v4037_v46 = vcombine.low %v2812_v33, %v2816_v23  ;;  %5048 = vperm.xlu1 %5570, %v3987_v57   ;;  %v4028_v20 = vrot.slane %v4020_v25, %v7065_v29  ;;  %v4038_v15 = vcombine.low %v2820_v10, %v2824_v56  ;;  %v2844_v14 = vrot.slane %v7244_v62, %v6148_v52 }
 0x2bb   :  { %v4039_v47 = vcombine.low %v2828_v36, %v2832_v27  ;;  %v4035_v61 = vrot.slane %v4021_v8, %v7065_v29  ;;  %v4040_v13 = vcombine.low %v2836_v58, %v2840_v59  ;;  %v2848_v16 = vrot.slane %v7244_v62, %v6157_v54  ;;  %v2305_v43 = vpop.xlane.xlu0 %2304 }
 0x2bc   :  { %v4047_v22 = vrot.slane %v4037_v46, %v7065_v29  ;;  %v4054_v42 = vrot.slane %v4038_v15, %v7065_v29  ;;  %v2852_v30 = vrot.slane %v7244_v62, %v6151_v53  ;;  %v2856_v0 = vrot.slane %v7244_v62, %v6160_v55 }
 0x2bd   :  { %v4061_v28 = vrot.slane %v4039_v47, %v7065_v29  ;;  %v4036_v60 = vcombine.low %v4028_v20, %v4035_v61  ;;  %v2377_v40 = vadd.f32 %v7049_v1, %v2305_v43  ;;  %v4068_v17 = vrot.slane %v4040_v13, %v7065_v29  ;;  %v2308_v24 = vpop.xlane.xlu1 %2307 }
 0x2be   :  { %v2860_v44 = vrot.slane %v7244_v62, %v7052_v4  ;;  %v4069_v19 = vcombine.low %v4047_v22, %v4054_v42  ;;  %v2864_v34 = vrot.slane %v7244_v62, %v7055_v38  ;;  %v2868_v37 = vrot.slane %v7244_v62, %v7058_v35 }
 0x2bf   :  { %v2872_v49 = vrot.slane %v7244_v62, %v7061_v18  ;;  %5051 = vperm.xlu1 %5570, %v4036_v60   ;;  %v2378_v31 = vadd.f32 %v7049_v1, %v2308_v24  ;;  %v2940_v48 = vrot.slane %v2377_v40, %v6148_v52  ;;  %v2944_v39 = vrot.slane %v2377_v40, %v6157_v54 }
 0x2c0   :  { %v2948_v9 = vrot.slane %v2377_v40, %v6151_v53  ;;  %v2952_v41 = vrot.slane %v2377_v40, %v6160_v55  ;;  %v2956_v6 = vrot.slane %v2377_v40, %v7052_v4  ;;  %v2960_v3 = vrot.slane %v2377_v40, %v7055_v38 }
 0x2c1   :  { %v2964_v5 = vrot.slane %v2377_v40, %v7058_v35  ;;  %v2968_v12 = vrot.slane %v2377_v40, %v7061_v18  ;;  %v4233_v7 = vcombine.low %v2940_v48, %v2944_v39  ;;  %v2972_v63 = vrot.slane %v2378_v31, %v6148_v52 }
 0x2c2   :  { %v2976_v33 = vrot.slane %v2378_v31, %v6157_v54  ;;  %v4234_v26 = vcombine.low %v2948_v9, %v2952_v41  ;;  %v4235_v11 = vcombine.low %v2956_v6, %v2960_v3  ;;  %v2980_v45 = vrot.slane %v2378_v31, %v6151_v53 }
 0x2c3   :  { %v2984_v32 = vrot.slane %v2378_v31, %v6160_v55  ;;  %v4236_v23 = vcombine.low %v2964_v5, %v2968_v12  ;;  %v4243_v10 = vrot.slane %v4233_v7, %v7065_v29  ;;  %v2988_v56 = vrot.slane %v2378_v31, %v7052_v4 }
 0x2c4   :  { %v2992_v57 = vrot.slane %v2378_v31, %v7055_v38  ;;  %v4250_v25 = vrot.slane %v4234_v26, %v7065_v29  ;;  %v4257_v36 = vrot.slane %v4235_v11, %v7065_v29  ;;  %v2996_v27 = vrot.slane %v2378_v31, %v7058_v35  ;;  %v2311_v58 = vpop.xlane.xlu0 %2310 }
 0x2c5   :  { %v3000_v8 = vrot.slane %v2378_v31, %v7061_v18  ;;  %v4264_v59 = vrot.slane %v4236_v23, %v7065_v29  ;;  %v4282_v46 = vcombine.low %v2972_v63, %v2976_v33  ;;  %v4283_v20 = vcombine.low %v2980_v45, %v2984_v32 }
 0x2c6   :  { %v4284_v15 = vcombine.low %v2988_v56, %v2992_v57  ;;  %v2379_v47 = vadd.f32 %v7049_v1, %v2311_v58  ;;  %v4265_v61 = vcombine.low %v4243_v10, %v4250_v25  ;;  %v4070_v22 = vcombine.low %v4061_v28, %v4068_v17  ;;  %v2314_v43 = vpop.xlane.xlu1 %2313 }
 0x2c7   :  { %v4285_v13 = vcombine.low %v2996_v27, %v3000_v8  ;;  %v4266_v42 = vcombine.low %v4257_v36, %v4264_v59  ;;  %v4292_v60 = vrot.slane %v4282_v46, %v7065_v29  ;;  %v4299_v40 = vrot.slane %v4283_v20, %v7065_v29 }
 0x2c8   :  { %v4306_v24 = vrot.slane %v4284_v15, %v7065_v29  ;;  %v7351_v31 = vadd.f32 %v7049_v1, %v2314_v43  ;;  %v4273_v48 = vrot.slane %v4265_v61, %v7065_v29  ;;  %v4077_v9 = vrot.slane %v4069_v19, %v7065_v29 }
 0x2c9   :  { %v4313_v39 = vrot.slane %v4285_v13, %v7065_v29  ;;  %v4280_v41 = vrot.slane %v4266_v42, %v7065_v29  ;;  %v4314_v28 = vcombine.low %v4292_v60, %v4299_v40  ;;  %v4084_v17 = vrot.slane %v4070_v22, %v7065_v29 }
 0x2ca   :  { %v3004_v6 = vrot.slane %v2379_v47, %v6148_v52  ;;  %v3008_v5 = vrot.slane %v2379_v47, %v6157_v54  ;;  %v3012_v12 = vrot.slane %v2379_v47, %v6151_v53  ;;  %v3016_v7 = vrot.slane %v2379_v47, %v6160_v55 }
 0x2cb   :  { %v4315_v3 = vcombine.low %v4306_v24, %v4313_v39  ;;  %v4281_v63 = vcombine.low %v4273_v48, %v4280_v41  ;;  %v4322_v33 = vrot.slane %v4314_v28, %v7065_v29  ;;  %v4085_v26 = vcombine.low %v4077_v9, %v4084_v17 }
 0x2cc   :  { %v3020_v19 = vrot.slane %v2379_v47, %v7052_v4  ;;  %v3024_v45 = vrot.slane %v2379_v47, %v7055_v38  ;;  %v3028_v32 = vrot.slane %v2379_v47, %v7058_v35  ;;  %v3032_v23 = vrot.slane %v2379_v47, %v7061_v18 }
 0x2cd   :  { %v4329_v11 = vrot.slane %v4315_v3, %v7065_v29  ;;  %5066 = vperm.xlu1 %5570, %v4281_v63   ;;  %v4331_v10 = vcombine.low %v3004_v6, %v3008_v5  ;;  %v4332_v56 = vcombine.low %v3012_v12, %v3016_v7  ;;  %v4086_v57 = vcombine.low %v2844_v14, %v2848_v16  ;;  %v2317_v36 = vpop.xlane.xlu0 %2316 }
 0x2ce   :  { %v4087_v25 = vcombine.low %v2852_v30, %v2856_v0  ;;  %v4333_v8 = vcombine.low %v3020_v19, %v3024_v45  ;;  %v4334_v58 = vcombine.low %v3028_v32, %v3032_v23  ;;  %v4088_v59 = vcombine.low %v2860_v44, %v2864_v34 }
 0x2cf   :  { %v4330_v27 = vcombine.low %v4322_v33, %v4329_v11  ;;  %v7387_v14 = vadd.f32 %v7049_v1, %v2317_v36  ;;  %v4341_v16 = vrot.slane %v4331_v10, %v7065_v29  ;;  %v4348_v46 = vrot.slane %v4332_v56, %v7065_v29  ;;  %v2320_v0 = vpop.xlane.xlu1 %2319 }
 0x2d0   :  { %v4089_v30 = vcombine.low %v2868_v37, %v2872_v49  ;;  %v4355_v20 = vrot.slane %v4333_v8, %v7065_v29  ;;  %v4362_v15 = vrot.slane %v4334_v58, %v7065_v29  ;;  %v4096_v44 = vrot.slane %v4086_v57, %v7065_v29 }
 0x2d1   :  { %v4103_v34 = vrot.slane %v4087_v25, %v7065_v29  ;;  %v7402_v47 = vadd.f32 %v7049_v1, %v2320_v0  ;;  %5069 = vperm.xlu1 %5570, %v4330_v27   ;;  %v4363_v61 = vcombine.low %v4341_v16, %v4348_v46  ;;  %v4110_v13 = vrot.slane %v4088_v59, %v7065_v29 }
 0x2d2   :  { %v4117_v22 = vrot.slane %v4089_v30, %v7065_v29  ;;  %v4364_v62 = vcombine.low %v4355_v20, %v4362_v15  ;;  %v3036_v49 = vrot.slane %v7351_v31, %v6148_v52  ;;  %v3040_v43 = vrot.slane %v7351_v31, %v6157_v54 }
 0x2d3   :  { %v4118_v37 = vcombine.low %v4096_v44, %v4103_v34  ;;  %v4371_v42 = vrot.slane %v4363_v61, %v7065_v29  ;;  %v3044_v40 = vrot.slane %v7351_v31, %v6151_v53  ;;  %v3048_v24 = vrot.slane %v7351_v31, %v6160_v55 }
 0x2d4   :  { %v4119_v60 = vcombine.low %v4110_v13, %v4117_v22  ;;  %v4378_v48 = vrot.slane %v4364_v62, %v7065_v29  ;;  %v3052_v9 = vrot.slane %v7351_v31, %v7052_v4  ;;  %v3056_v41 = vrot.slane %v7351_v31, %v7055_v38 }
 0x2d5   :  { %v4126_v39 = vrot.slane %v4118_v37, %v7065_v29  ;;  %5054 = vperm.xlu1 %5570, %v4085_v26   ;;  %v3060_v17 = vrot.slane %v7351_v31, %v7058_v35  ;;  %v3064_v6 = vrot.slane %v7351_v31, %v7061_v18  ;;  %v4380_v3 = vcombine.low %v3036_v49, %v3040_v43 }
 0x2d6   :  { %v4133_v28 = vrot.slane %v4119_v60, %v7065_v29  ;;  %v4379_v5 = vcombine.low %v4371_v42, %v4378_v48  ;;  %v4381_v12 = vcombine.low %v3044_v40, %v3048_v24  ;;  %v4382_v7 = vcombine.low %v3052_v9, %v3056_v41  ;;  %v2323_v33 = vpop.xlane.xlu0 %2322 }
 0x2d7   :  { %v2876_v63 = vrot.slane %v7275_v21, %v6148_v52  ;;  %v4383_v11 = vcombine.low %v3060_v17, %v3064_v6  ;;  %v4390_v26 = vrot.slane %v4380_v3, %v7065_v29  ;;  %v2880_v45 = vrot.slane %v7275_v21, %v6157_v54 }
 0x2d8   :  { %v4134_v19 = vcombine.low %v4126_v39, %v4133_v28  ;;  %5072 = vperm.xlu0 %5571, %v4379_v5   ;;  %v7432_v32 = vadd.f32 %v7049_v1, %v2323_v33  ;;  %v4397_v31 = vrot.slane %v4381_v12, %v7065_v29  ;;  %v4404_v23 = vrot.slane %v4382_v7, %v7065_v29 }
 0x2d9   :  { %v2884_v10 = vrot.slane %v7275_v21, %v6151_v53  ;;  %v4411_v56 = vrot.slane %v4383_v11, %v7065_v29  ;;  %v2888_v57 = vrot.slane %v7275_v21, %v6160_v55  ;;  %v2892_v25 = vrot.slane %v7275_v21, %v7052_v4 }
 0x2da   :  { %5057 = vperm.xlu1 %5570, %v4134_v19   ;;  %v2896_v36 = vrot.slane %v7275_v21, %v7055_v38  ;;  %v4412_v27 = vcombine.low %v4390_v26, %v4397_v31  ;;  %v2900_v8 = vrot.slane %v7275_v21, %v7058_v35  ;;  %v2904_v58 = vrot.slane %v7275_v21, %v7061_v18  ;;  %v2326_v46 = vpop.xlane.xlu0 %2325 }
 0x2db   :  { %v4135_v59 = vcombine.low %v2876_v63, %v2880_v45  ;;  %v4413_v16 = vcombine.low %v4404_v23, %v4411_v56  ;;  %v4136_v30 = vcombine.low %v2884_v10, %v2888_v57  ;;  %v3068_v20 = vrot.slane %v7387_v14, %v6148_v52 }
 0x2dc   :  { %v4137_v0 = vcombine.low %v2892_v25, %v2896_v36  ;;  %v4420_v15 = vrot.slane %v4412_v27, %v7065_v29  ;;  %v7453_v44 = vadd.f32 %v7049_v1, %v2326_v46  ;;  %v4138_v34 = vcombine.low %v2900_v8, %v2904_v58 }
 0x2dd   :  { %v4145_v61 = vrot.slane %v4135_v59, %v7065_v29  ;;  %v4427_v13 = vrot.slane %v4413_v16, %v7065_v29  ;;  %v4152_v21 = vrot.slane %v4136_v30, %v7065_v29  ;;  %v3072_v62 = vrot.slane %v7387_v14, %v6157_v54 }
 0x2de   :  { %v4159_v22 = vrot.slane %v4137_v0, %v7065_v29  ;;  %v4166_v37 = vrot.slane %v4138_v34, %v7065_v29  ;;  %v3076_v49 = vrot.slane %v7387_v14, %v6151_v53  ;;  %v3080_v43 = vrot.slane %v7387_v14, %v6160_v55 }
 0x2df   :  { %v3084_v42 = vrot.slane %v7387_v14, %v7052_v4  ;;  %v4428_v60 = vcombine.low %v4420_v15, %v4427_v13  ;;  %v4167_v40 = vcombine.low %v4145_v61, %v4152_v21  ;;  %v3088_v24 = vrot.slane %v7387_v14, %v7055_v38 }
 0x2e0   :  { %v3092_v48 = vrot.slane %v7387_v14, %v7058_v35  ;;  %v4168_v39 = vcombine.low %v4159_v22, %v4166_v37  ;;  %v3096_v9 = vrot.slane %v7387_v14, %v7061_v18  ;;  %v4429_v41 = vcombine.low %v3068_v20, %v3072_v62  ;;  %v2329_v17 = vpop.xlane.xlu0 %2328 }
 0x2e1   :  { %v4430_v28 = vcombine.low %v3076_v49, %v3080_v43  ;;  %5075 = vperm.xlu0 %5571, %v4428_v60   ;;  %v4175_v6 = vrot.slane %v4167_v40, %v7065_v29  ;;  %v4431_v3 = vcombine.low %v3084_v42, %v3088_v24  ;;  %v7476_v5 = vadd.f32 %v7049_v1, %v2329_v17 }
 0x2e2   :  { %v2908_v12 = vrot.slane %v7283_v2, %v6148_v52  ;;  %v4182_v7 = vrot.slane %v4168_v39, %v7065_v29  ;;  %v4432_v63 = vcombine.low %v3092_v48, %v3096_v9  ;;  %v4439_v33 = vrot.slane %v4429_v41, %v7065_v29 }
 0x2e3   :  { %v4446_v14 = vrot.slane %v4430_v28, %v7065_v29  ;;  %v4453_v19 = vrot.slane %v4431_v3, %v7065_v29  ;;  %v2912_v11 = vrot.slane %v7283_v2, %v6157_v54  ;;  %v2916_v26 = vrot.slane %v7283_v2, %v6151_v53 }
 0x2e4   :  { %v2920_v45 = vrot.slane %v7283_v2, %v6160_v55  ;;  %v4183_v31 = vcombine.low %v4175_v6, %v4182_v7  ;;  %v4460_v23 = vrot.slane %v4432_v63, %v7065_v29  ;;  %v2924_v56 = vrot.slane %v7283_v2, %v7052_v4  ;;  %v2332_v13 = vpop.xlane.xlu0 %2331 }
 0x2e5   :  { %v4461_v10 = vcombine.low %v4439_v33, %v4446_v14  ;;  %v2928_v57 = vrot.slane %v7283_v2, %v7055_v38  ;;  %v2932_v25 = vrot.slane %v7283_v2, %v7058_v35  ;;  %v2936_v36 = vrot.slane %v7283_v2, %v7061_v18 }
 0x2e6   :  { %v4184_v27 = vcombine.low %v2908_v12, %v2912_v11  ;;  %5060 = vperm.xlu1 %5570, %v4183_v31   ;;  %v4462_v8 = vcombine.low %v4453_v19, %v4460_v23  ;;  %v4185_v59 = vcombine.low %v2916_v26, %v2920_v45  ;;  %v3100_v16 = vrot.slane %v7402_v47, %v6148_v52 }
 0x2e7   :  { %v4469_v58 = vrot.slane %v4461_v10, %v7065_v29  ;;  %v4186_v46 = vcombine.low %v2924_v56, %v2928_v57  ;;  %v4187_v30 = vcombine.low %v2932_v25, %v2936_v36  ;;  %v3104_v20 = vrot.slane %v7402_v47, %v6157_v54 }
 0x2e8   :  { %v4194_v0 = vrot.slane %v4184_v27, %v7065_v29  ;;  %v4476_v15 = vrot.slane %v4462_v8, %v7065_v29  ;;  %v4201_v2 = vrot.slane %v4185_v59, %v7065_v29  ;;  %v3108_v34 = vrot.slane %v7402_v47, %v6151_v53 }
 0x2e9   :  { %v3112_v61 = vrot.slane %v7402_v47, %v6160_v55  ;;  %v4208_v21 = vrot.slane %v4186_v46, %v7065_v29  ;;  %v4215_v22 = vrot.slane %v4187_v30, %v7065_v29  ;;  %v3116_v62 = vrot.slane %v7402_v47, %v7052_v4 }
 0x2ea   :  { %v3120_v37 = vrot.slane %v7402_v47, %v7055_v38  ;;  %v4477_v49 = vcombine.low %v4469_v58, %v4476_v15  ;;  %v4216_v43 = vcombine.low %v4194_v0, %v4201_v2  ;;  %v3124_v42 = vrot.slane %v7402_v47, %v7058_v35  ;;  %v2335_v19 = vpop.xlane.xlu0 %2334 }
 0x2eb   :  { %v3128_v60 = vrot.slane %v7402_v47, %v7061_v18  ;;  %v4217_v40 = vcombine.low %v4208_v21, %v4215_v22  ;;  %v4478_v24 = vcombine.low %v3100_v16, %v3104_v20  ;;  %v4479_v48 = vcombine.low %v3108_v34, %v3112_v61 }
 0x2ec   :  { %v4480_v39 = vcombine.low %v3116_v62, %v3120_v37  ;;  %5078 = vperm.xlu0 %5571, %v4477_v49   ;;  %v4224_v9 = vrot.slane %v4216_v43, %v7065_v29  ;;  %v7523_v28 = vadd.f32 %v7049_v1, %v2332_v13  ;;  %v3132_v17 = vrot.slane %v7432_v32, %v6148_v52  ;;  %v2338_v23 = vpop.xlane.xlu1 %2337 }
 0x2ed   :  { %v4481_v41 = vcombine.low %v3124_v42, %v3128_v60  ;;  %v4231_v6 = vrot.slane %v4217_v40, %v7065_v29  ;;  %v4488_v3 = vrot.slane %v4478_v24, %v7065_v29  ;;  %v4495_v47 = vrot.slane %v4479_v48, %v7065_v29 }
 0x2ee   :  { %v4502_v12 = vrot.slane %v4480_v39, %v7065_v29  ;;  %v3136_v63 = vrot.slane %v7432_v32, %v6157_v54  ;;  %v3140_v33 = vrot.slane %v7432_v32, %v6151_v53  ;;  %v3144_v14 = vrot.slane %v7432_v32, %v6160_v55 }
 0x2ef   :  { %v4509_v7 = vrot.slane %v4481_v41, %v7065_v29  ;;  %v4232_v11 = vcombine.low %v4224_v9, %v4231_v6  ;;  %v4510_v26 = vcombine.low %v4488_v3, %v4495_v47  ;;  %v3148_v45 = vrot.slane %v7432_v32, %v7052_v4 }
 0x2f0   :  { %v3152_v31 = vrot.slane %v7432_v32, %v7055_v38  ;;  %v3156_v56 = vrot.slane %v7432_v32, %v7058_v35  ;;  %v3160_v57 = vrot.slane %v7432_v32, %v7061_v18  ;;  %v4527_v25 = vcombine.low %v3132_v17, %v3136_v63 }
 0x2f1   :  { %v4511_v10 = vcombine.low %v4502_v12, %v4509_v7  ;;  %5063 = vperm.xlu1 %5570, %v4232_v11   ;;  %v4518_v36 = vrot.slane %v4510_v26, %v7065_v29  ;;  %v4528_v27 = vcombine.low %v3140_v33, %v3144_v14  ;;  %v7548_v58 = vadd.f32 %v7049_v1, %v2335_v19 }
 0x2f2   :  { %v4529_v8 = vcombine.low %v3148_v45, %v3152_v31  ;;  %v4530_v16 = vcombine.low %v3156_v56, %v3160_v57  ;;  %v4537_v46 = vrot.slane %v4527_v25, %v7065_v29  ;;  %v7553_v30 = vadd.f32 %v7049_v1, %v2338_v23 }
 0x2f3   :  { %v4525_v59 = vrot.slane %v4511_v10, %v7065_v29  ;;  %v4544_v0 = vrot.slane %v4528_v27, %v7065_v29  ;;  %v3164_v20 = vrot.slane %v7453_v44, %v6148_v52  ;;  %v3168_v15 = vrot.slane %v7453_v44, %v6157_v54  ;;  %v2341_v9 = vpop.xlane.xlu0 %2340 }
 0x2f4   :  { %v4551_v32 = vrot.slane %v4529_v8, %v7065_v29  ;;  %v4558_v34 = vrot.slane %v4530_v16, %v7065_v29  ;;  %v3172_v61 = vrot.slane %v7453_v44, %v6151_v53  ;;  %v3176_v13 = vrot.slane %v7453_v44, %v6160_v55 }
 0x2f5   :  { %v4526_v2 = vcombine.low %v4518_v36, %v4525_v59  ;;  %v4559_v21 = vcombine.low %v4537_v46, %v4544_v0  ;;  %v3180_v22 = vrot.slane %v7453_v44, %v7052_v4  ;;  %v3184_v62 = vrot.slane %v7453_v44, %v7055_v38 }
 0x2f6   :  { %v3188_v37 = vrot.slane %v7453_v44, %v7058_v35  ;;  %v4560_v49 = vcombine.low %v4551_v32, %v4558_v34  ;;  %v3192_v43 = vrot.slane %v7453_v44, %v7061_v18  ;;  %v4576_v42 = vcombine.low %v3164_v20, %v3168_v15 }
 0x2f7   :  { %5081 = vperm.xlu0 %5571, %v4526_v2   ;;  %v4577_v60 = vcombine.low %v3172_v61, %v3176_v13  ;;  %v4567_v40 = vrot.slane %v4559_v21, %v7065_v29  ;;  %v4578_v24 = vcombine.low %v3180_v22, %v3184_v62  ;;  %v3196_v48 = vrot.slane %v7476_v5, %v6148_v52  ;;  %v2344_v59 = vpop.xlane.xlu0 %2343 }
 0x2f8   :  { %v3200_v39 = vrot.slane %v7476_v5, %v6157_v54  ;;  %v4574_v41 = vrot.slane %v4560_v49, %v7065_v29  ;;  %v4579_v17 = vcombine.low %v3188_v37, %v3192_v43  ;;  %v4586_v6 = vrot.slane %v4576_v42, %v7065_v29 }
 0x2f9   :  { %v4593_v3 = vrot.slane %v4577_v60, %v7065_v29  ;;  %v4600_v44 = vrot.slane %v4578_v24, %v7065_v29  ;;  %v3204_v47 = vrot.slane %v7476_v5, %v6151_v53  ;;  %v3208_v12 = vrot.slane %v7476_v5, %v6160_v55 }
 0x2fa   :  { %v3212_v7 = vrot.slane %v7476_v5, %v7052_v4  ;;  %v4575_v63 = vcombine.low %v4567_v40, %v4574_v41  ;;  %v4607_v33 = vrot.slane %v4579_v17, %v7065_v29  ;;  %v3216_v19 = vrot.slane %v7476_v5, %v7055_v38 }
 0x2fb   :  { %v4608_v14 = vcombine.low %v4586_v6, %v4593_v3  ;;  %v3220_v11 = vrot.slane %v7476_v5, %v7058_v35  ;;  %v3224_v26 = vrot.slane %v7476_v5, %v7061_v18  ;;  %v4625_v45 = vcombine.low %v3196_v48, %v3200_v39 }
 0x2fc   :  { %v4626_v31 = vcombine.low %v3204_v47, %v3208_v12  ;;  %5084 = vperm.xlu0 %5571, %v4575_v63   ;;  %v4609_v23 = vcombine.low %v4600_v44, %v4607_v33  ;;  %v4627_v56 = vcombine.low %v3212_v7, %v3216_v19  ;;  %v7598_v57 = vadd.f32 %v7049_v1, %v2341_v9  ;;  %v2347_v9 = vpop.xlane.xlu0 %2346 }
 0x2fd   :  { %v4616_v10 = vrot.slane %v4608_v14, %v7065_v29  ;;  %v4628_v25 = vcombine.low %v3220_v11, %v3224_v26  ;;  %v4635_v36 = vrot.slane %v4625_v45, %v7065_v29  ;;  %v3228_v8 = vrot.slane %v7523_v28, %v6148_v52 }
 0x2fe   :  { %v4642_v27 = vrot.slane %v4626_v31, %v7065_v29  ;;  %v4623_v5 = vrot.slane %v4609_v23, %v7065_v29  ;;  %v4649_v16 = vrot.slane %v4627_v56, %v7065_v29  ;;  %v3232_v46 = vrot.slane %v7523_v28, %v6157_v54 }
 0x2ff   :  { %v3236_v0 = vrot.slane %v7523_v28, %v6151_v53  ;;  %v4656_v32 = vrot.slane %v4628_v25, %v7065_v29  ;;  %v3240_v15 = vrot.slane %v7523_v28, %v6160_v55  ;;  %v3244_v2 = vrot.slane %v7523_v28, %v7052_v4 }
 0x300   :  { %v4657_v20 = vcombine.low %v4635_v36, %v4642_v27  ;;  %v4624_v34 = vcombine.low %v4616_v10, %v4623_v5  ;;  %v3248_v61 = vrot.slane %v7523_v28, %v7055_v38  ;;  %v3252_v13 = vrot.slane %v7523_v28, %v7058_v35 }
 0x301   :  { %v3256_v21 = vrot.slane %v7523_v28, %v7061_v18  ;;  %v4658_v22 = vcombine.low %v4649_v16, %v4656_v32  ;;  %v4674_v37 = vcombine.low %v3228_v8, %v3232_v46  ;;  %v4675_v49 = vcombine.low %v3236_v0, %v3240_v15 }
 0x302   :  { %v4665_v62 = vrot.slane %v4657_v20, %v7065_v29  ;;  %5087 = vperm.xlu0 %5571, %v4624_v34   ;;  %v4676_v43 = vcombine.low %v3244_v2, %v3248_v61  ;;  %v7623_v60 = vadd.f32 %v7049_v1, %v2344_v59  ;;  %v3260_v40 = vrot.slane %v7548_v58, %v6148_v52  ;;  %v2350_v59 = vpop.xlane.xlu0 %2349 }
 0x303   :  { %v4677_v42 = vcombine.low %v3252_v13, %v3256_v21  ;;  %v4672_v24 = vrot.slane %v4658_v22, %v7065_v29  ;;  %v4684_v48 = vrot.slane %v4674_v37, %v7065_v29  ;;  %v4691_v28 = vrot.slane %v4675_v49, %v7065_v29 }
 0x304   :  { %v3264_v39 = vrot.slane %v7548_v58, %v6157_v54  ;;  %v4698_v41 = vrot.slane %v4676_v43, %v7065_v29  ;;  %v3268_v6 = vrot.slane %v7548_v58, %v6151_v53  ;;  %v3272_v3 = vrot.slane %v7548_v58, %v6160_v55 }
 0x305   :  { %v4705_v17 = vrot.slane %v4677_v42, %v7065_v29  ;;  %v4673_v44 = vcombine.low %v4665_v62, %v4672_v24  ;;  %v4706_v47 = vcombine.low %v4684_v48, %v4691_v28  ;;  %v3276_v12 = vrot.slane %v7548_v58, %v7052_v4 }
 0x306   :  { %v3280_v7 = vrot.slane %v7548_v58, %v7055_v38  ;;  %v3284_v33 = vrot.slane %v7548_v58, %v7058_v35  ;;  %v3288_v14 = vrot.slane %v7548_v58, %v7061_v18  ;;  %v4723_v19 = vcombine.low %v3260_v40, %v3264_v39 }
 0x307   :  { %v4707_v63 = vcombine.low %v4698_v41, %v4705_v17  ;;  %5090 = vperm.xlu0 %5571, %v4673_v44   ;;  %v4714_v11 = vrot.slane %v4706_v47, %v7065_v29  ;;  %v4724_v26 = vcombine.low %v3268_v6, %v3272_v3  ;;  %v7648_v31 = vadd.f32 %v7049_v1, %v2347_v9 }
 0x308   :  { %v4725_v45 = vcombine.low %v3276_v12, %v3280_v7  ;;  %v4726_v10 = vcombine.low %v3284_v33, %v3288_v14  ;;  %v4733_v56 = vrot.slane %v4723_v19, %v7065_v29  ;;  %v3292_v25 = vrot.slane %v7553_v30, %v6148_v52 }
 0x309   :  { %v4721_v23 = vrot.slane %v4707_v63, %v7065_v29  ;;  %v4740_v36 = vrot.slane %v4724_v26, %v7065_v29  ;;  %v3296_v27 = vrot.slane %v7553_v30, %v6157_v54  ;;  %v3300_v8 = vrot.slane %v7553_v30, %v6151_v53 }
 0x30a   :  { %v4747_v58 = vrot.slane %v4725_v45, %v7065_v29  ;;  %v4754_v16 = vrot.slane %v4726_v10, %v7065_v29  ;;  %v3304_v46 = vrot.slane %v7553_v30, %v6160_v55  ;;  %v3308_v0 = vrot.slane %v7553_v30, %v7052_v4 }
 0x30b   :  { %v4722_v5 = vcombine.low %v4714_v11, %v4721_v23  ;;  %v4755_v32 = vcombine.low %v4733_v56, %v4740_v36  ;;  %v3312_v20 = vrot.slane %v7553_v30, %v7055_v38  ;;  %v3316_v15 = vrot.slane %v7553_v30, %v7058_v35 }
 0x30c   :  { %v3320_v2 = vrot.slane %v7553_v30, %v7061_v18  ;;  %v4756_v34 = vcombine.low %v4747_v58, %v4754_v16  ;;  %v4772_v61 = vcombine.low %v3292_v25, %v3296_v27  ;;  %v4773_v13 = vcombine.low %v3300_v8, %v3304_v46 }
 0x30d   :  { %5093 = vperm.xlu0 %5571, %v4722_v5   ;;  %v7672_v21 = vadd.f32 %v7049_v1, %v2350_v59  ;;  %v4763_v22 = vrot.slane %v4755_v32, %v7065_v29  ;;  %v4774_v62 = vcombine.low %v3308_v0, %v3312_v20  ;;  %v3324_v49 = vrot.slane %v7598_v57, %v6148_v52 }
 0x30e   :  { %v4775_v37 = vcombine.low %v3316_v15, %v3320_v2  ;;  %v4770_v43 = vrot.slane %v4756_v34, %v7065_v29  ;;  %v4782_v42 = vrot.slane %v4772_v61, %v7065_v29  ;;  %v4789_v30 = vrot.slane %v4773_v13, %v7065_v29 }
 0x30f   :  { %v3328_v40 = vrot.slane %v7598_v57, %v6157_v54  ;;  %v4796_v24 = vrot.slane %v4774_v62, %v7065_v29  ;;  %v3332_v48 = vrot.slane %v7598_v57, %v6151_v53  ;;  %v3336_v28 = vrot.slane %v7598_v57, %v6160_v55 }
 0x310   :  { %v4803_v1 = vrot.slane %v4775_v37, %v7065_v29  ;;  %v4771_v39 = vcombine.low %v4763_v22, %v4770_v43  ;;  %v4804_v9 = vcombine.low %v4782_v42, %v4789_v30  ;;  %v3340_v41 = vrot.slane %v7598_v57, %v7052_v4 }
 0x311   :  { %v3344_v17 = vrot.slane %v7598_v57, %v7055_v38  ;;  %v3348_v3 = vrot.slane %v7598_v57, %v7058_v35  ;;  %v3352_v44 = vrot.slane %v7598_v57, %v7061_v18  ;;  %v4821_v47 = vcombine.low %v3324_v49, %v3328_v40 }
 0x312   :  { %v4805_v6 = vcombine.low %v4796_v24, %v4803_v1  ;;  %5096 = vperm.xlu0 %5571, %v4771_v39   ;;  %v4812_v12 = vrot.slane %v4804_v9, %v7065_v29  ;;  %v4822_v7 = vcombine.low %v3332_v48, %v3336_v28  ;;  %v3356_v33 = vrot.slane %v7623_v60, %v6148_v52 }
 0x313   :  { %v4823_v63 = vcombine.low %v3340_v41, %v3344_v17  ;;  %v4824_v19 = vcombine.low %v3348_v3, %v3352_v44  ;;  %v4831_v11 = vrot.slane %v4821_v47, %v7065_v29  ;;  %v3360_v26 = vrot.slane %v7623_v60, %v6157_v54 }
 0x314   :  { %v4819_v14 = vrot.slane %v4805_v6, %v7065_v29  ;;  %v4838_v45 = vrot.slane %v4822_v7, %v7065_v29  ;;  %v3364_v23 = vrot.slane %v7623_v60, %v6151_v53  ;;  %v3368_v10 = vrot.slane %v7623_v60, %v6160_v55 }
 0x315   :  { %v4845_v57 = vrot.slane %v4823_v63, %v7065_v29  ;;  %v4852_v25 = vrot.slane %v4824_v19, %v7065_v29  ;;  %v3372_v36 = vrot.slane %v7623_v60, %v7052_v4  ;;  %v3376_v58 = vrot.slane %v7623_v60, %v7055_v38 }
 0x316   :  { %v4820_v56 = vcombine.low %v4812_v12, %v4819_v14  ;;  %v4853_v27 = vcombine.low %v4831_v11, %v4838_v45  ;;  %v3380_v8 = vrot.slane %v7623_v60, %v7058_v35  ;;  %v3384_v59 = vrot.slane %v7623_v60, %v7061_v18 }
 0x317   :  { %v4870_v5 = vcombine.low %v3356_v33, %v3360_v26  ;;  %v4854_v16 = vcombine.low %v4845_v57, %v4852_v25  ;;  %v4871_v46 = vcombine.low %v3364_v23, %v3368_v10  ;;  %v4872_v0 = vcombine.low %v3372_v36, %v3376_v58 }
 0x318   :  { %5099 = vperm.xlu0 %5571, %v4820_v56   ;;  %v3388_v32 = vrot.slane %v7648_v31, %v6148_v52  ;;  %v4861_v20 = vrot.slane %v4853_v27, %v7065_v29  ;;  %v4873_v15 = vcombine.low %v3380_v8, %v3384_v59  ;;  %v3392_v34 = vrot.slane %v7648_v31, %v6157_v54  ;;  %v5022_v8 = vpop.permute.xlu1 %5021 }
 0x319   :  { %v4880_v2 = vrot.slane %v4870_v5, %v7065_v29  ;;  %v4868_v61 = vrot.slane %v4854_v16, %v7065_v29  ;;  %v4887_v60 = vrot.slane %v4871_v46, %v7065_v29  ;;  %v4894_v13 = vrot.slane %v4872_v0, %v7065_v29  ;;  %v5019_v46 = vpop.permute.xlu0 %5018 }
 0x31a   :  { %v3396_v22 = vrot.slane %v7648_v31, %v6151_v53  ;;  %v4901_v62 = vrot.slane %v4873_v15, %v7065_v29  ;;  %v3400_v37 = vrot.slane %v7648_v31, %v6160_v55  ;;  %v3404_v49 = vrot.slane %v7648_v31, %v7052_v4 }
 0x31b   :  { %v3408_v43 = vrot.slane %v7648_v31, %v7055_v38  ;;  %v4869_v42 = vcombine.low %v4861_v20, %v4868_v61  ;;  %v4902_v30 = vcombine.low %v4880_v2, %v4887_v60  ;;  %v3412_v40 = vrot.slane %v7648_v31, %v7058_v35 }
 0x31c   :  { %v3416_v24 = vrot.slane %v7648_v31, %v7061_v18  ;;  %v4903_v1 = vcombine.low %v4894_v13, %v4901_v62  ;;  %v4919_v48 = vcombine.low %v3388_v32, %v3392_v34  ;;  %v4920_v28 = vcombine.low %v3396_v22, %v3400_v37  ;;  %v5025_v59 = vpop.permute.xlu1 %5024 }
 0x31d   :  { %v4921_v39 = vcombine.low %v3404_v49, %v3408_v43  ;;  %5102 = vperm.xlu0 %5571, %v4869_v42   ;;  %v4910_v9 = vrot.slane %v4902_v30, %v7065_v29  ;;  %v3420_v17 = vrot.slane %v7672_v21, %v6148_v52  ;;  %v3424_v6 = vrot.slane %v7672_v21, %v6157_v54 }
 0x31e   :  { %v4922_v41 = vcombine.low %v3412_v40, %v3416_v24  ;;  %v4917_v3 = vrot.slane %v4903_v1, %v7065_v29  ;;  %v4929_v44 = vrot.slane %v4919_v48, %v7065_v29  ;;  %v4936_v31 = vrot.slane %v4920_v28, %v7065_v29 }
 0x31f   :  { %v4943_v47 = vrot.slane %v4921_v39, %v7065_v29  ;;  %v3428_v7 = vrot.slane %v7672_v21, %v6151_v53  ;;  %v3432_v63 = vrot.slane %v7672_v21, %v6160_v55  ;;  %v3436_v52 = vrot.slane %v7672_v21, %v7052_v4 }
 0x320   :  { %v4950_v12 = vrot.slane %v4922_v41, %v7065_v29  ;;  %v4918_v54 = vcombine.low %v4910_v9, %v4917_v3  ;;  %v4951_v33 = vcombine.low %v4929_v44, %v4936_v31  ;;  %v3440_v14 = vrot.slane %v7672_v21, %v7055_v38  ;;  %v5028_v5 = vpop.permute.xlu1 %5027 }
 0x321   :  { %v3444_v19 = vrot.slane %v7672_v21, %v7058_v35  ;;  %v3448_v26 = vrot.slane %v7672_v21, %v7061_v18  ;;  %v4968_v45 = vcombine.low %v3420_v17, %v3424_v6  ;;  %v4969_v53 = vcombine.low %v3428_v7, %v3432_v63 }
 0x322   :  { %v4952_v11 = vcombine.low %v4943_v47, %v4950_v12  ;;  %5105 = vperm.xlu0 %5571, %v4918_v54   ;;  %v4959_v55 = vrot.slane %v4951_v33, %v7065_v29  ;;  %v4970_v57 = vcombine.low %v3436_v52, %v3440_v14  ;;  %v7799_v30 = vand.u32 127, %v95_v50 }
 0x323   :  { %v4971_v23 = vcombine.low %v3444_v19, %v3448_v26  ;;  %v4978_v10 = vrot.slane %v4968_v45, %v7065_v29  ;;  %v4985_v38 = vrot.slane %v4969_v53, %v7065_v29 }
 0x324   :  { %v4966_v4 = vrot.slane %v4952_v11, %v7065_v29  ;;  %v4992_v56 = vrot.slane %v4970_v57, %v7065_v29  ;;  %v5031_v16 = vpop.permute.xlu1 %5030  ;;  %v5119_v24 = vadd.s32 4294967288, %v7799_v30  ;;  %v5126_v1 = vadd.s32 4294967280, %v7799_v30 }
 0x325   :  { %v4999_v25 = vrot.slane %v4971_v23, %v7065_v29  ;;  %v5000_v36 = vcombine.low %v4978_v10, %v4985_v38  ;;  %v5133_v48 = vadd.s32 4294967272, %v7799_v30  ;;  %v5140_v28 = vadd.s32 4294967264, %v7799_v30 }
 0x326   :  { %v4967_v35 = vcombine.low %v4959_v55, %v4966_v4  ;;  %v5122_v9 = vsub.s32 %v5119_v24, %v6145_v51  ;;  %v5147_v41 = vadd.s32 4294967256, %v7799_v30  ;;  %v5129_v6 = vsub.s32 %v5126_v1, %v6145_v51 }
 0x327   :  { %v5001_v18 = vcombine.low %v4992_v56, %v4999_v25  ;;  %v5008_v21 = vrot.slane %v5000_v36, %v7065_v29  ;;  %v5154_v3 = vadd.s32 4294967248, %v7799_v30  ;;  %v5117_v44 = vsub.s32 %v7799_v30, %v6145_v51 }
 0x328   :  { %5108 = vperm.xlu0 %5571, %v4967_v35   ;;  %v5034_v0 = vpop.permute.xlu1 %5033  ;;  %v5136_v31 = vsub.s32 %v5133_v48, %v6145_v51  ;;  %v7817_v47 = vsub.s32 %v5140_v28, %v6145_v51  ;;  %v5123_v12 = vrot.slane %v5022_v8, %v5122_v9  ;;  %v7820_v7 = vsub.s32 %v5147_v41, %v6145_v51 }
 0x329   :  { %v5015_v58 = vrot.slane %v5001_v18, %v7065_v29  ;;  %v5161_v63 = vadd.s32 4294967240, %v7799_v30  ;;  %v5130_v52 = vrot.slane %v5025_v59, %v5129_v6  ;;  %v7824_v54 = vsub.s32 %v5154_v3, %v6145_v51 }
 0x32a   :  { %v5118_v19 = vrot.slane %v5019_v46, %v5117_v44  ;;  %v5137_v11 = vrot.slane %v5028_v5, %v5136_v31  ;;  %v5168_v26 = vadd.s32 4294967232, %v7799_v30  ;;  %v5144_v45 = vrot.slane %v5031_v16, %v7817_v47 }
 0x32b   :  { %v5016_v27 = vcombine.low %v5008_v21, %v5015_v58  ;;  %v5151_v55 = vrot.slane %v5034_v0, %v7820_v7  ;;  %v5164_v57 = vsub.s32 %v5161_v63, %v6145_v51  ;;  %v5175_v56 = vadd.s32 4294967224, %v7799_v30 }
 0x32c   :  { %v7772_v20 = vpop.permute.xlu1 %5036  ;;  %v5125_v53 = vsel %vm5124_vm0, %v5123_v12, %v5118_v19  ;;  %v5171_v38 = vsub.s32 %v5168_v26, %v6145_v51  ;;  %v5182_v25 = vadd.s32 4294967216, %v7799_v30  ;;  %v5189_v59 = vadd.s32 4294967208, %v7799_v30 }
 0x32d   :  { %5111 = vperm.xlu0 %5571, %v5016_v27   ;;  %v5132_v4 = vsel %vm5131_vm1, %v5130_v52, %v5125_v53  ;;  %v5158_v23 = vrot.slane %v7772_v20, %v7824_v54  ;;  %v5178_v46 = vsub.s32 %v5175_v56, %v6145_v51  ;;  %v5196_v24 = vadd.s32 4294967200, %v7799_v30 }
 0x32e   :  { %v5139_v10 = vsel %vm5138_vm2, %v5137_v11, %v5132_v4  ;;  %v5217_v3 = vadd.s32 4294967176, %v7799_v30 }
 0x32f   :  { %v5146_v35 = vsel %vm5145_vm3, %v5144_v45, %v5139_v10 }
 0x330   :  { %v7776_v2 = vpop.permute.xlu1 %5039  ;;  %v5153_v21 = vsel %vm5152_vm4, %v5151_v55, %v5146_v35 }
 0x331   :  { %v5165_v58 = vrot.slane %v7776_v2, %v5164_v57  ;;  %v5160_v8 = vsel %vm5159_vm5, %v5158_v23, %v5153_v21  ;;  %v5185_v2 = vsub.s32 %v5182_v25, %v6145_v51 }
 0x333   :  { %v5167_v48 = vsel %vm5166_vm6, %v5165_v58, %v5160_v8 }
 0x334   :  { %v7780_v61 = vpop.permute.xlu1 %5042 }
 0x335   :  { %v5172_v16 = vrot.slane %v7780_v61, %v5171_v38  ;;  %v5203_v61 = vadd.s32 4294967192, %v7799_v30 }
 0x337   :  { %v5206_v63 = vsub.s32 %v5203_v61, %v6145_v51 }
 0x338   :  { %v7784_v13 = vpop.permute.xlu1 %5045 }
 0x33c   :  { %v7788_v62 = vpop.permute.xlu1 %5048 }
 0x340   :  { %v7792_v49 = vpop.permute.xlu1 %5051 }
 0x34c   :  { %v7796_v42 = vpop.permute.xlu1 %5066 }
 0x34d   :  { %v5227_v0 = vrot.slane %v7796_v42, %v5117_v44 }
 0x350   :  { %v5070_v39 = vpop.permute.xlu1 %5069 }
 0x351   :  { %v5231_v27 = vrot.slane %v5070_v39, %v5122_v9  ;;  %v5210_v9 = vadd.s32 4294967184, %v7799_v30  ;;  %v5186_v30 = vrot.slane %v7788_v62, %v5185_v2 }
 0x354   :  { %v7826_v33 = vpop.permute.xlu1 %5054 }
 0x357   :  { %v7770_v32 = vpop.permute.xlu0 %5072 }
 0x358   :  { %v5236_v5 = vrot.slane %v7770_v32, %v5129_v6  ;;  %v5232_v32 = vsel %vm5124_vm0, %v5231_v27, %v5227_v0 }
 0x359   :  { %v7843_v36 = vpop.permute.xlu1 %5057 }
 0x35a   :  { %v5237_v39 = vsel %vm5131_vm1, %v5236_v5, %v5232_v32 }
 0x360   :  { %v7774_v15 = vpop.permute.xlu0 %5075 }
 0x361   :  { %v5241_v20 = vrot.slane %v7774_v15, %v5136_v31  ;;  %v5192_v15 = vsub.s32 %v5189_v59, %v6145_v51  ;;  %v5199_v31 = vsub.s32 %v5196_v24, %v6145_v51 }
 0x363   :  { %v5242_v6 = vsel %vm5138_vm2, %v5241_v20, %v5237_v39  ;;  %v5193_v26 = vrot.slane %v7792_v49, %v5192_v15  ;;  %v5200_v53 = vrot.slane %v7826_v33, %v5199_v31 }
 0x365   :  { %v5061_v41 = vpop.permute.xlu1 %5060 }
 0x36b   :  { %v7778_v34 = vpop.permute.xlu0 %5078 }
 0x36c   :  { %v5246_v1 = vrot.slane %v7778_v34, %v7817_v47 }
 0x36e   :  { %v5247_v47 = vsel %vm5145_vm3, %v5246_v1, %v5242_v6 }
 0x376   :  { %v7782_v60 = vpop.permute.xlu0 %5081 }
 0x377   :  { %v5251_v28 = vrot.slane %v7782_v60, %v7820_v7  ;;  %v5174_v60 = vsel %vm5173_vm7, %v5172_v16, %v5167_v48  ;;  %v5179_v7 = vrot.slane %v7784_v13, %v5178_v46 }
 0x37b   :  { %v7786_v22 = vpop.permute.xlu0 %5084 }
 0x37c   :  { %v5256_v34 = vrot.slane %v7786_v22, %v7824_v54  ;;  %v5252_v22 = vsel %vm5152_vm4, %v5251_v28, %v5247_v47 }
 0x37e   :  { %v5257_v54 = vsel %vm5159_vm5, %v5256_v34, %v5252_v22 }
 0x381   :  { %v7790_v37 = vpop.permute.xlu0 %5087 }
 0x382   :  { %v5261_v44 = vrot.slane %v7790_v37, %v5164_v57  ;;  %v5213_v37 = vsub.s32 %v5210_v9, %v6145_v51  ;;  %v5181_v57 = vsel %vm5180_vm8, %v5179_v7, %v5174_v60 }
 0x384   :  { %v5262_v13 = vsel %vm5166_vm6, %v5261_v44, %v5257_v54  ;;  %v5214_v23 = vrot.slane %v5061_v41, %v5213_v37 }
 0x386   :  { %v7794_v43 = vpop.permute.xlu0 %5090 }
 0x387   :  { %v5266_v12 = vrot.slane %v7794_v43, %v5171_v38  ;;  %v5220_v43 = vsub.s32 %v5217_v3, %v6145_v51  ;;  %v5188_v51 = vsel %vm5187_vm9, %v5186_v30, %v5181_v57 }
 0x388   :  { %v5195_v33 = vsel %vm5194_vm10, %v5193_v26, %v5188_v51 }
 0x389   :  { %v5267_v62 = vsel %vm5173_vm7, %v5266_v12, %v5262_v13  ;;  %v5202_v35 = vsel %vm5201_vm11, %v5200_v53, %v5195_v33 }
 0x38c   :  { %v7801_v40 = vpop.permute.xlu0 %5093 }
 0x38d   :  { %v5271_v52 = vrot.slane %v7801_v40, %v5178_v46  ;;  %v5064_v40 = vpop.permute.xlu1 %5063 }
 0x38e   :  { %v5221_v38 = vrot.slane %v5064_v40, %v5220_v43 }
 0x38f   :  { %v5272_v49 = vsel %vm5180_vm8, %v5271_v52, %v5267_v62 }
 0x391   :  { %v7809_v17 = vpop.permute.xlu0 %5096 }
 0x392   :  { %v5276_v19 = vrot.slane %v7809_v17, %v5185_v2  ;;  %v5207_v17 = vrot.slane %v7843_v36, %v5206_v63 }
 0x397   :  { %v7828_v14 = vpop.permute.xlu0 %5099 }
 0x398   :  { %v5281_v45 = vrot.slane %v7828_v14, %v5192_v15  ;;  %v5277_v14 = vsel %vm5187_vm9, %v5276_v19, %v5272_v49 }
 0x39a   :  { %v5282_v56 = vsel %vm5194_vm10, %v5281_v45, %v5277_v14 }
 0x39c   :  { %v7845_v18 = vpop.permute.xlu0 %5102 }
 0x39d   :  { %v5286_v55 = vrot.slane %v7845_v18, %v5199_v31  ;;  %v5209_v18 = vsel %vm5208_vm12, %v5207_v17, %v5202_v35 }
 0x39e   :  { %v5216_v27 = vsel %vm5215_vm13, %v5214_v23, %v5209_v18 }
 0x39f   :  { %v5287_v25 = vsel %vm5201_vm11, %v5286_v55, %v5282_v56  ;;  %v5223_v59 = vsel %vm5222_vm14, %v5221_v38, %v5216_v27 }
 0x3a1   :  { %v5106_v42 = vpop.permute.xlu0 %5105 }
 0x3a2   :  { %v5291_v4 = vrot.slane %v5106_v42, %v5206_v63 }
 0x3a4   :  { %v5292_v21 = vsel %vm5208_vm12, %v5291_v4, %v5287_v25 }
 0x3a7   :  { %v5109_v11 = vpop.permute.xlu0 %5108 }
 0x3a8   :  { %v5296_v10 = vrot.slane %v5109_v11, %v5213_v37 }
 0x3aa   :  { %v5297_v8 = vsel %vm5215_vm13, %v5296_v10, %v5292_v21 }
 0x3ac   :  { %v5112_v36 = vpop.permute.xlu0 %5111 }
 0x3ad   :  { %v5301_v58 = vrot.slane %v5112_v36, %v5220_v43 }
 0x3af   :  { %v5302_v5 = vsel %vm5222_vm14, %v5301_v58, %v5297_v8 }
 0x3b0   :  { %v5303_v16 = vcombine.low %v5223_v59, %v5302_v5 }
 0x3b2   :  { %v5310_v46 = vrot.slane %v5303_v16, %v7065_v29 }
 0x3b4   :  { %v5317_v0 = vrot.slane %v5310_v46, %v7065_v29 }
 0x3b6   :  { %5323 = vst.msk [vmem:[%s7916_s7] sm:$0x3] %vm5321_vm15, %v5317_v0 }

</bundles_post_ra>
